<compile_context>
chip_gen: v7x
topology: tpu7x:2x2x1
jax: 0.10.0
libtpu: 0.0.40
codegen_flags: <defaults>
</compile_context>

<pallas_src>
import functools

import jax
import jax.numpy as jnp
from jax import lax
from jax.experimental import pallas as pl
from jax.experimental.pallas import tpu as pltpu

# ---- small synthetic BERT config ----
VOCAB = 100
TYPE_VOCAB = 2
MAX_POS = 16
HIDDEN = 32
N_HEADS = 2
HEAD_DIM = HIDDEN // N_HEADS
FFN = 64
N_LAYERS = 4          # hidden_states has N_LAYERS + 1 entries (embeddings + each layer)
N_CLASSES = 3
LN_EPS = 1e-12


# ----------------- fully fused kernel -----------------

def _bert_cls_kernel(ids_ref, tt_ref,                        # scalar prefetch (SMEM)
                     mask_ref, word_ref, pos_ref, type_ref,  # VMEM inputs
                     emb_g_ref, emb_b_ref,
                     wqkv_ref, bqkv_ref, wo_ref, bo_ref,
                     ln1g_ref, ln1b_ref, w1_ref, b1_ref,
                     w2_ref, b2_ref, ln2g_ref, ln2b_ref,
                     cls_w_ref, cls_b_ref,
                     logits_ref,                             # output
                     x_ref, cls_ref,                         # VMEM scratch
                     *, B, S):
    f32 = jnp.float32
    bf16 = jnp.bfloat16

    def ln(x, g, b):
        mu = jnp.mean(x, axis=-1, keepdims=True)
        var = jnp.mean(x * x, axis=-1, keepdims=True) - mu * mu   # E[x^2] - mu^2
        return (x - mu) * lax.rsqrt(var + LN_EPS) * g + b

    # ---- embeddings: in-kernel gather using SMEM-prefetched ids ----
    for b in range(B):
        for s in range(S):
            r = b * S + s
            x_ref[r:r + 1, :] = (word_ref[pl.ds(ids_ref[b, s], 1), :]
                                 + pos_ref[s:s + 1, :]
                                 + type_ref[pl.ds(tt_ref[b, s], 1), :])
    x = ln(x_ref[...], emb_g_ref[...], emb_b_ref[...])              # (B*S, H) f32

    # additive attention mask built in-kernel: (B, 1, S)
    neg_mask = (1.0 - mask_ref[...]) * (-1e9)

    scale = 1.0 / (HEAD_DIM ** 0.5)

    for l in range(N_LAYERS):                                # static unroll, static slices
        # --- fused QKV projection (bf16 weights, f32 accumulation) ---
        qkv = jnp.dot(x.astype(bf16), wqkv_ref[l],
                      preferred_element_type=f32) + bqkv_ref[l]      # (B*S, 3H)
        qkv3 = qkv.reshape(B, S, 3 * HIDDEN)                         # sublane-tile aligned

        # --- attention: batched over B per head; Wo applied per head block (no concat) ---
        wo_l = wo_ref[l]                                             # (H, H) bf16
        attn_out = bo_ref[l]                                         # (1, H) f32
        for h in range(N_HEADS):
            qh = qkv3[:, :, h * HEAD_DIM:(h + 1) * HEAD_DIM]
            kh = qkv3[:, :, HIDDEN + h * HEAD_DIM:HIDDEN + (h + 1) * HEAD_DIM]
            vh = qkv3[:, :, 2 * HIDDEN + h * HEAD_DIM:2 * HIDDEN + (h + 1) * HEAD_DIM]
            s_bqk = jnp.einsum('bqd,bkd->bqk', qh, kh,
                               preferred_element_type=f32) * scale + neg_mask
            s_bqk = s_bqk - jnp.max(s_bqk, axis=-1, keepdims=True)
            p = jnp.exp(s_bqk)
            p = p * pl.reciprocal(jnp.sum(p, axis=-1, keepdims=True), approx=True)
            ctx_h = jnp.einsum('bqk,bkd->bqd', p, vh,
                               preferred_element_type=f32)           # (B, S, HD)
            # concat(heads) @ Wo  ==  sum_h ctx_h @ Wo[h*HD:(h+1)*HD, :]
            attn_out = attn_out + jnp.dot(
                ctx_h.reshape(B * S, HEAD_DIM).astype(bf16),
                wo_l[h * HEAD_DIM:(h + 1) * HEAD_DIM, :],
                preferred_element_type=f32)

        # --- residual + LN1 ---
        x = ln(x + attn_out, ln1g_ref[l], ln1b_ref[l])

        # --- FFN + residual + LN2 ---
        h1 = jnp.dot(x.astype(bf16), w1_ref[l], preferred_element_type=f32) + b1_ref[l]
        # TODO(synk): HF BERT default act is exact erf GELU; tanh approximation used (~1e-3 dev).
        h1 = 0.5 * h1 * (1.0 + jnp.tanh(
            0.7978845608028654 * (h1 + 0.044715 * h1 * h1 * h1)))
        ffn = jnp.dot(h1.astype(bf16), w2_ref[l], preferred_element_type=f32) + b2_ref[l]
        x = ln(x + ffn, ln2g_ref[l], ln2b_ref[l])

        # --- CLS row of this layer -> lane-dense slab (torch.cat order: layers 4,3,2,1) ---
        off = (N_LAYERS - 1 - l) * HIDDEN
        for b in range(B):
            cls_ref[b:b + 1, off:off + HIDDEN] = x[b * S:b * S + 1, :]

    # dropout p=0.0 -> identity; classifier in the same kernel
    logits_ref[...] = (jnp.dot(cls_ref[...].astype(bf16), cls_w_ref[...],
                               preferred_element_type=f32) + cls_b_ref[...])


# ----------------- parameters -----------------

def init_params(key):
    # TODO(synk): AutoModel.from_pretrained loads a checkpoint; weights here are synthetic,
    # deterministically initialized (normal std=0.02, LN gamma=1 / beta=0, biases=0).
    std = 0.02
    keys = iter(jax.random.split(key, 16))
    bf16 = jnp.bfloat16

    def nrm(shape, dtype=jnp.float32):
        return (std * jax.random.normal(next(keys), shape, dtype=jnp.float32)).astype(dtype)

    return {
        "word_emb": nrm((VOCAB, HIDDEN)),
        "pos_emb": nrm((MAX_POS, HIDDEN)),
        "type_emb": nrm((TYPE_VOCAB, HIDDEN)),
        "emb_ln_g": jnp.ones((1, HIDDEN), jnp.float32),
        "emb_ln_b": jnp.zeros((1, HIDDEN), jnp.float32),
        # per-layer weights stacked along a leading N_LAYERS axis (VMEM-resident, bf16 dense)
        "wqkv": nrm((N_LAYERS, HIDDEN, 3 * HIDDEN), bf16),
        "bqkv": jnp.zeros((N_LAYERS, 1, 3 * HIDDEN), jnp.float32),
        "wo": nrm((N_LAYERS, HIDDEN, HIDDEN), bf16),
        "bo": jnp.zeros((N_LAYERS, 1, HIDDEN), jnp.float32),
        "ln1_g": jnp.ones((N_LAYERS, 1, HIDDEN), jnp.float32),
        "ln1_b": jnp.zeros((N_LAYERS, 1, HIDDEN), jnp.float32),
        "w1": nrm((N_LAYERS, HIDDEN, FFN), bf16),
        "b1": jnp.zeros((N_LAYERS, 1, FFN), jnp.float32),
        "w2": nrm((N_LAYERS, FFN, HIDDEN), bf16),
        "b2": jnp.zeros((N_LAYERS, 1, HIDDEN), jnp.float32),
        "ln2_g": jnp.ones((N_LAYERS, 1, HIDDEN), jnp.float32),
        "ln2_b": jnp.zeros((N_LAYERS, 1, HIDDEN), jnp.float32),
        "cls_w": nrm((4 * HIDDEN, N_CLASSES), bf16),
        "cls_b": jnp.zeros((1, N_CLASSES), jnp.float32),
    }


# ----------------- forward pass -----------------

def bert_cls_forward(params, input_ids, token_type_ids, attention_mask):
    B, S = input_ids.shape

    # Only the tiny (B,1,S) float mask leaves the wrapper; gather + mask arithmetic are in-kernel.
    mask3 = attention_mask.astype(jnp.float32).reshape(B, 1, S)

    vmem_args = (mask3,
                 params["word_emb"], params["pos_emb"], params["type_emb"],
                 params["emb_ln_g"], params["emb_ln_b"],
                 params["wqkv"], params["bqkv"], params["wo"], params["bo"],
                 params["ln1_g"], params["ln1_b"], params["w1"], params["b1"],
                 params["w2"], params["b2"], params["ln2_g"], params["ln2_b"],
                 params["cls_w"], params["cls_b"])

    # Full-array blocks everywhere (block dims equal array dims -> (8,128) rule satisfied).
    def full_spec(a):
        nd = a.ndim
        return pl.BlockSpec(a.shape, lambda i, *prefetch, _nd=nd: (0,) * _nd)

    grid_spec = pltpu.PrefetchScalarGridSpec(
        num_scalar_prefetch=2,                      # input_ids, token_type_ids -> SMEM
        grid=(1,),
        in_specs=[full_spec(a) for a in vmem_args],
        out_specs=pl.BlockSpec((B, N_CLASSES), lambda i, *prefetch: (0, 0)),
        scratch_shapes=[pltpu.VMEM((B * S, HIDDEN), jnp.float32),    # gather target
                        pltpu.VMEM((B, 4 * HIDDEN), jnp.float32)],   # lane-dense CLS slab
    )

    logits = pl.pallas_call(
        functools.partial(_bert_cls_kernel, B=B, S=S),
        out_shape=jax.ShapeDtypeStruct((B, N_CLASSES), jnp.float32),
        grid_spec=grid_spec,
        compiler_params=pltpu.CompilerParams(dimension_semantics=("arbitrary",)),
    )(input_ids.astype(jnp.int32), token_type_ids.astype(jnp.int32), *vmem_args)
    return logits


if __name__ == "__main__":
    key = jax.random.PRNGKey(0)
    pkey, ikey = jax.random.split(key)
    params = init_params(pkey)

    B, S = 2, 8
    input_ids = jax.random.randint(ikey, (B, S), 0, VOCAB, dtype=jnp.int32)
    token_type_ids = jnp.zeros((B, S), jnp.int32)
    attention_mask = jnp.ones((B, S), jnp.int32).at[1, 6:].set(0)   # pad tail of example 1

    logits = jax.jit(bert_cls_forward)(params, input_ids, token_type_ids, attention_mask)
    jax.block_until_ready(logits)
    assert logits.shape == (B, N_CLASSES) and logits.dtype == jnp.float32
    assert bool(jnp.all(jnp.isfinite(logits)))
    print("KERNEL_OK")
</pallas_src>

<mosaic_0001>
module attributes {stable_mosaic.version = 11 : i64} {
  func.func @_bert_cls_kernel(%arg0: i32, %arg1: memref<2x8xi32, #tpu.memory_space<smem>>, %arg2: memref<2x8xi32, #tpu.memory_space<smem>>, %arg3: memref<2x1x8xf32, #tpu.memory_space<vmem>>, %arg4: memref<100x32xf32, #tpu.memory_space<vmem>>, %arg5: memref<16x32xf32, #tpu.memory_space<vmem>>, %arg6: memref<2x32xf32, #tpu.memory_space<vmem>>, %arg7: memref<1x32xf32, #tpu.memory_space<vmem>>, %arg8: memref<1x32xf32, #tpu.memory_space<vmem>>, %arg9: memref<4x32x96xbf16, #tpu.memory_space<vmem>>, %arg10: memref<4x1x96xf32, #tpu.memory_space<vmem>>, %arg11: memref<4x32x32xbf16, #tpu.memory_space<vmem>>, %arg12: memref<4x1x32xf32, #tpu.memory_space<vmem>>, %arg13: memref<4x1x32xf32, #tpu.memory_space<vmem>>, %arg14: memref<4x1x32xf32, #tpu.memory_space<vmem>>, %arg15: memref<4x32x64xbf16, #tpu.memory_space<vmem>>, %arg16: memref<4x1x64xf32, #tpu.memory_space<vmem>>, %arg17: memref<4x64x32xbf16, #tpu.memory_space<vmem>>, %arg18: memref<4x1x32xf32, #tpu.memory_space<vmem>>, %arg19: memref<4x1x32xf32, #tpu.memory_space<vmem>>, %arg20: memref<4x1x32xf32, #tpu.memory_space<vmem>>, %arg21: memref<128x3xbf16, #tpu.memory_space<vmem>>, %arg22: memref<1x3xf32, #tpu.memory_space<vmem>>, %arg23: memref<2x3xf32, #tpu.memory_space<vmem>>, %arg24: memref<16x32xf32, #tpu.memory_space<vmem>>, %arg25: memref<2x128xf32, #tpu.memory_space<vmem>>) attributes {dimension_semantics = [#tpu.dimension_semantics<arbitrary>], iteration_bounds = array<i64: 1>, scalar_prefetch = 2 : i64, scratch_operands = 2 : i64, tpu.core_type = #tpu.core_type<tc>, window_params = [{pipeline_mode = #tpu.pipeline_mode<synchronous>, transform_indices = @transform_0, window_bounds = array<i64: 2, 1, 8>}, {pipeline_mode = #tpu.pipeline_mode<synchronous>, transform_indices = @transform_1, window_bounds = array<i64: 100, 32>}, {pipeline_mode = #tpu.pipeline_mode<synchronous>, transform_indices = @transform_2, window_bounds = array<i64: 16, 32>}, {pipeline_mode = #tpu.pipeline_mode<synchronous>, transform_indices = @transform_3, window_bounds = array<i64: 2, 32>}, {pipeline_mode = #tpu.pipeline_mode<synchronous>, transform_indices = @transform_4, window_bounds = array<i64: 1, 32>}, {pipeline_mode = #tpu.pipeline_mode<synchronous>, transform_indices = @transform_5, window_bounds = array<i64: 1, 32>}, {pipeline_mode = #tpu.pipeline_mode<synchronous>, transform_indices = @transform_6, window_bounds = array<i64: 4, 32, 96>}, {pipeline_mode = #tpu.pipeline_mode<synchronous>, transform_indices = @transform_7, window_bounds = array<i64: 4, 1, 96>}, {pipeline_mode = #tpu.pipeline_mode<synchronous>, transform_indices = @transform_8, window_bounds = array<i64: 4, 32, 32>}, {pipeline_mode = #tpu.pipeline_mode<synchronous>, transform_indices = @transform_9, window_bounds = array<i64: 4, 1, 32>}, {pipeline_mode = #tpu.pipeline_mode<synchronous>, transform_indices = @transform_10, window_bounds = array<i64: 4, 1, 32>}, {pipeline_mode = #tpu.pipeline_mode<synchronous>, transform_indices = @transform_11, window_bounds = array<i64: 4, 1, 32>}, {pipeline_mode = #tpu.pipeline_mode<synchronous>, transform_indices = @transform_12, window_bounds = array<i64: 4, 32, 64>}, {pipeline_mode = #tpu.pipeline_mode<synchronous>, transform_indices = @transform_13, window_bounds = array<i64: 4, 1, 64>}, {pipeline_mode = #tpu.pipeline_mode<synchronous>, transform_indices = @transform_14, window_bounds = array<i64: 4, 64, 32>}, {pipeline_mode = #tpu.pipeline_mode<synchronous>, transform_indices = @transform_15, window_bounds = array<i64: 4, 1, 32>}, {pipeline_mode = #tpu.pipeline_mode<synchronous>, transform_indices = @transform_16, window_bounds = array<i64: 4, 1, 32>}, {pipeline_mode = #tpu.pipeline_mode<synchronous>, transform_indices = @transform_17, window_bounds = array<i64: 4, 1, 32>}, {pipeline_mode = #tpu.pipeline_mode<synchronous>, transform_indices = @transform_18, window_bounds = array<i64: 128, 3>}, {pipeline_mode = #tpu.pipeline_mode<synchronous>, transform_indices = @transform_19, window_bounds = array<i64: 1, 3>}, {pipeline_mode = #tpu.pipeline_mode<synchronous>, transform_indices = @transform_20, window_bounds = array<i64: 2, 3>}]} {
    %c0 = arith.constant 0 : index
    %c0_0 = arith.constant 0 : index
    %0 = memref.load %arg1[%c0, %c0_0] : memref<2x8xi32, #tpu.memory_space<smem>>
    %1 = arith.index_cast %0 : i32 to index
    %c0_1 = arith.constant 0 : index
    %2 = vector.load %arg4[%1, %c0_1] : memref<100x32xf32, #tpu.memory_space<vmem>>, vector<1x32xf32>
    %c0_2 = arith.constant 0 : index
    %c0_3 = arith.constant 0 : index
    %3 = vector.load %arg5[%c0_2, %c0_3] : memref<16x32xf32, #tpu.memory_space<vmem>>, vector<1x32xf32>
    %4 = arith.addf %2, %3 : vector<1x32xf32>
    %c0_4 = arith.constant 0 : index
    %c0_5 = arith.constant 0 : index
    %5 = memref.load %arg2[%c0_4, %c0_5] : memref<2x8xi32, #tpu.memory_space<smem>>
    %6 = arith.index_cast %5 : i32 to index
    %c0_6 = arith.constant 0 : index
    %7 = vector.load %arg6[%6, %c0_6] : memref<2x32xf32, #tpu.memory_space<vmem>>, vector<1x32xf32>
    %8 = arith.addf %4, %7 : vector<1x32xf32>
    %c0_7 = arith.constant 0 : index
    %c0_8 = arith.constant 0 : index
    %9 = vector.load %arg24[%c0_7, %c0_8] : memref<16x32xf32, #tpu.memory_space<vmem>>, vector<1x32xf32>
    tpu.vector_store %arg24[%c0_7, %c0_8], %8 {strides = array<i32>} : memref<16x32xf32, #tpu.memory_space<vmem>>, vector<1x32xf32>,
    %c0_9 = arith.constant 0 : index
    %c1 = arith.constant 1 : index
    %10 = memref.load %arg1[%c0_9, %c1] : memref<2x8xi32, #tpu.memory_space<smem>>
    %11 = arith.index_cast %10 : i32 to index
    %c0_10 = arith.constant 0 : index
    %12 = vector.load %arg4[%11, %c0_10] : memref<100x32xf32, #tpu.memory_space<vmem>>, vector<1x32xf32>
    %c1_11 = arith.constant 1 : index
    %c0_12 = arith.constant 0 : index
    %13 = vector.load %arg5[%c1_11, %c0_12] : memref<16x32xf32, #tpu.memory_space<vmem>>, vector<1x32xf32>
    %14 = arith.addf %12, %13 : vector<1x32xf32>
    %c0_13 = arith.constant 0 : index
    %c1_14 = arith.constant 1 : index
    %15 = memref.load %arg2[%c0_13, %c1_14] : memref<2x8xi32, #tpu.memory_space<smem>>
    %16 = arith.index_cast %15 : i32 to index
    %c0_15 = arith.constant 0 : index
    %17 = vector.load %arg6[%16, %c0_15] : memref<2x32xf32, #tpu.memory_space<vmem>>, vector<1x32xf32>
    %18 = arith.addf %14, %17 : vector<1x32xf32>
    %c1_16 = arith.constant 1 : index
    %c0_17 = arith.constant 0 : index
    %19 = vector.load %arg24[%c1_16, %c0_17] : memref<16x32xf32, #tpu.memory_space<vmem>>, vector<1x32xf32>
    tpu.vector_store %arg24[%c1_16, %c0_17], %18 {strides = array<i32>} : memref<16x32xf32, #tpu.memory_space<vmem>>, vector<1x32xf32>,
    %c0_18 = arith.constant 0 : index
    %c2 = arith.constant 2 : index
    %20 = memref.load %arg1[%c0_18, %c2] : memref<2x8xi32, #tpu.memory_space<smem>>
    %21 = arith.index_cast %20 : i32 to index
    %c0_19 = arith.constant 0 : index
    %22 = vector.load %arg4[%21, %c0_19] : memref<100x32xf32, #tpu.memory_space<vmem>>, vector<1x32xf32>
    %c2_20 = arith.constant 2 : index
    %c0_21 = arith.constant 0 : index
    %23 = vector.load %arg5[%c2_20, %c0_21] : memref<16x32xf32, #tpu.memory_space<vmem>>, vector<1x32xf32>
    %24 = arith.addf %22, %23 : vector<1x32xf32>
    %c0_22 = arith.constant 0 : index
    %c2_23 = arith.constant 2 : index
    %25 = memref.load %arg2[%c0_22, %c2_23] : memref<2x8xi32, #tpu.memory_space<smem>>
    %26 = arith.index_cast %25 : i32 to index
    %c0_24 = arith.constant 0 : index
    %27 = vector.load %arg6[%26, %c0_24] : memref<2x32xf32, #tpu.memory_space<vmem>>, vector<1x32xf32>
    %28 = arith.addf %24, %27 : vector<1x32xf32>
    %c2_25 = arith.constant 2 : index
    %c0_26 = arith.constant 0 : index
    %29 = vector.load %arg24[%c2_25, %c0_26] : memref<16x32xf32, #tpu.memory_space<vmem>>, vector<1x32xf32>
    tpu.vector_store %arg24[%c2_25, %c0_26], %28 {strides = array<i32>} : memref<16x32xf32, #tpu.memory_space<vmem>>, vector<1x32xf32>,
    %c0_27 = arith.constant 0 : index
    %c3 = arith.constant 3 : index
    %30 = memref.load %arg1[%c0_27, %c3] : memref<2x8xi32, #tpu.memory_space<smem>>
    %31 = arith.index_cast %30 : i32 to index
    %c0_28 = arith.constant 0 : index
    %32 = vector.load %arg4[%31, %c0_28] : memref<100x32xf32, #tpu.memory_space<vmem>>, vector<1x32xf32>
    %c3_29 = arith.constant 3 : index
    %c0_30 = arith.constant 0 : index
    %33 = vector.load %arg5[%c3_29, %c0_30] : memref<16x32xf32, #tpu.memory_space<vmem>>, vector<1x32xf32>
    %34 = arith.addf %32, %33 : vector<1x32xf32>
    %c0_31 = arith.constant 0 : index
    %c3_32 = arith.constant 3 : index
    %35 = memref.load %arg2[%c0_31, %c3_32] : memref<2x8xi32, #tpu.memory_space<smem>>
    %36 = arith.index_cast %35 : i32 to index
    %c0_33 = arith.constant 0 : index
    %37 = vector.load %arg6[%36, %c0_33] : memref<2x32xf32, #tpu.memory_space<vmem>>, vector<1x32xf32>
    %38 = arith.addf %34, %37 : vector<1x32xf32>
    %c3_34 = arith.constant 3 : index
    %c0_35 = arith.constant 0 : index
    %39 = vector.load %arg24[%c3_34, %c0_35] : memref<16x32xf32, #tpu.memory_space<vmem>>, vector<1x32xf32>
    tpu.vector_store %arg24[%c3_34, %c0_35], %38 {strides = array<i32>} : memref<16x32xf32, #tpu.memory_space<vmem>>, vector<1x32xf32>,
    %c0_36 = arith.constant 0 : index
    %c4 = arith.constant 4 : index
    %40 = memref.load %arg1[%c0_36, %c4] : memref<2x8xi32, #tpu.memory_space<smem>>
    %41 = arith.index_cast %40 : i32 to index
    %c0_37 = arith.constant 0 : index
    %42 = vector.load %arg4[%41, %c0_37] : memref<100x32xf32, #tpu.memory_space<vmem>>, vector<1x32xf32>
    %c4_38 = arith.constant 4 : index
    %c0_39 = arith.constant 0 : index
    %43 = vector.load %arg5[%c4_38, %c0_39] : memref<16x32xf32, #tpu.memory_space<vmem>>, vector<1x32xf32>
    %44 = arith.addf %42, %43 : vector<1x32xf32>
    %c0_40 = arith.constant 0 : index
    %c4_41 = arith.constant 4 : index
    %45 = memref.load %arg2[%c0_40, %c4_41] : memref<2x8xi32, #tpu.memory_space<smem>>
    %46 = arith.index_cast %45 : i32 to index
    %c0_42 = arith.constant 0 : index
    %47 = vector.load %arg6[%46, %c0_42] : memref<2x32xf32, #tpu.memory_space<vmem>>, vector<1x32xf32>
    %48 = arith.addf %44, %47 : vector<1x32xf32>
    %c4_43 = arith.constant 4 : index
    %c0_44 = arith.constant 0 : index
    %49 = vector.load %arg24[%c4_43, %c0_44] : memref<16x32xf32, #tpu.memory_space<vmem>>, vector<1x32xf32>
    tpu.vector_store %arg24[%c4_43, %c0_44], %48 {strides = array<i32>} : memref<16x32xf32, #tpu.memory_space<vmem>>, vector<1x32xf32>,
    %c0_45 = arith.constant 0 : index
    %c5 = arith.constant 5 : index
    %50 = memref.load %arg1[%c0_45, %c5] : memref<2x8xi32, #tpu.memory_space<smem>>
    %51 = arith.index_cast %50 : i32 to index
    %c0_46 = arith.constant 0 : index
    %52 = vector.load %arg4[%51, %c0_46] : memref<100x32xf32, #tpu.memory_space<vmem>>, vector<1x32xf32>
    %c5_47 = arith.constant 5 : index
    %c0_48 = arith.constant 0 : index
    %53 = vector.load %arg5[%c5_47, %c0_48] : memref<16x32xf32, #tpu.memory_space<vmem>>, vector<1x32xf32>
    %54 = arith.addf %52, %53 : vector<1x32xf32>
    %c0_49 = arith.constant 0 : index
    %c5_50 = arith.constant 5 : index
    %55 = memref.load %arg2[%c0_49, %c5_50] : memref<2x8xi32, #tpu.memory_space<smem>>
    %56 = arith.index_cast %55 : i32 to index
    %c0_51 = arith.constant 0 : index
    %57 = vector.load %arg6[%56, %c0_51] : memref<2x32xf32, #tpu.memory_space<vmem>>, vector<1x32xf32>
    %58 = arith.addf %54, %57 : vector<1x32xf32>
    %c5_52 = arith.constant 5 : index
    %c0_53 = arith.constant 0 : index
    %59 = vector.load %arg24[%c5_52, %c0_53] : memref<16x32xf32, #tpu.memory_space<vmem>>, vector<1x32xf32>
    tpu.vector_store %arg24[%c5_52, %c0_53], %58 {strides = array<i32>} : memref<16x32xf32, #tpu.memory_space<vmem>>, vector<1x32xf32>,
    %c0_54 = arith.constant 0 : index
    %c6 = arith.constant 6 : index
    %60 = memref.load %arg1[%c0_54, %c6] : memref<2x8xi32, #tpu.memory_space<smem>>
    %61 = arith.index_cast %60 : i32 to index
    %c0_55 = arith.constant 0 : index
    %62 = vector.load %arg4[%61, %c0_55] : memref<100x32xf32, #tpu.memory_space<vmem>>, vector<1x32xf32>
    %c6_56 = arith.constant 6 : index
    %c0_57 = arith.constant 0 : index
    %63 = vector.load %arg5[%c6_56, %c0_57] : memref<16x32xf32, #tpu.memory_space<vmem>>, vector<1x32xf32>
    %64 = arith.addf %62, %63 : vector<1x32xf32>
    %c0_58 = arith.constant 0 : index
    %c6_59 = arith.constant 6 : index
    %65 = memref.load %arg2[%c0_58, %c6_59] : memref<2x8xi32, #tpu.memory_space<smem>>
    %66 = arith.index_cast %65 : i32 to index
    %c0_60 = arith.constant 0 : index
    %67 = vector.load %arg6[%66, %c0_60] : memref<2x32xf32, #tpu.memory_space<vmem>>, vector<1x32xf32>
    %68 = arith.addf %64, %67 : vector<1x32xf32>
    %c6_61 = arith.constant 6 : index
    %c0_62 = arith.constant 0 : index
    %69 = vector.load %arg24[%c6_61, %c0_62] : memref<16x32xf32, #tpu.memory_space<vmem>>, vector<1x32xf32>
    tpu.vector_store %arg24[%c6_61, %c0_62], %68 {strides = array<i32>} : memref<16x32xf32, #tpu.memory_space<vmem>>, vector<1x32xf32>,
    %c0_63 = arith.constant 0 : index
    %c7 = arith.constant 7 : index
    %70 = memref.load %arg1[%c0_63, %c7] : memref<2x8xi32, #tpu.memory_space<smem>>
    %71 = arith.index_cast %70 : i32 to index
    %c0_64 = arith.constant 0 : index
    %72 = vector.load %arg4[%71, %c0_64] : memref<100x32xf32, #tpu.memory_space<vmem>>, vector<1x32xf32>
    %c7_65 = arith.constant 7 : index
    %c0_66 = arith.constant 0 : index
    %73 = vector.load %arg5[%c7_65, %c0_66] : memref<16x32xf32, #tpu.memory_space<vmem>>, vector<1x32xf32>
    %74 = arith.addf %72, %73 : vector<1x32xf32>
    %c0_67 = arith.constant 0 : index
    %c7_68 = arith.constant 7 : index
    %75 = memref.load %arg2[%c0_67, %c7_68] : memref<2x8xi32, #tpu.memory_space<smem>>
    %76 = arith.index_cast %75 : i32 to index
    %c0_69 = arith.constant 0 : index
    %77 = vector.load %arg6[%76, %c0_69] : memref<2x32xf32, #tpu.memory_space<vmem>>, vector<1x32xf32>
    %78 = arith.addf %74, %77 : vector<1x32xf32>
    %c7_70 = arith.constant 7 : index
    %c0_71 = arith.constant 0 : index
    %79 = vector.load %arg24[%c7_70, %c0_71] : memref<16x32xf32, #tpu.memory_space<vmem>>, vector<1x32xf32>
    tpu.vector_store %arg24[%c7_70, %c0_71], %78 {strides = array<i32>} : memref<16x32xf32, #tpu.memory_space<vmem>>, vector<1x32xf32>,
    %c1_72 = arith.constant 1 : index
    %c0_73 = arith.constant 0 : index
    %80 = memref.load %arg1[%c1_72, %c0_73] : memref<2x8xi32, #tpu.memory_space<smem>>
    %81 = arith.index_cast %80 : i32 to index
    %c0_74 = arith.constant 0 : index
    %82 = vector.load %arg4[%81, %c0_74] : memref<100x32xf32, #tpu.memory_space<vmem>>, vector<1x32xf32>
    %c0_75 = arith.constant 0 : index
    %c0_76 = arith.constant 0 : index
    %83 = vector.load %arg5[%c0_75, %c0_76] : memref<16x32xf32, #tpu.memory_space<vmem>>, vector<1x32xf32>
    %84 = arith.addf %82, %83 : vector<1x32xf32>
    %c1_77 = arith.constant 1 : index
    %c0_78 = arith.constant 0 : index
    %85 = memref.load %arg2[%c1_77, %c0_78] : memref<2x8xi32, #tpu.memory_space<smem>>
    %86 = arith.index_cast %85 : i32 to index
    %c0_79 = arith.constant 0 : index
    %87 = vector.load %arg6[%86, %c0_79] : memref<2x32xf32, #tpu.memory_space<vmem>>, vector<1x32xf32>
    %88 = arith.addf %84, %87 : vector<1x32xf32>
    %c8 = arith.constant 8 : index
    %c0_80 = arith.constant 0 : index
    %89 = vector.load %arg24[%c8, %c0_80] : memref<16x32xf32, #tpu.memory_space<vmem>>, vector<1x32xf32>
    tpu.vector_store %arg24[%c8, %c0_80], %88 {strides = array<i32>} : memref<16x32xf32, #tpu.memory_space<vmem>>, vector<1x32xf32>,
    %c1_81 = arith.constant 1 : index
    %c1_82 = arith.constant 1 : index
    %90 = memref.load %arg1[%c1_81, %c1_82] : memref<2x8xi32, #tpu.memory_space<smem>>
    %91 = arith.index_cast %90 : i32 to index
    %c0_83 = arith.constant 0 : index
    %92 = vector.load %arg4[%91, %c0_83] : memref<100x32xf32, #tpu.memory_space<vmem>>, vector<1x32xf32>
    %c1_84 = arith.constant 1 : index
    %c0_85 = arith.constant 0 : index
    %93 = vector.load %arg5[%c1_84, %c0_85] : memref<16x32xf32, #tpu.memory_space<vmem>>, vector<1x32xf32>
    %94 = arith.addf %92, %93 : vector<1x32xf32>
    %c1_86 = arith.constant 1 : index
    %c1_87 = arith.constant 1 : index
    %95 = memref.load %arg2[%c1_86, %c1_87] : memref<2x8xi32, #tpu.memory_space<smem>>
    %96 = arith.index_cast %95 : i32 to index
    %c0_88 = arith.constant 0 : index
    %97 = vector.load %arg6[%96, %c0_88] : memref<2x32xf32, #tpu.memory_space<vmem>>, vector<1x32xf32>
    %98 = arith.addf %94, %97 : vector<1x32xf32>
    %c9 = arith.constant 9 : index
    %c0_89 = arith.constant 0 : index
    %99 = vector.load %arg24[%c9, %c0_89] : memref<16x32xf32, #tpu.memory_space<vmem>>, vector<1x32xf32>
    tpu.vector_store %arg24[%c9, %c0_89], %98 {strides = array<i32>} : memref<16x32xf32, #tpu.memory_space<vmem>>, vector<1x32xf32>,
    %c1_90 = arith.constant 1 : index
    %c2_91 = arith.constant 2 : index
    %100 = memref.load %arg1[%c1_90, %c2_91] : memref<2x8xi32, #tpu.memory_space<smem>>
    %101 = arith.index_cast %100 : i32 to index
    %c0_92 = arith.constant 0 : index
    %102 = vector.load %arg4[%101, %c0_92] : memref<100x32xf32, #tpu.memory_space<vmem>>, vector<1x32xf32>
    %c2_93 = arith.constant 2 : index
    %c0_94 = arith.constant 0 : index
    %103 = vector.load %arg5[%c2_93, %c0_94] : memref<16x32xf32, #tpu.memory_space<vmem>>, vector<1x32xf32>
    %104 = arith.addf %102, %103 : vector<1x32xf32>
    %c1_95 = arith.constant 1 : index
    %c2_96 = arith.constant 2 : index
    %105 = memref.load %arg2[%c1_95, %c2_96] : memref<2x8xi32, #tpu.memory_space<smem>>
    %106 = arith.index_cast %105 : i32 to index
    %c0_97 = arith.constant 0 : index
    %107 = vector.load %arg6[%106, %c0_97] : memref<2x32xf32, #tpu.memory_space<vmem>>, vector<1x32xf32>
    %108 = arith.addf %104, %107 : vector<1x32xf32>
    %c10 = arith.constant 10 : index
    %c0_98 = arith.constant 0 : index
    %109 = vector.load %arg24[%c10, %c0_98] : memref<16x32xf32, #tpu.memory_space<vmem>>, vector<1x32xf32>
    tpu.vector_store %arg24[%c10, %c0_98], %108 {strides = array<i32>} : memref<16x32xf32, #tpu.memory_space<vmem>>, vector<1x32xf32>,
    %c1_99 = arith.constant 1 : index
    %c3_100 = arith.constant 3 : index
    %110 = memref.load %arg1[%c1_99, %c3_100] : memref<2x8xi32, #tpu.memory_space<smem>>
    %111 = arith.index_cast %110 : i32 to index
    %c0_101 = arith.constant 0 : index
    %112 = vector.load %arg4[%111, %c0_101] : memref<100x32xf32, #tpu.memory_space<vmem>>, vector<1x32xf32>
    %c3_102 = arith.constant 3 : index
    %c0_103 = arith.constant 0 : index
    %113 = vector.load %arg5[%c3_102, %c0_103] : memref<16x32xf32, #tpu.memory_space<vmem>>, vector<1x32xf32>
    %114 = arith.addf %112, %113 : vector<1x32xf32>
    %c1_104 = arith.constant 1 : index
    %c3_105 = arith.constant 3 : index
    %115 = memref.load %arg2[%c1_104, %c3_105] : memref<2x8xi32, #tpu.memory_space<smem>>
    %116 = arith.index_cast %115 : i32 to index
    %c0_106 = arith.constant 0 : index
    %117 = vector.load %arg6[%116, %c0_106] : memref<2x32xf32, #tpu.memory_space<vmem>>, vector<1x32xf32>
    %118 = arith.addf %114, %117 : vector<1x32xf32>
    %c11 = arith.constant 11 : index
    %c0_107 = arith.constant 0 : index
    %119 = vector.load %arg24[%c11, %c0_107] : memref<16x32xf32, #tpu.memory_space<vmem>>, vector<1x32xf32>
    tpu.vector_store %arg24[%c11, %c0_107], %118 {strides = array<i32>} : memref<16x32xf32, #tpu.memory_space<vmem>>, vector<1x32xf32>,
    %c1_108 = arith.constant 1 : index
    %c4_109 = arith.constant 4 : index
    %120 = memref.load %arg1[%c1_108, %c4_109] : memref<2x8xi32, #tpu.memory_space<smem>>
    %121 = arith.index_cast %120 : i32 to index
    %c0_110 = arith.constant 0 : index
    %122 = vector.load %arg4[%121, %c0_110] : memref<100x32xf32, #tpu.memory_space<vmem>>, vector<1x32xf32>
    %c4_111 = arith.constant 4 : index
    %c0_112 = arith.constant 0 : index
    %123 = vector.load %arg5[%c4_111, %c0_112] : memref<16x32xf32, #tpu.memory_space<vmem>>, vector<1x32xf32>
    %124 = arith.addf %122, %123 : vector<1x32xf32>
    %c1_113 = arith.constant 1 : index
    %c4_114 = arith.constant 4 : index
    %125 = memref.load %arg2[%c1_113, %c4_114] : memref<2x8xi32, #tpu.memory_space<smem>>
    %126 = arith.index_cast %125 : i32 to index
    %c0_115 = arith.constant 0 : index
    %127 = vector.load %arg6[%126, %c0_115] : memref<2x32xf32, #tpu.memory_space<vmem>>, vector<1x32xf32>
    %128 = arith.addf %124, %127 : vector<1x32xf32>
    %c12 = arith.constant 12 : index
    %c0_116 = arith.constant 0 : index
    %129 = vector.load %arg24[%c12, %c0_116] : memref<16x32xf32, #tpu.memory_space<vmem>>, vector<1x32xf32>
    tpu.vector_store %arg24[%c12, %c0_116], %128 {strides = array<i32>} : memref<16x32xf32, #tpu.memory_space<vmem>>, vector<1x32xf32>,
    %c1_117 = arith.constant 1 : index
    %c5_118 = arith.constant 5 : index
    %130 = memref.load %arg1[%c1_117, %c5_118] : memref<2x8xi32, #tpu.memory_space<smem>>
    %131 = arith.index_cast %130 : i32 to index
    %c0_119 = arith.constant 0 : index
    %132 = vector.load %arg4[%131, %c0_119] : memref<100x32xf32, #tpu.memory_space<vmem>>, vector<1x32xf32>
    %c5_120 = arith.constant 5 : index
    %c0_121 = arith.constant 0 : index
    %133 = vector.load %arg5[%c5_120, %c0_121] : memref<16x32xf32, #tpu.memory_space<vmem>>, vector<1x32xf32>
    %134 = arith.addf %132, %133 : vector<1x32xf32>
    %c1_122 = arith.constant 1 : index
    %c5_123 = arith.constant 5 : index
    %135 = memref.load %arg2[%c1_122, %c5_123] : memref<2x8xi32, #tpu.memory_space<smem>>
    %136 = arith.index_cast %135 : i32 to index
    %c0_124 = arith.constant 0 : index
    %137 = vector.load %arg6[%136, %c0_124] : memref<2x32xf32, #tpu.memory_space<vmem>>, vector<1x32xf32>
    %138 = arith.addf %134, %137 : vector<1x32xf32>
    %c13 = arith.constant 13 : index
    %c0_125 = arith.constant 0 : index
    %139 = vector.load %arg24[%c13, %c0_125] : memref<16x32xf32, #tpu.memory_space<vmem>>, vector<1x32xf32>
    tpu.vector_store %arg24[%c13, %c0_125], %138 {strides = array<i32>} : memref<16x32xf32, #tpu.memory_space<vmem>>, vector<1x32xf32>,
    %c1_126 = arith.constant 1 : index
    %c6_127 = arith.constant 6 : index
    %140 = memref.load %arg1[%c1_126, %c6_127] : memref<2x8xi32, #tpu.memory_space<smem>>
    %141 = arith.index_cast %140 : i32 to index
    %c0_128 = arith.constant 0 : index
    %142 = vector.load %arg4[%141, %c0_128] : memref<100x32xf32, #tpu.memory_space<vmem>>, vector<1x32xf32>
    %c6_129 = arith.constant 6 : index
    %c0_130 = arith.constant 0 : index
    %143 = vector.load %arg5[%c6_129, %c0_130] : memref<16x32xf32, #tpu.memory_space<vmem>>, vector<1x32xf32>
    %144 = arith.addf %142, %143 : vector<1x32xf32>
    %c1_131 = arith.constant 1 : index
    %c6_132 = arith.constant 6 : index
    %145 = memref.load %arg2[%c1_131, %c6_132] : memref<2x8xi32, #tpu.memory_space<smem>>
    %146 = arith.index_cast %145 : i32 to index
    %c0_133 = arith.constant 0 : index
    %147 = vector.load %arg6[%146, %c0_133] : memref<2x32xf32, #tpu.memory_space<vmem>>, vector<1x32xf32>
    %148 = arith.addf %144, %147 : vector<1x32xf32>
    %c14 = arith.constant 14 : index
    %c0_134 = arith.constant 0 : index
    %149 = vector.load %arg24[%c14, %c0_134] : memref<16x32xf32, #tpu.memory_space<vmem>>, vector<1x32xf32>
    tpu.vector_store %arg24[%c14, %c0_134], %148 {strides = array<i32>} : memref<16x32xf32, #tpu.memory_space<vmem>>, vector<1x32xf32>,
    %c1_135 = arith.constant 1 : index
    %c7_136 = arith.constant 7 : index
    %150 = memref.load %arg1[%c1_135, %c7_136] : memref<2x8xi32, #tpu.memory_space<smem>>
    %151 = arith.index_cast %150 : i32 to index
    %c0_137 = arith.constant 0 : index
    %152 = vector.load %arg4[%151, %c0_137] : memref<100x32xf32, #tpu.memory_space<vmem>>, vector<1x32xf32>
    %c7_138 = arith.constant 7 : index
    %c0_139 = arith.constant 0 : index
    %153 = vector.load %arg5[%c7_138, %c0_139] : memref<16x32xf32, #tpu.memory_space<vmem>>, vector<1x32xf32>
    %154 = arith.addf %152, %153 : vector<1x32xf32>
    %c1_140 = arith.constant 1 : index
    %c7_141 = arith.constant 7 : index
    %155 = memref.load %arg2[%c1_140, %c7_141] : memref<2x8xi32, #tpu.memory_space<smem>>
    %156 = arith.index_cast %155 : i32 to index
    %c0_142 = arith.constant 0 : index
    %157 = vector.load %arg6[%156, %c0_142] : memref<2x32xf32, #tpu.memory_space<vmem>>, vector<1x32xf32>
    %158 = arith.addf %154, %157 : vector<1x32xf32>
    %c15 = arith.constant 15 : index
    %c0_143 = arith.constant 0 : index
    %159 = vector.load %arg24[%c15, %c0_143] : memref<16x32xf32, #tpu.memory_space<vmem>>, vector<1x32xf32>
    tpu.vector_store %arg24[%c15, %c0_143], %158 {strides = array<i32>} : memref<16x32xf32, #tpu.memory_space<vmem>>, vector<1x32xf32>,
    %c0_144 = arith.constant 0 : index
    %c0_145 = arith.constant 0 : index
    %160 = vector.load %arg24[%c0_144, %c0_145] : memref<16x32xf32, #tpu.memory_space<vmem>>, vector<16x32xf32>
    %c0_146 = arith.constant 0 : index
    %c0_147 = arith.constant 0 : index
    %161 = vector.load %arg7[%c0_146, %c0_147] : memref<1x32xf32, #tpu.memory_space<vmem>>, vector<1x32xf32>
    %c0_148 = arith.constant 0 : index
    %c0_149 = arith.constant 0 : index
    %162 = vector.load %arg8[%c0_148, %c0_149] : memref<1x32xf32, #tpu.memory_space<vmem>>, vector<1x32xf32>
    %cst = arith.constant dense<0.000000e+00> : vector<16xf32>
    %163 = vector.multi_reduction <add>, %160, %cst [1] : vector<16x32xf32> to vector<16xf32>
    %164 = vector.shape_cast %163 : vector<16xf32> to vector<16x1xf32>
    %cst_150 = arith.constant 3.200000e+01 : f32
    %165 = vector.broadcast %cst_150 : f32 to vector<16x1xf32>
    %166 = arith.divf %164, %165 : vector<16x1xf32>
    %167 = arith.mulf %160, %160 : vector<16x32xf32>
    %cst_151 = arith.constant dense<0.000000e+00> : vector<16xf32>
    %168 = vector.multi_reduction <add>, %167, %cst_151 [1] : vector<16x32xf32> to vector<16xf32>
    %169 = vector.shape_cast %168 : vector<16xf32> to vector<16x1xf32>
    %cst_152 = arith.constant 3.200000e+01 : f32
    %170 = vector.broadcast %cst_152 : f32 to vector<16x1xf32>
    %171 = arith.divf %169, %170 : vector<16x1xf32>
    %172 = arith.mulf %166, %166 : vector<16x1xf32>
    %173 = arith.subf %171, %172 : vector<16x1xf32>
    %174 = vector.broadcast %166 : vector<16x1xf32> to vector<16x32xf32>
    %175 = arith.subf %160, %174 : vector<16x32xf32>
    %cst_153 = arith.constant 9.99999996E-13 : f32
    %176 = vector.broadcast %cst_153 : f32 to vector<16x1xf32>
    %177 = arith.addf %173, %176 : vector<16x1xf32>
    %178 = math.rsqrt %177 : vector<16x1xf32>
    %179 = vector.broadcast %178 : vector<16x1xf32> to vector<16x32xf32>
    %180 = arith.mulf %175, %179 : vector<16x32xf32>
    %181 = vector.broadcast %161 : vector<1x32xf32> to vector<16x32xf32>
    %182 = arith.mulf %180, %181 : vector<16x32xf32>
    %183 = vector.broadcast %162 : vector<1x32xf32> to vector<16x32xf32>
    %184 = arith.addf %182, %183 : vector<16x32xf32>
    %c0_154 = arith.constant 0 : index
    %c0_155 = arith.constant 0 : index
    %c0_156 = arith.constant 0 : index
    %185 = vector.load %arg3[%c0_154, %c0_155, %c0_156] : memref<2x1x8xf32, #tpu.memory_space<vmem>>, vector<2x1x8xf32>
    %cst_157 = arith.constant 1.000000e+00 : f32
    %186 = vector.broadcast %cst_157 : f32 to vector<2x1x8xf32>
    %187 = arith.subf %186, %185 : vector<2x1x8xf32>
    %cst_158 = arith.constant -1.000000e+09 : f32
    %188 = vector.broadcast %cst_158 : f32 to vector<2x1x8xf32>
    %189 = arith.mulf %187, %188 : vector<2x1x8xf32>
    %190 = arith.truncf %184 : vector<16x32xf32> to vector<16x32xbf16>
    %c0_159 = arith.constant 0 : index
    %c0_160 = arith.constant 0 : index
    %c0_161 = arith.constant 0 : index
    %191 = vector.load %arg9[%c0_159, %c0_160, %c0_161] : memref<4x32x96xbf16, #tpu.memory_space<vmem>>, vector<1x32x96xbf16>
    %192 = vector.shape_cast %191 : vector<1x32x96xbf16> to vector<32x96xbf16>
    %cst_162 = arith.constant dense<0.000000e+00> : vector<16x96xf32>
    %193 = tpu.matmul %190, %192, %cst_162 {dimension_numbers = #tpu.dot_dimension_numbers<[1], [0], [0], [1], [0, 0, 1, 1], [], []>} : vector<16x32xbf16>, vector<32x96xbf16>, vector<16x96xf32> -> vector<16x96xf32>
    %c0_163 = arith.constant 0 : index
    %c0_164 = arith.constant 0 : index
    %c0_165 = arith.constant 0 : index
    %194 = vector.load %arg10[%c0_163, %c0_164, %c0_165] : memref<4x1x96xf32, #tpu.memory_space<vmem>>, vector<1x1x96xf32>
    %195 = vector.shape_cast %194 : vector<1x1x96xf32> to vector<1x96xf32>
    %196 = vector.broadcast %195 : vector<1x96xf32> to vector<16x96xf32>
    %197 = arith.addf %193, %196 : vector<16x96xf32>
    %198 = vector.shape_cast %197 : vector<16x96xf32> to vector<2x8x96xf32>
    %c0_166 = arith.constant 0 : index
    %c0_167 = arith.constant 0 : index
    %c0_168 = arith.constant 0 : index
    %199 = vector.load %arg11[%c0_166, %c0_167, %c0_168] : memref<4x32x32xbf16, #tpu.memory_space<vmem>>, vector<1x32x32xbf16>
    %200 = vector.shape_cast %199 : vector<1x32x32xbf16> to vector<32x32xbf16>
    %c0_169 = arith.constant 0 : index
    %c0_170 = arith.constant 0 : index
    %c0_171 = arith.constant 0 : index
    %201 = vector.load %arg12[%c0_169, %c0_170, %c0_171] : memref<4x1x32xf32, #tpu.memory_space<vmem>>, vector<1x1x32xf32>
    %202 = vector.shape_cast %201 : vector<1x1x32xf32> to vector<1x32xf32>
    %203 = vector.extract_strided_slice %198 {offsets = [0, 0, 0], sizes = [2, 8, 16], strides = [1, 1, 1]} : vector<2x8x96xf32> to vector<2x8x16xf32>
    %204 = vector.extract_strided_slice %198 {offsets = [0, 0, 32], sizes = [2, 8, 16], strides = [1, 1, 1]} : vector<2x8x96xf32> to vector<2x8x16xf32>
    %205 = vector.extract_strided_slice %198 {offsets = [0, 0, 64], sizes = [2, 8, 16], strides = [1, 1, 1]} : vector<2x8x96xf32> to vector<2x8x16xf32>
    "tpu.trace_start"() <{level = 10 : i32, message = "bqd,bkd->bqk"}> : () -> ()
    %cst_172 = arith.constant dense<0.000000e+00> : vector<2x8x8xf32>
    %206 = tpu.matmul %203, %204, %cst_172 {dimension_numbers = #tpu.dot_dimension_numbers<[2], [2], [1], [1], [0, 0, 0, 1, 1, 1], [0], [0]>} : vector<2x8x16xf32>, vector<2x8x16xf32>, vector<2x8x8xf32> -> vector<2x8x8xf32>
    "tpu.trace_stop"() : () -> ()
    %cst_173 = arith.constant 2.500000e-01 : f32
    %207 = vector.broadcast %cst_173 : f32 to vector<2x8x8xf32>
    %208 = arith.mulf %206, %207 : vector<2x8x8xf32>
    %209 = vector.broadcast %189 : vector<2x1x8xf32> to vector<2x8x8xf32>
    %210 = arith.addf %208, %209 : vector<2x8x8xf32>
    %cst_174 = arith.constant dense<0xFF800000> : vector<2x8xf32>
    %211 = vector.multi_reduction <maximumf>, %210, %cst_174 [2] : vector<2x8x8xf32> to vector<2x8xf32>
    %212 = vector.shape_cast %211 : vector<2x8xf32> to vector<2x8x1xf32>
    %213 = vector.broadcast %212 : vector<2x8x1xf32> to vector<2x8x8xf32>
    %214 = arith.subf %210, %213 : vector<2x8x8xf32>
    %215 = math.exp %214 : vector<2x8x8xf32>
    %cst_175 = arith.constant dense<0.000000e+00> : vector<2x8xf32>
    %216 = vector.multi_reduction <add>, %215, %cst_175 [2] : vector<2x8x8xf32> to vector<2x8xf32>
    %217 = vector.shape_cast %216 : vector<2x8xf32> to vector<2x8x1xf32>
    %218 = tpu.reciprocal %217 {approx = true} : vector<2x8x1xf32> -> vector<2x8x1xf32>
    %219 = vector.broadcast %218 : vector<2x8x1xf32> to vector<2x8x8xf32>
    %220 = arith.mulf %215, %219 : vector<2x8x8xf32>
    "tpu.trace_start"() <{level = 10 : i32, message = "bqk,bkd->bqd"}> : () -> ()
    %cst_176 = arith.constant dense<0.000000e+00> : vector<2x8x16xf32>
    %221 = tpu.matmul %220, %205, %cst_176 {dimension_numbers = #tpu.dot_dimension_numbers<[2], [1], [1], [2], [0, 0, 0, 1, 1, 2], [0], [0]>} : vector<2x8x8xf32>, vector<2x8x16xf32>, vector<2x8x16xf32> -> vector<2x8x16xf32>
    "tpu.trace_stop"() : () -> ()
    %222 = vector.shape_cast %221 : vector<2x8x16xf32> to vector<16x16xf32>
    %223 = arith.truncf %222 : vector<16x16xf32> to vector<16x16xbf16>
    %224 = vector.extract_strided_slice %200 {offsets = [0, 0], sizes = [16, 32], strides = [1, 1]} : vector<32x32xbf16> to vector<16x32xbf16>
    %cst_177 = arith.constant dense<0.000000e+00> : vector<16x32xf32>
    %225 = tpu.matmul %223, %224, %cst_177 {dimension_numbers = #tpu.dot_dimension_numbers<[1], [0], [0], [1], [0, 0, 1, 1], [], []>} : vector<16x16xbf16>, vector<16x32xbf16>, vector<16x32xf32> -> vector<16x32xf32>
    %226 = vector.broadcast %202 : vector<1x32xf32> to vector<16x32xf32>
    %227 = arith.addf %226, %225 : vector<16x32xf32>
    %228 = vector.extract_strided_slice %198 {offsets = [0, 0, 16], sizes = [2, 8, 16], strides = [1, 1, 1]} : vector<2x8x96xf32> to vector<2x8x16xf32>
    %229 = vector.extract_strided_slice %198 {offsets = [0, 0, 48], sizes = [2, 8, 16], strides = [1, 1, 1]} : vector<2x8x96xf32> to vector<2x8x16xf32>
    %230 = vector.extract_strided_slice %198 {offsets = [0, 0, 80], sizes = [2, 8, 16], strides = [1, 1, 1]} : vector<2x8x96xf32> to vector<2x8x16xf32>
    "tpu.trace_start"() <{level = 10 : i32, message = "bqd,bkd->bqk"}> : () -> ()
    %cst_178 = arith.constant dense<0.000000e+00> : vector<2x8x8xf32>
    %231 = tpu.matmul %228, %229, %cst_178 {dimension_numbers = #tpu.dot_dimension_numbers<[2], [2], [1], [1], [0, 0, 0, 1, 1, 1], [0], [0]>} : vector<2x8x16xf32>, vector<2x8x16xf32>, vector<2x8x8xf32> -> vector<2x8x8xf32>
    "tpu.trace_stop"() : () -> ()
    %cst_179 = arith.constant 2.500000e-01 : f32
    %232 = vector.broadcast %cst_179 : f32 to vector<2x8x8xf32>
    %233 = arith.mulf %231, %232 : vector<2x8x8xf32>
    %234 = vector.broadcast %189 : vector<2x1x8xf32> to vector<2x8x8xf32>
    %235 = arith.addf %233, %234 : vector<2x8x8xf32>
    %cst_180 = arith.constant dense<0xFF800000> : vector<2x8xf32>
    %236 = vector.multi_reduction <maximumf>, %235, %cst_180 [2] : vector<2x8x8xf32> to vector<2x8xf32>
    %237 = vector.shape_cast %236 : vector<2x8xf32> to vector<2x8x1xf32>
    %238 = vector.broadcast %237 : vector<2x8x1xf32> to vector<2x8x8xf32>
    %239 = arith.subf %235, %238 : vector<2x8x8xf32>
    %240 = math.exp %239 : vector<2x8x8xf32>
    %cst_181 = arith.constant dense<0.000000e+00> : vector<2x8xf32>
    %241 = vector.multi_reduction <add>, %240, %cst_181 [2] : vector<2x8x8xf32> to vector<2x8xf32>
    %242 = vector.shape_cast %241 : vector<2x8xf32> to vector<2x8x1xf32>
    %243 = tpu.reciprocal %242 {approx = true} : vector<2x8x1xf32> -> vector<2x8x1xf32>
    %244 = vector.broadcast %243 : vector<2x8x1xf32> to vector<2x8x8xf32>
    %245 = arith.mulf %240, %244 : vector<2x8x8xf32>
    "tpu.trace_start"() <{level = 10 : i32, message = "bqk,bkd->bqd"}> : () -> ()
    %cst_182 = arith.constant dense<0.000000e+00> : vector<2x8x16xf32>
    %246 = tpu.matmul %245, %230, %cst_182 {dimension_numbers = #tpu.dot_dimension_numbers<[2], [1], [1], [2], [0, 0, 0, 1, 1, 2], [0], [0]>} : vector<2x8x8xf32>, vector<2x8x16xf32>, vector<2x8x16xf32> -> vector<2x8x16xf32>
    "tpu.trace_stop"() : () -> ()
    %247 = vector.shape_cast %246 : vector<2x8x16xf32> to vector<16x16xf32>
    %248 = arith.truncf %247 : vector<16x16xf32> to vector<16x16xbf16>
    %249 = vector.extract_strided_slice %200 {offsets = [16, 0], sizes = [16, 32], strides = [1, 1]} : vector<32x32xbf16> to vector<16x32xbf16>
    %cst_183 = arith.constant dense<0.000000e+00> : vector<16x32xf32>
    %250 = tpu.matmul %248, %249, %cst_183 {dimension_numbers = #tpu.dot_dimension_numbers<[1], [0], [0], [1], [0, 0, 1, 1], [], []>} : vector<16x16xbf16>, vector<16x32xbf16>, vector<16x32xf32> -> vector<16x32xf32>
    %251 = arith.addf %227, %250 : vector<16x32xf32>
    %252 = arith.addf %184, %251 : vector<16x32xf32>
    %c0_184 = arith.constant 0 : index
    %c0_185 = arith.constant 0 : index
    %c0_186 = arith.constant 0 : index
    %253 = vector.load %arg13[%c0_184, %c0_185, %c0_186] : memref<4x1x32xf32, #tpu.memory_space<vmem>>, vector<1x1x32xf32>
    %254 = vector.shape_cast %253 : vector<1x1x32xf32> to vector<1x32xf32>
    %c0_187 = arith.constant 0 : index
    %c0_188 = arith.constant 0 : index
    %c0_189 = arith.constant 0 : index
    %255 = vector.load %arg14[%c0_187, %c0_188, %c0_189] : memref<4x1x32xf32, #tpu.memory_space<vmem>>, vector<1x1x32xf32>
    %256 = vector.shape_cast %255 : vector<1x1x32xf32> to vector<1x32xf32>
    %cst_190 = arith.constant dense<0.000000e+00> : vector<16xf32>
    %257 = vector.multi_reduction <add>, %252, %cst_190 [1] : vector<16x32xf32> to vector<16xf32>
    %258 = vector.shape_cast %257 : vector<16xf32> to vector<16x1xf32>
    %cst_191 = arith.constant 3.200000e+01 : f32
    %259 = vector.broadcast %cst_191 : f32 to vector<16x1xf32>
    %260 = arith.divf %258, %259 : vector<16x1xf32>
    %261 = arith.mulf %252, %252 : vector<16x32xf32>
    %cst_192 = arith.constant dense<0.000000e+00> : vector<16xf32>
    %262 = vector.multi_reduction <add>, %261, %cst_192 [1] : vector<16x32xf32> to vector<16xf32>
    %263 = vector.shape_cast %262 : vector<16xf32> to vector<16x1xf32>
    %cst_193 = arith.constant 3.200000e+01 : f32
    %264 = vector.broadcast %cst_193 : f32 to vector<16x1xf32>
    %265 = arith.divf %263, %264 : vector<16x1xf32>
    %266 = arith.mulf %260, %260 : vector<16x1xf32>
    %267 = arith.subf %265, %266 : vector<16x1xf32>
    %268 = vector.broadcast %260 : vector<16x1xf32> to vector<16x32xf32>
    %269 = arith.subf %252, %268 : vector<16x32xf32>
    %cst_194 = arith.constant 9.99999996E-13 : f32
    %270 = vector.broadcast %cst_194 : f32 to vector<16x1xf32>
    %271 = arith.addf %267, %270 : vector<16x1xf32>
    %272 = math.rsqrt %271 : vector<16x1xf32>
    %273 = vector.broadcast %272 : vector<16x1xf32> to vector<16x32xf32>
    %274 = arith.mulf %269, %273 : vector<16x32xf32>
    %275 = vector.broadcast %254 : vector<1x32xf32> to vector<16x32xf32>
    %276 = arith.mulf %274, %275 : vector<16x32xf32>
    %277 = vector.broadcast %256 : vector<1x32xf32> to vector<16x32xf32>
    %278 = arith.addf %276, %277 : vector<16x32xf32>
    %279 = arith.truncf %278 : vector<16x32xf32> to vector<16x32xbf16>
    %c0_195 = arith.constant 0 : index
    %c0_196 = arith.constant 0 : index
    %c0_197 = arith.constant 0 : index
    %280 = vector.load %arg15[%c0_195, %c0_196, %c0_197] : memref<4x32x64xbf16, #tpu.memory_space<vmem>>, vector<1x32x64xbf16>
    %281 = vector.shape_cast %280 : vector<1x32x64xbf16> to vector<32x64xbf16>
    %cst_198 = arith.constant dense<0.000000e+00> : vector<16x64xf32>
    %282 = tpu.matmul %279, %281, %cst_198 {dimension_numbers = #tpu.dot_dimension_numbers<[1], [0], [0], [1], [0, 0, 1, 1], [], []>} : vector<16x32xbf16>, vector<32x64xbf16>, vector<16x64xf32> -> vector<16x64xf32>
    %c0_199 = arith.constant 0 : index
    %c0_200 = arith.constant 0 : index
    %c0_201 = arith.constant 0 : index
    %283 = vector.load %arg16[%c0_199, %c0_200, %c0_201] : memref<4x1x64xf32, #tpu.memory_space<vmem>>, vector<1x1x64xf32>
    %284 = vector.shape_cast %283 : vector<1x1x64xf32> to vector<1x64xf32>
    %285 = vector.broadcast %284 : vector<1x64xf32> to vector<16x64xf32>
    %286 = arith.addf %282, %285 : vector<16x64xf32>
    %cst_202 = arith.constant 5.000000e-01 : f32
    %287 = vector.broadcast %cst_202 : f32 to vector<16x64xf32>
    %288 = arith.mulf %287, %286 : vector<16x64xf32>
    %cst_203 = arith.constant 4.471500e-02 : f32
    %289 = vector.broadcast %cst_203 : f32 to vector<16x64xf32>
    %290 = arith.mulf %289, %286 : vector<16x64xf32>
    %291 = arith.mulf %290, %286 : vector<16x64xf32>
    %292 = arith.mulf %291, %286 : vector<16x64xf32>
    %293 = arith.addf %286, %292 : vector<16x64xf32>
    %cst_204 = arith.constant 0.797884583 : f32
    %294 = vector.broadcast %cst_204 : f32 to vector<16x64xf32>
    %295 = arith.mulf %294, %293 : vector<16x64xf32>
    %296 = math.tanh %295 : vector<16x64xf32>
    %cst_205 = arith.constant 1.000000e+00 : f32
    %297 = vector.broadcast %cst_205 : f32 to vector<16x64xf32>
    %298 = arith.addf %297, %296 : vector<16x64xf32>
    %299 = arith.mulf %288, %298 : vector<16x64xf32>
    %300 = arith.truncf %299 : vector<16x64xf32> to vector<16x64xbf16>
    %c0_206 = arith.constant 0 : index
    %c0_207 = arith.constant 0 : index
    %c0_208 = arith.constant 0 : index
    %301 = vector.load %arg17[%c0_206, %c0_207, %c0_208] : memref<4x64x32xbf16, #tpu.memory_space<vmem>>, vector<1x64x32xbf16>
    %302 = vector.shape_cast %301 : vector<1x64x32xbf16> to vector<64x32xbf16>
    %cst_209 = arith.constant dense<0.000000e+00> : vector<16x32xf32>
    %303 = tpu.matmul %300, %302, %cst_209 {dimension_numbers = #tpu.dot_dimension_numbers<[1], [0], [0], [1], [0, 0, 1, 1], [], []>} : vector<16x64xbf16>, vector<64x32xbf16>, vector<16x32xf32> -> vector<16x32xf32>
    %c0_210 = arith.constant 0 : index
    %c0_211 = arith.constant 0 : index
    %c0_212 = arith.constant 0 : index
    %304 = vector.load %arg18[%c0_210, %c0_211, %c0_212] : memref<4x1x32xf32, #tpu.memory_space<vmem>>, vector<1x1x32xf32>
    %305 = vector.shape_cast %304 : vector<1x1x32xf32> to vector<1x32xf32>
    %306 = vector.broadcast %305 : vector<1x32xf32> to vector<16x32xf32>
    %307 = arith.addf %303, %306 : vector<16x32xf32>
    %308 = arith.addf %278, %307 : vector<16x32xf32>
    %c0_213 = arith.constant 0 : index
    %c0_214 = arith.constant 0 : index
    %c0_215 = arith.constant 0 : index
    %309 = vector.load %arg19[%c0_213, %c0_214, %c0_215] : memref<4x1x32xf32, #tpu.memory_space<vmem>>, vector<1x1x32xf32>
    %310 = vector.shape_cast %309 : vector<1x1x32xf32> to vector<1x32xf32>
    %c0_216 = arith.constant 0 : index
    %c0_217 = arith.constant 0 : index
    %c0_218 = arith.constant 0 : index
    %311 = vector.load %arg20[%c0_216, %c0_217, %c0_218] : memref<4x1x32xf32, #tpu.memory_space<vmem>>, vector<1x1x32xf32>
    %312 = vector.shape_cast %311 : vector<1x1x32xf32> to vector<1x32xf32>
    %cst_219 = arith.constant dense<0.000000e+00> : vector<16xf32>
    %313 = vector.multi_reduction <add>, %308, %cst_219 [1] : vector<16x32xf32> to vector<16xf32>
    %314 = vector.shape_cast %313 : vector<16xf32> to vector<16x1xf32>
    %cst_220 = arith.constant 3.200000e+01 : f32
    %315 = vector.broadcast %cst_220 : f32 to vector<16x1xf32>
    %316 = arith.divf %314, %315 : vector<16x1xf32>
    %317 = arith.mulf %308, %308 : vector<16x32xf32>
    %cst_221 = arith.constant dense<0.000000e+00> : vector<16xf32>
    %318 = vector.multi_reduction <add>, %317, %cst_221 [1] : vector<16x32xf32> to vector<16xf32>
    %319 = vector.shape_cast %318 : vector<16xf32> to vector<16x1xf32>
    %cst_222 = arith.constant 3.200000e+01 : f32
    %320 = vector.broadcast %cst_222 : f32 to vector<16x1xf32>
    %321 = arith.divf %319, %320 : vector<16x1xf32>
    %322 = arith.mulf %316, %316 : vector<16x1xf32>
    %323 = arith.subf %321, %322 : vector<16x1xf32>
    %324 = vector.broadcast %316 : vector<16x1xf32> to vector<16x32xf32>
    %325 = arith.subf %308, %324 : vector<16x32xf32>
    %cst_223 = arith.constant 9.99999996E-13 : f32
    %326 = vector.broadcast %cst_223 : f32 to vector<16x1xf32>
    %327 = arith.addf %323, %326 : vector<16x1xf32>
    %328 = math.rsqrt %327 : vector<16x1xf32>
    %329 = vector.broadcast %328 : vector<16x1xf32> to vector<16x32xf32>
    %330 = arith.mulf %325, %329 : vector<16x32xf32>
    %331 = vector.broadcast %310 : vector<1x32xf32> to vector<16x32xf32>
    %332 = arith.mulf %330, %331 : vector<16x32xf32>
    %333 = vector.broadcast %312 : vector<1x32xf32> to vector<16x32xf32>
    %334 = arith.addf %332, %333 : vector<16x32xf32>
    %335 = vector.extract_strided_slice %334 {offsets = [0, 0], sizes = [1, 32], strides = [1, 1]} : vector<16x32xf32> to vector<1x32xf32>
    %c0_224 = arith.constant 0 : index
    %c96 = arith.constant 96 : index
    %336 = vector.load %arg25[%c0_224, %c96] : memref<2x128xf32, #tpu.memory_space<vmem>>, vector<1x32xf32>
    tpu.vector_store %arg25[%c0_224, %c96], %335 {strides = array<i32>} : memref<2x128xf32, #tpu.memory_space<vmem>>, vector<1x32xf32>,
    %337 = vector.extract_strided_slice %334 {offsets = [8, 0], sizes = [1, 32], strides = [1, 1]} : vector<16x32xf32> to vector<1x32xf32>
    %c1_225 = arith.constant 1 : index
    %c96_226 = arith.constant 96 : index
    %338 = vector.load %arg25[%c1_225, %c96_226] : memref<2x128xf32, #tpu.memory_space<vmem>>, vector<1x32xf32>
    tpu.vector_store %arg25[%c1_225, %c96_226], %337 {strides = array<i32>} : memref<2x128xf32, #tpu.memory_space<vmem>>, vector<1x32xf32>,
    %339 = arith.truncf %334 : vector<16x32xf32> to vector<16x32xbf16>
    %c1_227 = arith.constant 1 : index
    %c0_228 = arith.constant 0 : index
    %c0_229 = arith.constant 0 : index
    %340 = vector.load %arg9[%c1_227, %c0_228, %c0_229] : memref<4x32x96xbf16, #tpu.memory_space<vmem>>, vector<1x32x96xbf16>
    %341 = vector.shape_cast %340 : vector<1x32x96xbf16> to vector<32x96xbf16>
    %cst_230 = arith.constant dense<0.000000e+00> : vector<16x96xf32>
    %342 = tpu.matmul %339, %341, %cst_230 {dimension_numbers = #tpu.dot_dimension_numbers<[1], [0], [0], [1], [0, 0, 1, 1], [], []>} : vector<16x32xbf16>, vector<32x96xbf16>, vector<16x96xf32> -> vector<16x96xf32>
    %c1_231 = arith.constant 1 : index
    %c0_232 = arith.constant 0 : index
    %c0_233 = arith.constant 0 : index
    %343 = vector.load %arg10[%c1_231, %c0_232, %c0_233] : memref<4x1x96xf32, #tpu.memory_space<vmem>>, vector<1x1x96xf32>
    %344 = vector.shape_cast %343 : vector<1x1x96xf32> to vector<1x96xf32>
    %345 = vector.broadcast %344 : vector<1x96xf32> to vector<16x96xf32>
    %346 = arith.addf %342, %345 : vector<16x96xf32>
    %347 = vector.shape_cast %346 : vector<16x96xf32> to vector<2x8x96xf32>
    %c1_234 = arith.constant 1 : index
    %c0_235 = arith.constant 0 : index
    %c0_236 = arith.constant 0 : index
    %348 = vector.load %arg11[%c1_234, %c0_235, %c0_236] : memref<4x32x32xbf16, #tpu.memory_space<vmem>>, vector<1x32x32xbf16>
    %349 = vector.shape_cast %348 : vector<1x32x32xbf16> to vector<32x32xbf16>
    %c1_237 = arith.constant 1 : index
    %c0_238 = arith.constant 0 : index
    %c0_239 = arith.constant 0 : index
    %350 = vector.load %arg12[%c1_237, %c0_238, %c0_239] : memref<4x1x32xf32, #tpu.memory_space<vmem>>, vector<1x1x32xf32>
    %351 = vector.shape_cast %350 : vector<1x1x32xf32> to vector<1x32xf32>
    %352 = vector.extract_strided_slice %347 {offsets = [0, 0, 0], sizes = [2, 8, 16], strides = [1, 1, 1]} : vector<2x8x96xf32> to vector<2x8x16xf32>
    %353 = vector.extract_strided_slice %347 {offsets = [0, 0, 32], sizes = [2, 8, 16], strides = [1, 1, 1]} : vector<2x8x96xf32> to vector<2x8x16xf32>
    %354 = vector.extract_strided_slice %347 {offsets = [0, 0, 64], sizes = [2, 8, 16], strides = [1, 1, 1]} : vector<2x8x96xf32> to vector<2x8x16xf32>
    "tpu.trace_start"() <{level = 10 : i32, message = "bqd,bkd->bqk"}> : () -> ()
    %cst_240 = arith.constant dense<0.000000e+00> : vector<2x8x8xf32>
    %355 = tpu.matmul %352, %353, %cst_240 {dimension_numbers = #tpu.dot_dimension_numbers<[2], [2], [1], [1], [0, 0, 0, 1, 1, 1], [0], [0]>} : vector<2x8x16xf32>, vector<2x8x16xf32>, vector<2x8x8xf32> -> vector<2x8x8xf32>
    "tpu.trace_stop"() : () -> ()
    %cst_241 = arith.constant 2.500000e-01 : f32
    %356 = vector.broadcast %cst_241 : f32 to vector<2x8x8xf32>
    %357 = arith.mulf %355, %356 : vector<2x8x8xf32>
    %358 = vector.broadcast %189 : vector<2x1x8xf32> to vector<2x8x8xf32>
    %359 = arith.addf %357, %358 : vector<2x8x8xf32>
    %cst_242 = arith.constant dense<0xFF800000> : vector<2x8xf32>
    %360 = vector.multi_reduction <maximumf>, %359, %cst_242 [2] : vector<2x8x8xf32> to vector<2x8xf32>
    %361 = vector.shape_cast %360 : vector<2x8xf32> to vector<2x8x1xf32>
    %362 = vector.broadcast %361 : vector<2x8x1xf32> to vector<2x8x8xf32>
    %363 = arith.subf %359, %362 : vector<2x8x8xf32>
    %364 = math.exp %363 : vector<2x8x8xf32>
    %cst_243 = arith.constant dense<0.000000e+00> : vector<2x8xf32>
    %365 = vector.multi_reduction <add>, %364, %cst_243 [2] : vector<2x8x8xf32> to vector<2x8xf32>
    %366 = vector.shape_cast %365 : vector<2x8xf32> to vector<2x8x1xf32>
    %367 = tpu.reciprocal %366 {approx = true} : vector<2x8x1xf32> -> vector<2x8x1xf32>
    %368 = vector.broadcast %367 : vector<2x8x1xf32> to vector<2x8x8xf32>
    %369 = arith.mulf %364, %368 : vector<2x8x8xf32>
    "tpu.trace_start"() <{level = 10 : i32, message = "bqk,bkd->bqd"}> : () -> ()
    %cst_244 = arith.constant dense<0.000000e+00> : vector<2x8x16xf32>
    %370 = tpu.matmul %369, %354, %cst_244 {dimension_numbers = #tpu.dot_dimension_numbers<[2], [1], [1], [2], [0, 0, 0, 1, 1, 2], [0], [0]>} : vector<2x8x8xf32>, vector<2x8x16xf32>, vector<2x8x16xf32> -> vector<2x8x16xf32>
    "tpu.trace_stop"() : () -> ()
    %371 = vector.shape_cast %370 : vector<2x8x16xf32> to vector<16x16xf32>
    %372 = arith.truncf %371 : vector<16x16xf32> to vector<16x16xbf16>
    %373 = vector.extract_strided_slice %349 {offsets = [0, 0], sizes = [16, 32], strides = [1, 1]} : vector<32x32xbf16> to vector<16x32xbf16>
    %cst_245 = arith.constant dense<0.000000e+00> : vector<16x32xf32>
    %374 = tpu.matmul %372, %373, %cst_245 {dimension_numbers = #tpu.dot_dimension_numbers<[1], [0], [0], [1], [0, 0, 1, 1], [], []>} : vector<16x16xbf16>, vector<16x32xbf16>, vector<16x32xf32> -> vector<16x32xf32>
    %375 = vector.broadcast %351 : vector<1x32xf32> to vector<16x32xf32>
    %376 = arith.addf %375, %374 : vector<16x32xf32>
    %377 = vector.extract_strided_slice %347 {offsets = [0, 0, 16], sizes = [2, 8, 16], strides = [1, 1, 1]} : vector<2x8x96xf32> to vector<2x8x16xf32>
    %378 = vector.extract_strided_slice %347 {offsets = [0, 0, 48], sizes = [2, 8, 16], strides = [1, 1, 1]} : vector<2x8x96xf32> to vector<2x8x16xf32>
    %379 = vector.extract_strided_slice %347 {offsets = [0, 0, 80], sizes = [2, 8, 16], strides = [1, 1, 1]} : vector<2x8x96xf32> to vector<2x8x16xf32>
    "tpu.trace_start"() <{level = 10 : i32, message = "bqd,bkd->bqk"}> : () -> ()
    %cst_246 = arith.constant dense<0.000000e+00> : vector<2x8x8xf32>
    %380 = tpu.matmul %377, %378, %cst_246 {dimension_numbers = #tpu.dot_dimension_numbers<[2], [2], [1], [1], [0, 0, 0, 1, 1, 1], [0], [0]>} : vector<2x8x16xf32>, vector<2x8x16xf32>, vector<2x8x8xf32> -> vector<2x8x8xf32>
    "tpu.trace_stop"() : () -> ()
    %cst_247 = arith.constant 2.500000e-01 : f32
    %381 = vector.broadcast %cst_247 : f32 to vector<2x8x8xf32>
    %382 = arith.mulf %380, %381 : vector<2x8x8xf32>
    %383 = vector.broadcast %189 : vector<2x1x8xf32> to vector<2x8x8xf32>
    %384 = arith.addf %382, %383 : vector<2x8x8xf32>
    %cst_248 = arith.constant dense<0xFF800000> : vector<2x8xf32>
    %385 = vector.multi_reduction <maximumf>, %384, %cst_248 [2] : vector<2x8x8xf32> to vector<2x8xf32>
    %386 = vector.shape_cast %385 : vector<2x8xf32> to vector<2x8x1xf32>
    %387 = vector.broadcast %386 : vector<2x8x1xf32> to vector<2x8x8xf32>
    %388 = arith.subf %384, %387 : vector<2x8x8xf32>
    %389 = math.exp %388 : vector<2x8x8xf32>
    %cst_249 = arith.constant dense<0.000000e+00> : vector<2x8xf32>
    %390 = vector.multi_reduction <add>, %389, %cst_249 [2] : vector<2x8x8xf32> to vector<2x8xf32>
    %391 = vector.shape_cast %390 : vector<2x8xf32> to vector<2x8x1xf32>
    %392 = tpu.reciprocal %391 {approx = true} : vector<2x8x1xf32> -> vector<2x8x1xf32>
    %393 = vector.broadcast %392 : vector<2x8x1xf32> to vector<2x8x8xf32>
    %394 = arith.mulf %389, %393 : vector<2x8x8xf32>
    "tpu.trace_start"() <{level = 10 : i32, message = "bqk,bkd->bqd"}> : () -> ()
    %cst_250 = arith.constant dense<0.000000e+00> : vector<2x8x16xf32>
    %395 = tpu.matmul %394, %379, %cst_250 {dimension_numbers = #tpu.dot_dimension_numbers<[2], [1], [1], [2], [0, 0, 0, 1, 1, 2], [0], [0]>} : vector<2x8x8xf32>, vector<2x8x16xf32>, vector<2x8x16xf32> -> vector<2x8x16xf32>
    "tpu.trace_stop"() : () -> ()
    %396 = vector.shape_cast %395 : vector<2x8x16xf32> to vector<16x16xf32>
    %397 = arith.truncf %396 : vector<16x16xf32> to vector<16x16xbf16>
    %398 = vector.extract_strided_slice %349 {offsets = [16, 0], sizes = [16, 32], strides = [1, 1]} : vector<32x32xbf16> to vector<16x32xbf16>
    %cst_251 = arith.constant dense<0.000000e+00> : vector<16x32xf32>
    %399 = tpu.matmul %397, %398, %cst_251 {dimension_numbers = #tpu.dot_dimension_numbers<[1], [0], [0], [1], [0, 0, 1, 1], [], []>} : vector<16x16xbf16>, vector<16x32xbf16>, vector<16x32xf32> -> vector<16x32xf32>
    %400 = arith.addf %376, %399 : vector<16x32xf32>
    %401 = arith.addf %334, %400 : vector<16x32xf32>
    %c1_252 = arith.constant 1 : index
    %c0_253 = arith.constant 0 : index
    %c0_254 = arith.constant 0 : index
    %402 = vector.load %arg13[%c1_252, %c0_253, %c0_254] : memref<4x1x32xf32, #tpu.memory_space<vmem>>, vector<1x1x32xf32>
    %403 = vector.shape_cast %402 : vector<1x1x32xf32> to vector<1x32xf32>
    %c1_255 = arith.constant 1 : index
    %c0_256 = arith.constant 0 : index
    %c0_257 = arith.constant 0 : index
    %404 = vector.load %arg14[%c1_255, %c0_256, %c0_257] : memref<4x1x32xf32, #tpu.memory_space<vmem>>, vector<1x1x32xf32>
    %405 = vector.shape_cast %404 : vector<1x1x32xf32> to vector<1x32xf32>
    %cst_258 = arith.constant dense<0.000000e+00> : vector<16xf32>
    %406 = vector.multi_reduction <add>, %401, %cst_258 [1] : vector<16x32xf32> to vector<16xf32>
    %407 = vector.shape_cast %406 : vector<16xf32> to vector<16x1xf32>
    %cst_259 = arith.constant 3.200000e+01 : f32
    %408 = vector.broadcast %cst_259 : f32 to vector<16x1xf32>
    %409 = arith.divf %407, %408 : vector<16x1xf32>
    %410 = arith.mulf %401, %401 : vector<16x32xf32>
    %cst_260 = arith.constant dense<0.000000e+00> : vector<16xf32>
    %411 = vector.multi_reduction <add>, %410, %cst_260 [1] : vector<16x32xf32> to vector<16xf32>
    %412 = vector.shape_cast %411 : vector<16xf32> to vector<16x1xf32>
    %cst_261 = arith.constant 3.200000e+01 : f32
    %413 = vector.broadcast %cst_261 : f32 to vector<16x1xf32>
    %414 = arith.divf %412, %413 : vector<16x1xf32>
    %415 = arith.mulf %409, %409 : vector<16x1xf32>
    %416 = arith.subf %414, %415 : vector<16x1xf32>
    %417 = vector.broadcast %409 : vector<16x1xf32> to vector<16x32xf32>
    %418 = arith.subf %401, %417 : vector<16x32xf32>
    %cst_262 = arith.constant 9.99999996E-13 : f32
    %419 = vector.broadcast %cst_262 : f32 to vector<16x1xf32>
    %420 = arith.addf %416, %419 : vector<16x1xf32>
    %421 = math.rsqrt %420 : vector<16x1xf32>
    %422 = vector.broadcast %421 : vector<16x1xf32> to vector<16x32xf32>
    %423 = arith.mulf %418, %422 : vector<16x32xf32>
    %424 = vector.broadcast %403 : vector<1x32xf32> to vector<16x32xf32>
    %425 = arith.mulf %423, %424 : vector<16x32xf32>
    %426 = vector.broadcast %405 : vector<1x32xf32> to vector<16x32xf32>
    %427 = arith.addf %425, %426 : vector<16x32xf32>
    %428 = arith.truncf %427 : vector<16x32xf32> to vector<16x32xbf16>
    %c1_263 = arith.constant 1 : index
    %c0_264 = arith.constant 0 : index
    %c0_265 = arith.constant 0 : index
    %429 = vector.load %arg15[%c1_263, %c0_264, %c0_265] : memref<4x32x64xbf16, #tpu.memory_space<vmem>>, vector<1x32x64xbf16>
    %430 = vector.shape_cast %429 : vector<1x32x64xbf16> to vector<32x64xbf16>
    %cst_266 = arith.constant dense<0.000000e+00> : vector<16x64xf32>
    %431 = tpu.matmul %428, %430, %cst_266 {dimension_numbers = #tpu.dot_dimension_numbers<[1], [0], [0], [1], [0, 0, 1, 1], [], []>} : vector<16x32xbf16>, vector<32x64xbf16>, vector<16x64xf32> -> vector<16x64xf32>
    %c1_267 = arith.constant 1 : index
    %c0_268 = arith.constant 0 : index
    %c0_269 = arith.constant 0 : index
    %432 = vector.load %arg16[%c1_267, %c0_268, %c0_269] : memref<4x1x64xf32, #tpu.memory_space<vmem>>, vector<1x1x64xf32>
    %433 = vector.shape_cast %432 : vector<1x1x64xf32> to vector<1x64xf32>
    %434 = vector.broadcast %433 : vector<1x64xf32> to vector<16x64xf32>
    %435 = arith.addf %431, %434 : vector<16x64xf32>
    %cst_270 = arith.constant 5.000000e-01 : f32
    %436 = vector.broadcast %cst_270 : f32 to vector<16x64xf32>
    %437 = arith.mulf %436, %435 : vector<16x64xf32>
    %cst_271 = arith.constant 4.471500e-02 : f32
    %438 = vector.broadcast %cst_271 : f32 to vector<16x64xf32>
    %439 = arith.mulf %438, %435 : vector<16x64xf32>
    %440 = arith.mulf %439, %435 : vector<16x64xf32>
    %441 = arith.mulf %440, %435 : vector<16x64xf32>
    %442 = arith.addf %435, %441 : vector<16x64xf32>
    %cst_272 = arith.constant 0.797884583 : f32
    %443 = vector.broadcast %cst_272 : f32 to vector<16x64xf32>
    %444 = arith.mulf %443, %442 : vector<16x64xf32>
    %445 = math.tanh %444 : vector<16x64xf32>
    %cst_273 = arith.constant 1.000000e+00 : f32
    %446 = vector.broadcast %cst_273 : f32 to vector<16x64xf32>
    %447 = arith.addf %446, %445 : vector<16x64xf32>
    %448 = arith.mulf %437, %447 : vector<16x64xf32>
    %449 = arith.truncf %448 : vector<16x64xf32> to vector<16x64xbf16>
    %c1_274 = arith.constant 1 : index
    %c0_275 = arith.constant 0 : index
    %c0_276 = arith.constant 0 : index
    %450 = vector.load %arg17[%c1_274, %c0_275, %c0_276] : memref<4x64x32xbf16, #tpu.memory_space<vmem>>, vector<1x64x32xbf16>
    %451 = vector.shape_cast %450 : vector<1x64x32xbf16> to vector<64x32xbf16>
    %cst_277 = arith.constant dense<0.000000e+00> : vector<16x32xf32>
    %452 = tpu.matmul %449, %451, %cst_277 {dimension_numbers = #tpu.dot_dimension_numbers<[1], [0], [0], [1], [0, 0, 1, 1], [], []>} : vector<16x64xbf16>, vector<64x32xbf16>, vector<16x32xf32> -> vector<16x32xf32>
    %c1_278 = arith.constant 1 : index
    %c0_279 = arith.constant 0 : index
    %c0_280 = arith.constant 0 : index
    %453 = vector.load %arg18[%c1_278, %c0_279, %c0_280] : memref<4x1x32xf32, #tpu.memory_space<vmem>>, vector<1x1x32xf32>
    %454 = vector.shape_cast %453 : vector<1x1x32xf32> to vector<1x32xf32>
    %455 = vector.broadcast %454 : vector<1x32xf32> to vector<16x32xf32>
    %456 = arith.addf %452, %455 : vector<16x32xf32>
    %457 = arith.addf %427, %456 : vector<16x32xf32>
    %c1_281 = arith.constant 1 : index
    %c0_282 = arith.constant 0 : index
    %c0_283 = arith.constant 0 : index
    %458 = vector.load %arg19[%c1_281, %c0_282, %c0_283] : memref<4x1x32xf32, #tpu.memory_space<vmem>>, vector<1x1x32xf32>
    %459 = vector.shape_cast %458 : vector<1x1x32xf32> to vector<1x32xf32>
    %c1_284 = arith.constant 1 : index
    %c0_285 = arith.constant 0 : index
    %c0_286 = arith.constant 0 : index
    %460 = vector.load %arg20[%c1_284, %c0_285, %c0_286] : memref<4x1x32xf32, #tpu.memory_space<vmem>>, vector<1x1x32xf32>
    %461 = vector.shape_cast %460 : vector<1x1x32xf32> to vector<1x32xf32>
    %cst_287 = arith.constant dense<0.000000e+00> : vector<16xf32>
    %462 = vector.multi_reduction <add>, %457, %cst_287 [1] : vector<16x32xf32> to vector<16xf32>
    %463 = vector.shape_cast %462 : vector<16xf32> to vector<16x1xf32>
    %cst_288 = arith.constant 3.200000e+01 : f32
    %464 = vector.broadcast %cst_288 : f32 to vector<16x1xf32>
    %465 = arith.divf %463, %464 : vector<16x1xf32>
    %466 = arith.mulf %457, %457 : vector<16x32xf32>
    %cst_289 = arith.constant dense<0.000000e+00> : vector<16xf32>
    %467 = vector.multi_reduction <add>, %466, %cst_289 [1] : vector<16x32xf32> to vector<16xf32>
    %468 = vector.shape_cast %467 : vector<16xf32> to vector<16x1xf32>
    %cst_290 = arith.constant 3.200000e+01 : f32
    %469 = vector.broadcast %cst_290 : f32 to vector<16x1xf32>
    %470 = arith.divf %468, %469 : vector<16x1xf32>
    %471 = arith.mulf %465, %465 : vector<16x1xf32>
    %472 = arith.subf %470, %471 : vector<16x1xf32>
    %473 = vector.broadcast %465 : vector<16x1xf32> to vector<16x32xf32>
    %474 = arith.subf %457, %473 : vector<16x32xf32>
    %cst_291 = arith.constant 9.99999996E-13 : f32
    %475 = vector.broadcast %cst_291 : f32 to vector<16x1xf32>
    %476 = arith.addf %472, %475 : vector<16x1xf32>
    %477 = math.rsqrt %476 : vector<16x1xf32>
    %478 = vector.broadcast %477 : vector<16x1xf32> to vector<16x32xf32>
    %479 = arith.mulf %474, %478 : vector<16x32xf32>
    %480 = vector.broadcast %459 : vector<1x32xf32> to vector<16x32xf32>
    %481 = arith.mulf %479, %480 : vector<16x32xf32>
    %482 = vector.broadcast %461 : vector<1x32xf32> to vector<16x32xf32>
    %483 = arith.addf %481, %482 : vector<16x32xf32>
    %484 = vector.extract_strided_slice %483 {offsets = [0, 0], sizes = [1, 32], strides = [1, 1]} : vector<16x32xf32> to vector<1x32xf32>
    %c0_292 = arith.constant 0 : index
    %c64 = arith.constant 64 : index
    %485 = vector.load %arg25[%c0_292, %c64] : memref<2x128xf32, #tpu.memory_space<vmem>>, vector<1x32xf32>
    tpu.vector_store %arg25[%c0_292, %c64], %484 {strides = array<i32>} : memref<2x128xf32, #tpu.memory_space<vmem>>, vector<1x32xf32>,
    %486 = vector.extract_strided_slice %483 {offsets = [8, 0], sizes = [1, 32], strides = [1, 1]} : vector<16x32xf32> to vector<1x32xf32>
    %c1_293 = arith.constant 1 : index
    %c64_294 = arith.constant 64 : index
    %487 = vector.load %arg25[%c1_293, %c64_294] : memref<2x128xf32, #tpu.memory_space<vmem>>, vector<1x32xf32>
    tpu.vector_store %arg25[%c1_293, %c64_294], %486 {strides = array<i32>} : memref<2x128xf32, #tpu.memory_space<vmem>>, vector<1x32xf32>,
    %488 = arith.truncf %483 : vector<16x32xf32> to vector<16x32xbf16>
    %c2_295 = arith.constant 2 : index
    %c0_296 = arith.constant 0 : index
    %c0_297 = arith.constant 0 : index
    %489 = vector.load %arg9[%c2_295, %c0_296, %c0_297] : memref<4x32x96xbf16, #tpu.memory_space<vmem>>, vector<1x32x96xbf16>
    %490 = vector.shape_cast %489 : vector<1x32x96xbf16> to vector<32x96xbf16>
    %cst_298 = arith.constant dense<0.000000e+00> : vector<16x96xf32>
    %491 = tpu.matmul %488, %490, %cst_298 {dimension_numbers = #tpu.dot_dimension_numbers<[1], [0], [0], [1], [0, 0, 1, 1], [], []>} : vector<16x32xbf16>, vector<32x96xbf16>, vector<16x96xf32> -> vector<16x96xf32>
    %c2_299 = arith.constant 2 : index
    %c0_300 = arith.constant 0 : index
    %c0_301 = arith.constant 0 : index
    %492 = vector.load %arg10[%c2_299, %c0_300, %c0_301] : memref<4x1x96xf32, #tpu.memory_space<vmem>>, vector<1x1x96xf32>
    %493 = vector.shape_cast %492 : vector<1x1x96xf32> to vector<1x96xf32>
    %494 = vector.broadcast %493 : vector<1x96xf32> to vector<16x96xf32>
    %495 = arith.addf %491, %494 : vector<16x96xf32>
    %496 = vector.shape_cast %495 : vector<16x96xf32> to vector<2x8x96xf32>
    %c2_302 = arith.constant 2 : index
    %c0_303 = arith.constant 0 : index
    %c0_304 = arith.constant 0 : index
    %497 = vector.load %arg11[%c2_302, %c0_303, %c0_304] : memref<4x32x32xbf16, #tpu.memory_space<vmem>>, vector<1x32x32xbf16>
    %498 = vector.shape_cast %497 : vector<1x32x32xbf16> to vector<32x32xbf16>
    %c2_305 = arith.constant 2 : index
    %c0_306 = arith.constant 0 : index
    %c0_307 = arith.constant 0 : index
    %499 = vector.load %arg12[%c2_305, %c0_306, %c0_307] : memref<4x1x32xf32, #tpu.memory_space<vmem>>, vector<1x1x32xf32>
    %500 = vector.shape_cast %499 : vector<1x1x32xf32> to vector<1x32xf32>
    %501 = vector.extract_strided_slice %496 {offsets = [0, 0, 0], sizes = [2, 8, 16], strides = [1, 1, 1]} : vector<2x8x96xf32> to vector<2x8x16xf32>
    %502 = vector.extract_strided_slice %496 {offsets = [0, 0, 32], sizes = [2, 8, 16], strides = [1, 1, 1]} : vector<2x8x96xf32> to vector<2x8x16xf32>
    %503 = vector.extract_strided_slice %496 {offsets = [0, 0, 64], sizes = [2, 8, 16], strides = [1, 1, 1]} : vector<2x8x96xf32> to vector<2x8x16xf32>
    "tpu.trace_start"() <{level = 10 : i32, message = "bqd,bkd->bqk"}> : () -> ()
    %cst_308 = arith.constant dense<0.000000e+00> : vector<2x8x8xf32>
    %504 = tpu.matmul %501, %502, %cst_308 {dimension_numbers = #tpu.dot_dimension_numbers<[2], [2], [1], [1], [0, 0, 0, 1, 1, 1], [0], [0]>} : vector<2x8x16xf32>, vector<2x8x16xf32>, vector<2x8x8xf32> -> vector<2x8x8xf32>
    "tpu.trace_stop"() : () -> ()
    %cst_309 = arith.constant 2.500000e-01 : f32
    %505 = vector.broadcast %cst_309 : f32 to vector<2x8x8xf32>
    %506 = arith.mulf %504, %505 : vector<2x8x8xf32>
    %507 = vector.broadcast %189 : vector<2x1x8xf32> to vector<2x8x8xf32>
    %508 = arith.addf %506, %507 : vector<2x8x8xf32>
    %cst_310 = arith.constant dense<0xFF800000> : vector<2x8xf32>
    %509 = vector.multi_reduction <maximumf>, %508, %cst_310 [2] : vector<2x8x8xf32> to vector<2x8xf32>
    %510 = vector.shape_cast %509 : vector<2x8xf32> to vector<2x8x1xf32>
    %511 = vector.broadcast %510 : vector<2x8x1xf32> to vector<2x8x8xf32>
    %512 = arith.subf %508, %511 : vector<2x8x8xf32>
    %513 = math.exp %512 : vector<2x8x8xf32>
    %cst_311 = arith.constant dense<0.000000e+00> : vector<2x8xf32>
    %514 = vector.multi_reduction <add>, %513, %cst_311 [2] : vector<2x8x8xf32> to vector<2x8xf32>
    %515 = vector.shape_cast %514 : vector<2x8xf32> to vector<2x8x1xf32>
    %516 = tpu.reciprocal %515 {approx = true} : vector<2x8x1xf32> -> vector<2x8x1xf32>
    %517 = vector.broadcast %516 : vector<2x8x1xf32> to vector<2x8x8xf32>
    %518 = arith.mulf %513, %517 : vector<2x8x8xf32>
    "tpu.trace_start"() <{level = 10 : i32, message = "bqk,bkd->bqd"}> : () -> ()
    %cst_312 = arith.constant dense<0.000000e+00> : vector<2x8x16xf32>
    %519 = tpu.matmul %518, %503, %cst_312 {dimension_numbers = #tpu.dot_dimension_numbers<[2], [1], [1], [2], [0, 0, 0, 1, 1, 2], [0], [0]>} : vector<2x8x8xf32>, vector<2x8x16xf32>, vector<2x8x16xf32> -> vector<2x8x16xf32>
    "tpu.trace_stop"() : () -> ()
    %520 = vector.shape_cast %519 : vector<2x8x16xf32> to vector<16x16xf32>
    %521 = arith.truncf %520 : vector<16x16xf32> to vector<16x16xbf16>
    %522 = vector.extract_strided_slice %498 {offsets = [0, 0], sizes = [16, 32], strides = [1, 1]} : vector<32x32xbf16> to vector<16x32xbf16>
    %cst_313 = arith.constant dense<0.000000e+00> : vector<16x32xf32>
    %523 = tpu.matmul %521, %522, %cst_313 {dimension_numbers = #tpu.dot_dimension_numbers<[1], [0], [0], [1], [0, 0, 1, 1], [], []>} : vector<16x16xbf16>, vector<16x32xbf16>, vector<16x32xf32> -> vector<16x32xf32>
    %524 = vector.broadcast %500 : vector<1x32xf32> to vector<16x32xf32>
    %525 = arith.addf %524, %523 : vector<16x32xf32>
    %526 = vector.extract_strided_slice %496 {offsets = [0, 0, 16], sizes = [2, 8, 16], strides = [1, 1, 1]} : vector<2x8x96xf32> to vector<2x8x16xf32>
    %527 = vector.extract_strided_slice %496 {offsets = [0, 0, 48], sizes = [2, 8, 16], strides = [1, 1, 1]} : vector<2x8x96xf32> to vector<2x8x16xf32>
    %528 = vector.extract_strided_slice %496 {offsets = [0, 0, 80], sizes = [2, 8, 16], strides = [1, 1, 1]} : vector<2x8x96xf32> to vector<2x8x16xf32>
    "tpu.trace_start"() <{level = 10 : i32, message = "bqd,bkd->bqk"}> : () -> ()
    %cst_314 = arith.constant dense<0.000000e+00> : vector<2x8x8xf32>
    %529 = tpu.matmul %526, %527, %cst_314 {dimension_numbers = #tpu.dot_dimension_numbers<[2], [2], [1], [1], [0, 0, 0, 1, 1, 1], [0], [0]>} : vector<2x8x16xf32>, vector<2x8x16xf32>, vector<2x8x8xf32> -> vector<2x8x8xf32>
    "tpu.trace_stop"() : () -> ()
    %cst_315 = arith.constant 2.500000e-01 : f32
    %530 = vector.broadcast %cst_315 : f32 to vector<2x8x8xf32>
    %531 = arith.mulf %529, %530 : vector<2x8x8xf32>
    %532 = vector.broadcast %189 : vector<2x1x8xf32> to vector<2x8x8xf32>
    %533 = arith.addf %531, %532 : vector<2x8x8xf32>
    %cst_316 = arith.constant dense<0xFF800000> : vector<2x8xf32>
    %534 = vector.multi_reduction <maximumf>, %533, %cst_316 [2] : vector<2x8x8xf32> to vector<2x8xf32>
    %535 = vector.shape_cast %534 : vector<2x8xf32> to vector<2x8x1xf32>
    %536 = vector.broadcast %535 : vector<2x8x1xf32> to vector<2x8x8xf32>
    %537 = arith.subf %533, %536 : vector<2x8x8xf32>
    %538 = math.exp %537 : vector<2x8x8xf32>
    %cst_317 = arith.constant dense<0.000000e+00> : vector<2x8xf32>
    %539 = vector.multi_reduction <add>, %538, %cst_317 [2] : vector<2x8x8xf32> to vector<2x8xf32>
    %540 = vector.shape_cast %539 : vector<2x8xf32> to vector<2x8x1xf32>
    %541 = tpu.reciprocal %540 {approx = true} : vector<2x8x1xf32> -> vector<2x8x1xf32>
    %542 = vector.broadcast %541 : vector<2x8x1xf32> to vector<2x8x8xf32>
    %543 = arith.mulf %538, %542 : vector<2x8x8xf32>
    "tpu.trace_start"() <{level = 10 : i32, message = "bqk,bkd->bqd"}> : () -> ()
    %cst_318 = arith.constant dense<0.000000e+00> : vector<2x8x16xf32>
    %544 = tpu.matmul %543, %528, %cst_318 {dimension_numbers = #tpu.dot_dimension_numbers<[2], [1], [1], [2], [0, 0, 0, 1, 1, 2], [0], [0]>} : vector<2x8x8xf32>, vector<2x8x16xf32>, vector<2x8x16xf32> -> vector<2x8x16xf32>
    "tpu.trace_stop"() : () -> ()
    %545 = vector.shape_cast %544 : vector<2x8x16xf32> to vector<16x16xf32>
    %546 = arith.truncf %545 : vector<16x16xf32> to vector<16x16xbf16>
    %547 = vector.extract_strided_slice %498 {offsets = [16, 0], sizes = [16, 32], strides = [1, 1]} : vector<32x32xbf16> to vector<16x32xbf16>
    %cst_319 = arith.constant dense<0.000000e+00> : vector<16x32xf32>
    %548 = tpu.matmul %546, %547, %cst_319 {dimension_numbers = #tpu.dot_dimension_numbers<[1], [0], [0], [1], [0, 0, 1, 1], [], []>} : vector<16x16xbf16>, vector<16x32xbf16>, vector<16x32xf32> -> vector<16x32xf32>
    %549 = arith.addf %525, %548 : vector<16x32xf32>
    %550 = arith.addf %483, %549 : vector<16x32xf32>
    %c2_320 = arith.constant 2 : index
    %c0_321 = arith.constant 0 : index
    %c0_322 = arith.constant 0 : index
    %551 = vector.load %arg13[%c2_320, %c0_321, %c0_322] : memref<4x1x32xf32, #tpu.memory_space<vmem>>, vector<1x1x32xf32>
    %552 = vector.shape_cast %551 : vector<1x1x32xf32> to vector<1x32xf32>
    %c2_323 = arith.constant 2 : index
    %c0_324 = arith.constant 0 : index
    %c0_325 = arith.constant 0 : index
    %553 = vector.load %arg14[%c2_323, %c0_324, %c0_325] : memref<4x1x32xf32, #tpu.memory_space<vmem>>, vector<1x1x32xf32>
    %554 = vector.shape_cast %553 : vector<1x1x32xf32> to vector<1x32xf32>
    %cst_326 = arith.constant dense<0.000000e+00> : vector<16xf32>
    %555 = vector.multi_reduction <add>, %550, %cst_326 [1] : vector<16x32xf32> to vector<16xf32>
    %556 = vector.shape_cast %555 : vector<16xf32> to vector<16x1xf32>
    %cst_327 = arith.constant 3.200000e+01 : f32
    %557 = vector.broadcast %cst_327 : f32 to vector<16x1xf32>
    %558 = arith.divf %556, %557 : vector<16x1xf32>
    %559 = arith.mulf %550, %550 : vector<16x32xf32>
    %cst_328 = arith.constant dense<0.000000e+00> : vector<16xf32>
    %560 = vector.multi_reduction <add>, %559, %cst_328 [1] : vector<16x32xf32> to vector<16xf32>
    %561 = vector.shape_cast %560 : vector<16xf32> to vector<16x1xf32>
    %cst_329 = arith.constant 3.200000e+01 : f32
    %562 = vector.broadcast %cst_329 : f32 to vector<16x1xf32>
    %563 = arith.divf %561, %562 : vector<16x1xf32>
    %564 = arith.mulf %558, %558 : vector<16x1xf32>
    %565 = arith.subf %563, %564 : vector<16x1xf32>
    %566 = vector.broadcast %558 : vector<16x1xf32> to vector<16x32xf32>
    %567 = arith.subf %550, %566 : vector<16x32xf32>
    %cst_330 = arith.constant 9.99999996E-13 : f32
    %568 = vector.broadcast %cst_330 : f32 to vector<16x1xf32>
    %569 = arith.addf %565, %568 : vector<16x1xf32>
    %570 = math.rsqrt %569 : vector<16x1xf32>
    %571 = vector.broadcast %570 : vector<16x1xf32> to vector<16x32xf32>
    %572 = arith.mulf %567, %571 : vector<16x32xf32>
    %573 = vector.broadcast %552 : vector<1x32xf32> to vector<16x32xf32>
    %574 = arith.mulf %572, %573 : vector<16x32xf32>
    %575 = vector.broadcast %554 : vector<1x32xf32> to vector<16x32xf32>
    %576 = arith.addf %574, %575 : vector<16x32xf32>
    %577 = arith.truncf %576 : vector<16x32xf32> to vector<16x32xbf16>
    %c2_331 = arith.constant 2 : index
    %c0_332 = arith.constant 0 : index
    %c0_333 = arith.constant 0 : index
    %578 = vector.load %arg15[%c2_331, %c0_332, %c0_333] : memref<4x32x64xbf16, #tpu.memory_space<vmem>>, vector<1x32x64xbf16>
    %579 = vector.shape_cast %578 : vector<1x32x64xbf16> to vector<32x64xbf16>
    %cst_334 = arith.constant dense<0.000000e+00> : vector<16x64xf32>
    %580 = tpu.matmul %577, %579, %cst_334 {dimension_numbers = #tpu.dot_dimension_numbers<[1], [0], [0], [1], [0, 0, 1, 1], [], []>} : vector<16x32xbf16>, vector<32x64xbf16>, vector<16x64xf32> -> vector<16x64xf32>
    %c2_335 = arith.constant 2 : index
    %c0_336 = arith.constant 0 : index
    %c0_337 = arith.constant 0 : index
    %581 = vector.load %arg16[%c2_335, %c0_336, %c0_337] : memref<4x1x64xf32, #tpu.memory_space<vmem>>, vector<1x1x64xf32>
    %582 = vector.shape_cast %581 : vector<1x1x64xf32> to vector<1x64xf32>
    %583 = vector.broadcast %582 : vector<1x64xf32> to vector<16x64xf32>
    %584 = arith.addf %580, %583 : vector<16x64xf32>
    %cst_338 = arith.constant 5.000000e-01 : f32
    %585 = vector.broadcast %cst_338 : f32 to vector<16x64xf32>
    %586 = arith.mulf %585, %584 : vector<16x64xf32>
    %cst_339 = arith.constant 4.471500e-02 : f32
    %587 = vector.broadcast %cst_339 : f32 to vector<16x64xf32>
    %588 = arith.mulf %587, %584 : vector<16x64xf32>
    %589 = arith.mulf %588, %584 : vector<16x64xf32>
    %590 = arith.mulf %589, %584 : vector<16x64xf32>
    %591 = arith.addf %584, %590 : vector<16x64xf32>
    %cst_340 = arith.constant 0.797884583 : f32
    %592 = vector.broadcast %cst_340 : f32 to vector<16x64xf32>
    %593 = arith.mulf %592, %591 : vector<16x64xf32>
    %594 = math.tanh %593 : vector<16x64xf32>
    %cst_341 = arith.constant 1.000000e+00 : f32
    %595 = vector.broadcast %cst_341 : f32 to vector<16x64xf32>
    %596 = arith.addf %595, %594 : vector<16x64xf32>
    %597 = arith.mulf %586, %596 : vector<16x64xf32>
    %598 = arith.truncf %597 : vector<16x64xf32> to vector<16x64xbf16>
    %c2_342 = arith.constant 2 : index
    %c0_343 = arith.constant 0 : index
    %c0_344 = arith.constant 0 : index
    %599 = vector.load %arg17[%c2_342, %c0_343, %c0_344] : memref<4x64x32xbf16, #tpu.memory_space<vmem>>, vector<1x64x32xbf16>
    %600 = vector.shape_cast %599 : vector<1x64x32xbf16> to vector<64x32xbf16>
    %cst_345 = arith.constant dense<0.000000e+00> : vector<16x32xf32>
    %601 = tpu.matmul %598, %600, %cst_345 {dimension_numbers = #tpu.dot_dimension_numbers<[1], [0], [0], [1], [0, 0, 1, 1], [], []>} : vector<16x64xbf16>, vector<64x32xbf16>, vector<16x32xf32> -> vector<16x32xf32>
    %c2_346 = arith.constant 2 : index
    %c0_347 = arith.constant 0 : index
    %c0_348 = arith.constant 0 : index
    %602 = vector.load %arg18[%c2_346, %c0_347, %c0_348] : memref<4x1x32xf32, #tpu.memory_space<vmem>>, vector<1x1x32xf32>
    %603 = vector.shape_cast %602 : vector<1x1x32xf32> to vector<1x32xf32>
    %604 = vector.broadcast %603 : vector<1x32xf32> to vector<16x32xf32>
    %605 = arith.addf %601, %604 : vector<16x32xf32>
    %606 = arith.addf %576, %605 : vector<16x32xf32>
    %c2_349 = arith.constant 2 : index
    %c0_350 = arith.constant 0 : index
    %c0_351 = arith.constant 0 : index
    %607 = vector.load %arg19[%c2_349, %c0_350, %c0_351] : memref<4x1x32xf32, #tpu.memory_space<vmem>>, vector<1x1x32xf32>
    %608 = vector.shape_cast %607 : vector<1x1x32xf32> to vector<1x32xf32>
    %c2_352 = arith.constant 2 : index
    %c0_353 = arith.constant 0 : index
    %c0_354 = arith.constant 0 : index
    %609 = vector.load %arg20[%c2_352, %c0_353, %c0_354] : memref<4x1x32xf32, #tpu.memory_space<vmem>>, vector<1x1x32xf32>
    %610 = vector.shape_cast %609 : vector<1x1x32xf32> to vector<1x32xf32>
    %cst_355 = arith.constant dense<0.000000e+00> : vector<16xf32>
    %611 = vector.multi_reduction <add>, %606, %cst_355 [1] : vector<16x32xf32> to vector<16xf32>
    %612 = vector.shape_cast %611 : vector<16xf32> to vector<16x1xf32>
    %cst_356 = arith.constant 3.200000e+01 : f32
    %613 = vector.broadcast %cst_356 : f32 to vector<16x1xf32>
    %614 = arith.divf %612, %613 : vector<16x1xf32>
    %615 = arith.mulf %606, %606 : vector<16x32xf32>
    %cst_357 = arith.constant dense<0.000000e+00> : vector<16xf32>
    %616 = vector.multi_reduction <add>, %615, %cst_357 [1] : vector<16x32xf32> to vector<16xf32>
    %617 = vector.shape_cast %616 : vector<16xf32> to vector<16x1xf32>
    %cst_358 = arith.constant 3.200000e+01 : f32
    %618 = vector.broadcast %cst_358 : f32 to vector<16x1xf32>
    %619 = arith.divf %617, %618 : vector<16x1xf32>
    %620 = arith.mulf %614, %614 : vector<16x1xf32>
    %621 = arith.subf %619, %620 : vector<16x1xf32>
    %622 = vector.broadcast %614 : vector<16x1xf32> to vector<16x32xf32>
    %623 = arith.subf %606, %622 : vector<16x32xf32>
    %cst_359 = arith.constant 9.99999996E-13 : f32
    %624 = vector.broadcast %cst_359 : f32 to vector<16x1xf32>
    %625 = arith.addf %621, %624 : vector<16x1xf32>
    %626 = math.rsqrt %625 : vector<16x1xf32>
    %627 = vector.broadcast %626 : vector<16x1xf32> to vector<16x32xf32>
    %628 = arith.mulf %623, %627 : vector<16x32xf32>
    %629 = vector.broadcast %608 : vector<1x32xf32> to vector<16x32xf32>
    %630 = arith.mulf %628, %629 : vector<16x32xf32>
    %631 = vector.broadcast %610 : vector<1x32xf32> to vector<16x32xf32>
    %632 = arith.addf %630, %631 : vector<16x32xf32>
    %633 = vector.extract_strided_slice %632 {offsets = [0, 0], sizes = [1, 32], strides = [1, 1]} : vector<16x32xf32> to vector<1x32xf32>
    %c0_360 = arith.constant 0 : index
    %c32 = arith.constant 32 : index
    %634 = vector.load %arg25[%c0_360, %c32] : memref<2x128xf32, #tpu.memory_space<vmem>>, vector<1x32xf32>
    tpu.vector_store %arg25[%c0_360, %c32], %633 {strides = array<i32>} : memref<2x128xf32, #tpu.memory_space<vmem>>, vector<1x32xf32>,
    %635 = vector.extract_strided_slice %632 {offsets = [8, 0], sizes = [1, 32], strides = [1, 1]} : vector<16x32xf32> to vector<1x32xf32>
    %c1_361 = arith.constant 1 : index
    %c32_362 = arith.constant 32 : index
    %636 = vector.load %arg25[%c1_361, %c32_362] : memref<2x128xf32, #tpu.memory_space<vmem>>, vector<1x32xf32>
    tpu.vector_store %arg25[%c1_361, %c32_362], %635 {strides = array<i32>} : memref<2x128xf32, #tpu.memory_space<vmem>>, vector<1x32xf32>,
    %637 = arith.truncf %632 : vector<16x32xf32> to vector<16x32xbf16>
    %c3_363 = arith.constant 3 : index
    %c0_364 = arith.constant 0 : index
    %c0_365 = arith.constant 0 : index
    %638 = vector.load %arg9[%c3_363, %c0_364, %c0_365] : memref<4x32x96xbf16, #tpu.memory_space<vmem>>, vector<1x32x96xbf16>
    %639 = vector.shape_cast %638 : vector<1x32x96xbf16> to vector<32x96xbf16>
    %cst_366 = arith.constant dense<0.000000e+00> : vector<16x96xf32>
    %640 = tpu.matmul %637, %639, %cst_366 {dimension_numbers = #tpu.dot_dimension_numbers<[1], [0], [0], [1], [0, 0, 1, 1], [], []>} : vector<16x32xbf16>, vector<32x96xbf16>, vector<16x96xf32> -> vector<16x96xf32>
    %c3_367 = arith.constant 3 : index
    %c0_368 = arith.constant 0 : index
    %c0_369 = arith.constant 0 : index
    %641 = vector.load %arg10[%c3_367, %c0_368, %c0_369] : memref<4x1x96xf32, #tpu.memory_space<vmem>>, vector<1x1x96xf32>
    %642 = vector.shape_cast %641 : vector<1x1x96xf32> to vector<1x96xf32>
    %643 = vector.broadcast %642 : vector<1x96xf32> to vector<16x96xf32>
    %644 = arith.addf %640, %643 : vector<16x96xf32>
    %645 = vector.shape_cast %644 : vector<16x96xf32> to vector<2x8x96xf32>
    %c3_370 = arith.constant 3 : index
    %c0_371 = arith.constant 0 : index
    %c0_372 = arith.constant 0 : index
    %646 = vector.load %arg11[%c3_370, %c0_371, %c0_372] : memref<4x32x32xbf16, #tpu.memory_space<vmem>>, vector<1x32x32xbf16>
    %647 = vector.shape_cast %646 : vector<1x32x32xbf16> to vector<32x32xbf16>
    %c3_373 = arith.constant 3 : index
    %c0_374 = arith.constant 0 : index
    %c0_375 = arith.constant 0 : index
    %648 = vector.load %arg12[%c3_373, %c0_374, %c0_375] : memref<4x1x32xf32, #tpu.memory_space<vmem>>, vector<1x1x32xf32>
    %649 = vector.shape_cast %648 : vector<1x1x32xf32> to vector<1x32xf32>
    %650 = vector.extract_strided_slice %645 {offsets = [0, 0, 0], sizes = [2, 8, 16], strides = [1, 1, 1]} : vector<2x8x96xf32> to vector<2x8x16xf32>
    %651 = vector.extract_strided_slice %645 {offsets = [0, 0, 32], sizes = [2, 8, 16], strides = [1, 1, 1]} : vector<2x8x96xf32> to vector<2x8x16xf32>
    %652 = vector.extract_strided_slice %645 {offsets = [0, 0, 64], sizes = [2, 8, 16], strides = [1, 1, 1]} : vector<2x8x96xf32> to vector<2x8x16xf32>
    "tpu.trace_start"() <{level = 10 : i32, message = "bqd,bkd->bqk"}> : () -> ()
    %cst_376 = arith.constant dense<0.000000e+00> : vector<2x8x8xf32>
    %653 = tpu.matmul %650, %651, %cst_376 {dimension_numbers = #tpu.dot_dimension_numbers<[2], [2], [1], [1], [0, 0, 0, 1, 1, 1], [0], [0]>} : vector<2x8x16xf32>, vector<2x8x16xf32>, vector<2x8x8xf32> -> vector<2x8x8xf32>
    "tpu.trace_stop"() : () -> ()
    %cst_377 = arith.constant 2.500000e-01 : f32
    %654 = vector.broadcast %cst_377 : f32 to vector<2x8x8xf32>
    %655 = arith.mulf %653, %654 : vector<2x8x8xf32>
    %656 = vector.broadcast %189 : vector<2x1x8xf32> to vector<2x8x8xf32>
    %657 = arith.addf %655, %656 : vector<2x8x8xf32>
    %cst_378 = arith.constant dense<0xFF800000> : vector<2x8xf32>
    %658 = vector.multi_reduction <maximumf>, %657, %cst_378 [2] : vector<2x8x8xf32> to vector<2x8xf32>
    %659 = vector.shape_cast %658 : vector<2x8xf32> to vector<2x8x1xf32>
    %660 = vector.broadcast %659 : vector<2x8x1xf32> to vector<2x8x8xf32>
    %661 = arith.subf %657, %660 : vector<2x8x8xf32>
    %662 = math.exp %661 : vector<2x8x8xf32>
    %cst_379 = arith.constant dense<0.000000e+00> : vector<2x8xf32>
    %663 = vector.multi_reduction <add>, %662, %cst_379 [2] : vector<2x8x8xf32> to vector<2x8xf32>
    %664 = vector.shape_cast %663 : vector<2x8xf32> to vector<2x8x1xf32>
    %665 = tpu.reciprocal %664 {approx = true} : vector<2x8x1xf32> -> vector<2x8x1xf32>
    %666 = vector.broadcast %665 : vector<2x8x1xf32> to vector<2x8x8xf32>
    %667 = arith.mulf %662, %666 : vector<2x8x8xf32>
    "tpu.trace_start"() <{level = 10 : i32, message = "bqk,bkd->bqd"}> : () -> ()
    %cst_380 = arith.constant dense<0.000000e+00> : vector<2x8x16xf32>
    %668 = tpu.matmul %667, %652, %cst_380 {dimension_numbers = #tpu.dot_dimension_numbers<[2], [1], [1], [2], [0, 0, 0, 1, 1, 2], [0], [0]>} : vector<2x8x8xf32>, vector<2x8x16xf32>, vector<2x8x16xf32> -> vector<2x8x16xf32>
    "tpu.trace_stop"() : () -> ()
    %669 = vector.shape_cast %668 : vector<2x8x16xf32> to vector<16x16xf32>
    %670 = arith.truncf %669 : vector<16x16xf32> to vector<16x16xbf16>
    %671 = vector.extract_strided_slice %647 {offsets = [0, 0], sizes = [16, 32], strides = [1, 1]} : vector<32x32xbf16> to vector<16x32xbf16>
    %cst_381 = arith.constant dense<0.000000e+00> : vector<16x32xf32>
    %672 = tpu.matmul %670, %671, %cst_381 {dimension_numbers = #tpu.dot_dimension_numbers<[1], [0], [0], [1], [0, 0, 1, 1], [], []>} : vector<16x16xbf16>, vector<16x32xbf16>, vector<16x32xf32> -> vector<16x32xf32>
    %673 = vector.broadcast %649 : vector<1x32xf32> to vector<16x32xf32>
    %674 = arith.addf %673, %672 : vector<16x32xf32>
    %675 = vector.extract_strided_slice %645 {offsets = [0, 0, 16], sizes = [2, 8, 16], strides = [1, 1, 1]} : vector<2x8x96xf32> to vector<2x8x16xf32>
    %676 = vector.extract_strided_slice %645 {offsets = [0, 0, 48], sizes = [2, 8, 16], strides = [1, 1, 1]} : vector<2x8x96xf32> to vector<2x8x16xf32>
    %677 = vector.extract_strided_slice %645 {offsets = [0, 0, 80], sizes = [2, 8, 16], strides = [1, 1, 1]} : vector<2x8x96xf32> to vector<2x8x16xf32>
    "tpu.trace_start"() <{level = 10 : i32, message = "bqd,bkd->bqk"}> : () -> ()
    %cst_382 = arith.constant dense<0.000000e+00> : vector<2x8x8xf32>
    %678 = tpu.matmul %675, %676, %cst_382 {dimension_numbers = #tpu.dot_dimension_numbers<[2], [2], [1], [1], [0, 0, 0, 1, 1, 1], [0], [0]>} : vector<2x8x16xf32>, vector<2x8x16xf32>, vector<2x8x8xf32> -> vector<2x8x8xf32>
    "tpu.trace_stop"() : () -> ()
    %cst_383 = arith.constant 2.500000e-01 : f32
    %679 = vector.broadcast %cst_383 : f32 to vector<2x8x8xf32>
    %680 = arith.mulf %678, %679 : vector<2x8x8xf32>
    %681 = vector.broadcast %189 : vector<2x1x8xf32> to vector<2x8x8xf32>
    %682 = arith.addf %680, %681 : vector<2x8x8xf32>
    %cst_384 = arith.constant dense<0xFF800000> : vector<2x8xf32>
    %683 = vector.multi_reduction <maximumf>, %682, %cst_384 [2] : vector<2x8x8xf32> to vector<2x8xf32>
    %684 = vector.shape_cast %683 : vector<2x8xf32> to vector<2x8x1xf32>
    %685 = vector.broadcast %684 : vector<2x8x1xf32> to vector<2x8x8xf32>
    %686 = arith.subf %682, %685 : vector<2x8x8xf32>
    %687 = math.exp %686 : vector<2x8x8xf32>
    %cst_385 = arith.constant dense<0.000000e+00> : vector<2x8xf32>
    %688 = vector.multi_reduction <add>, %687, %cst_385 [2] : vector<2x8x8xf32> to vector<2x8xf32>
    %689 = vector.shape_cast %688 : vector<2x8xf32> to vector<2x8x1xf32>
    %690 = tpu.reciprocal %689 {approx = true} : vector<2x8x1xf32> -> vector<2x8x1xf32>
    %691 = vector.broadcast %690 : vector<2x8x1xf32> to vector<2x8x8xf32>
    %692 = arith.mulf %687, %691 : vector<2x8x8xf32>
    "tpu.trace_start"() <{level = 10 : i32, message = "bqk,bkd->bqd"}> : () -> ()
    %cst_386 = arith.constant dense<0.000000e+00> : vector<2x8x16xf32>
    %693 = tpu.matmul %692, %677, %cst_386 {dimension_numbers = #tpu.dot_dimension_numbers<[2], [1], [1], [2], [0, 0, 0, 1, 1, 2], [0], [0]>} : vector<2x8x8xf32>, vector<2x8x16xf32>, vector<2x8x16xf32> -> vector<2x8x16xf32>
    "tpu.trace_stop"() : () -> ()
    %694 = vector.shape_cast %693 : vector<2x8x16xf32> to vector<16x16xf32>
    %695 = arith.truncf %694 : vector<16x16xf32> to vector<16x16xbf16>
    %696 = vector.extract_strided_slice %647 {offsets = [16, 0], sizes = [16, 32], strides = [1, 1]} : vector<32x32xbf16> to vector<16x32xbf16>
    %cst_387 = arith.constant dense<0.000000e+00> : vector<16x32xf32>
    %697 = tpu.matmul %695, %696, %cst_387 {dimension_numbers = #tpu.dot_dimension_numbers<[1], [0], [0], [1], [0, 0, 1, 1], [], []>} : vector<16x16xbf16>, vector<16x32xbf16>, vector<16x32xf32> -> vector<16x32xf32>
    %698 = arith.addf %674, %697 : vector<16x32xf32>
    %699 = arith.addf %632, %698 : vector<16x32xf32>
    %c3_388 = arith.constant 3 : index
    %c0_389 = arith.constant 0 : index
    %c0_390 = arith.constant 0 : index
    %700 = vector.load %arg13[%c3_388, %c0_389, %c0_390] : memref<4x1x32xf32, #tpu.memory_space<vmem>>, vector<1x1x32xf32>
    %701 = vector.shape_cast %700 : vector<1x1x32xf32> to vector<1x32xf32>
    %c3_391 = arith.constant 3 : index
    %c0_392 = arith.constant 0 : index
    %c0_393 = arith.constant 0 : index
    %702 = vector.load %arg14[%c3_391, %c0_392, %c0_393] : memref<4x1x32xf32, #tpu.memory_space<vmem>>, vector<1x1x32xf32>
    %703 = vector.shape_cast %702 : vector<1x1x32xf32> to vector<1x32xf32>
    %cst_394 = arith.constant dense<0.000000e+00> : vector<16xf32>
    %704 = vector.multi_reduction <add>, %699, %cst_394 [1] : vector<16x32xf32> to vector<16xf32>
    %705 = vector.shape_cast %704 : vector<16xf32> to vector<16x1xf32>
    %cst_395 = arith.constant 3.200000e+01 : f32
    %706 = vector.broadcast %cst_395 : f32 to vector<16x1xf32>
    %707 = arith.divf %705, %706 : vector<16x1xf32>
    %708 = arith.mulf %699, %699 : vector<16x32xf32>
    %cst_396 = arith.constant dense<0.000000e+00> : vector<16xf32>
    %709 = vector.multi_reduction <add>, %708, %cst_396 [1] : vector<16x32xf32> to vector<16xf32>
    %710 = vector.shape_cast %709 : vector<16xf32> to vector<16x1xf32>
    %cst_397 = arith.constant 3.200000e+01 : f32
    %711 = vector.broadcast %cst_397 : f32 to vector<16x1xf32>
    %712 = arith.divf %710, %711 : vector<16x1xf32>
    %713 = arith.mulf %707, %707 : vector<16x1xf32>
    %714 = arith.subf %712, %713 : vector<16x1xf32>
    %715 = vector.broadcast %707 : vector<16x1xf32> to vector<16x32xf32>
    %716 = arith.subf %699, %715 : vector<16x32xf32>
    %cst_398 = arith.constant 9.99999996E-13 : f32
    %717 = vector.broadcast %cst_398 : f32 to vector<16x1xf32>
    %718 = arith.addf %714, %717 : vector<16x1xf32>
    %719 = math.rsqrt %718 : vector<16x1xf32>
    %720 = vector.broadcast %719 : vector<16x1xf32> to vector<16x32xf32>
    %721 = arith.mulf %716, %720 : vector<16x32xf32>
    %722 = vector.broadcast %701 : vector<1x32xf32> to vector<16x32xf32>
    %723 = arith.mulf %721, %722 : vector<16x32xf32>
    %724 = vector.broadcast %703 : vector<1x32xf32> to vector<16x32xf32>
    %725 = arith.addf %723, %724 : vector<16x32xf32>
    %726 = arith.truncf %725 : vector<16x32xf32> to vector<16x32xbf16>
    %c3_399 = arith.constant 3 : index
    %c0_400 = arith.constant 0 : index
    %c0_401 = arith.constant 0 : index
    %727 = vector.load %arg15[%c3_399, %c0_400, %c0_401] : memref<4x32x64xbf16, #tpu.memory_space<vmem>>, vector<1x32x64xbf16>
    %728 = vector.shape_cast %727 : vector<1x32x64xbf16> to vector<32x64xbf16>
    %cst_402 = arith.constant dense<0.000000e+00> : vector<16x64xf32>
    %729 = tpu.matmul %726, %728, %cst_402 {dimension_numbers = #tpu.dot_dimension_numbers<[1], [0], [0], [1], [0, 0, 1, 1], [], []>} : vector<16x32xbf16>, vector<32x64xbf16>, vector<16x64xf32> -> vector<16x64xf32>
    %c3_403 = arith.constant 3 : index
    %c0_404 = arith.constant 0 : index
    %c0_405 = arith.constant 0 : index
    %730 = vector.load %arg16[%c3_403, %c0_404, %c0_405] : memref<4x1x64xf32, #tpu.memory_space<vmem>>, vector<1x1x64xf32>
    %731 = vector.shape_cast %730 : vector<1x1x64xf32> to vector<1x64xf32>
    %732 = vector.broadcast %731 : vector<1x64xf32> to vector<16x64xf32>
    %733 = arith.addf %729, %732 : vector<16x64xf32>
    %cst_406 = arith.constant 5.000000e-01 : f32
    %734 = vector.broadcast %cst_406 : f32 to vector<16x64xf32>
    %735 = arith.mulf %734, %733 : vector<16x64xf32>
    %cst_407 = arith.constant 4.471500e-02 : f32
    %736 = vector.broadcast %cst_407 : f32 to vector<16x64xf32>
    %737 = arith.mulf %736, %733 : vector<16x64xf32>
    %738 = arith.mulf %737, %733 : vector<16x64xf32>
    %739 = arith.mulf %738, %733 : vector<16x64xf32>
    %740 = arith.addf %733, %739 : vector<16x64xf32>
    %cst_408 = arith.constant 0.797884583 : f32
    %741 = vector.broadcast %cst_408 : f32 to vector<16x64xf32>
    %742 = arith.mulf %741, %740 : vector<16x64xf32>
    %743 = math.tanh %742 : vector<16x64xf32>
    %cst_409 = arith.constant 1.000000e+00 : f32
    %744 = vector.broadcast %cst_409 : f32 to vector<16x64xf32>
    %745 = arith.addf %744, %743 : vector<16x64xf32>
    %746 = arith.mulf %735, %745 : vector<16x64xf32>
    %747 = arith.truncf %746 : vector<16x64xf32> to vector<16x64xbf16>
    %c3_410 = arith.constant 3 : index
    %c0_411 = arith.constant 0 : index
    %c0_412 = arith.constant 0 : index
    %748 = vector.load %arg17[%c3_410, %c0_411, %c0_412] : memref<4x64x32xbf16, #tpu.memory_space<vmem>>, vector<1x64x32xbf16>
    %749 = vector.shape_cast %748 : vector<1x64x32xbf16> to vector<64x32xbf16>
    %cst_413 = arith.constant dense<0.000000e+00> : vector<16x32xf32>
    %750 = tpu.matmul %747, %749, %cst_413 {dimension_numbers = #tpu.dot_dimension_numbers<[1], [0], [0], [1], [0, 0, 1, 1], [], []>} : vector<16x64xbf16>, vector<64x32xbf16>, vector<16x32xf32> -> vector<16x32xf32>
    %c3_414 = arith.constant 3 : index
    %c0_415 = arith.constant 0 : index
    %c0_416 = arith.constant 0 : index
    %751 = vector.load %arg18[%c3_414, %c0_415, %c0_416] : memref<4x1x32xf32, #tpu.memory_space<vmem>>, vector<1x1x32xf32>
    %752 = vector.shape_cast %751 : vector<1x1x32xf32> to vector<1x32xf32>
    %753 = vector.broadcast %752 : vector<1x32xf32> to vector<16x32xf32>
    %754 = arith.addf %750, %753 : vector<16x32xf32>
    %755 = arith.addf %725, %754 : vector<16x32xf32>
    %c3_417 = arith.constant 3 : index
    %c0_418 = arith.constant 0 : index
    %c0_419 = arith.constant 0 : index
    %756 = vector.load %arg19[%c3_417, %c0_418, %c0_419] : memref<4x1x32xf32, #tpu.memory_space<vmem>>, vector<1x1x32xf32>
    %757 = vector.shape_cast %756 : vector<1x1x32xf32> to vector<1x32xf32>
    %c3_420 = arith.constant 3 : index
    %c0_421 = arith.constant 0 : index
    %c0_422 = arith.constant 0 : index
    %758 = vector.load %arg20[%c3_420, %c0_421, %c0_422] : memref<4x1x32xf32, #tpu.memory_space<vmem>>, vector<1x1x32xf32>
    %759 = vector.shape_cast %758 : vector<1x1x32xf32> to vector<1x32xf32>
    %cst_423 = arith.constant dense<0.000000e+00> : vector<16xf32>
    %760 = vector.multi_reduction <add>, %755, %cst_423 [1] : vector<16x32xf32> to vector<16xf32>
    %761 = vector.shape_cast %760 : vector<16xf32> to vector<16x1xf32>
    %cst_424 = arith.constant 3.200000e+01 : f32
    %762 = vector.broadcast %cst_424 : f32 to vector<16x1xf32>
    %763 = arith.divf %761, %762 : vector<16x1xf32>
    %764 = arith.mulf %755, %755 : vector<16x32xf32>
    %cst_425 = arith.constant dense<0.000000e+00> : vector<16xf32>
    %765 = vector.multi_reduction <add>, %764, %cst_425 [1] : vector<16x32xf32> to vector<16xf32>
    %766 = vector.shape_cast %765 : vector<16xf32> to vector<16x1xf32>
    %cst_426 = arith.constant 3.200000e+01 : f32
    %767 = vector.broadcast %cst_426 : f32 to vector<16x1xf32>
    %768 = arith.divf %766, %767 : vector<16x1xf32>
    %769 = arith.mulf %763, %763 : vector<16x1xf32>
    %770 = arith.subf %768, %769 : vector<16x1xf32>
    %771 = vector.broadcast %763 : vector<16x1xf32> to vector<16x32xf32>
    %772 = arith.subf %755, %771 : vector<16x32xf32>
    %cst_427 = arith.constant 9.99999996E-13 : f32
    %773 = vector.broadcast %cst_427 : f32 to vector<16x1xf32>
    %774 = arith.addf %770, %773 : vector<16x1xf32>
    %775 = math.rsqrt %774 : vector<16x1xf32>
    %776 = vector.broadcast %775 : vector<16x1xf32> to vector<16x32xf32>
    %777 = arith.mulf %772, %776 : vector<16x32xf32>
    %778 = vector.broadcast %757 : vector<1x32xf32> to vector<16x32xf32>
    %779 = arith.mulf %777, %778 : vector<16x32xf32>
    %780 = vector.broadcast %759 : vector<1x32xf32> to vector<16x32xf32>
    %781 = arith.addf %779, %780 : vector<16x32xf32>
    %782 = vector.extract_strided_slice %781 {offsets = [0, 0], sizes = [1, 32], strides = [1, 1]} : vector<16x32xf32> to vector<1x32xf32>
    %c0_428 = arith.constant 0 : index
    %c0_429 = arith.constant 0 : index
    %783 = vector.load %arg25[%c0_428, %c0_429] : memref<2x128xf32, #tpu.memory_space<vmem>>, vector<1x32xf32>
    tpu.vector_store %arg25[%c0_428, %c0_429], %782 {strides = array<i32>} : memref<2x128xf32, #tpu.memory_space<vmem>>, vector<1x32xf32>,
    %784 = vector.extract_strided_slice %781 {offsets = [8, 0], sizes = [1, 32], strides = [1, 1]} : vector<16x32xf32> to vector<1x32xf32>
    %c1_430 = arith.constant 1 : index
    %c0_431 = arith.constant 0 : index
    %785 = vector.load %arg25[%c1_430, %c0_431] : memref<2x128xf32, #tpu.memory_space<vmem>>, vector<1x32xf32>
    tpu.vector_store %arg25[%c1_430, %c0_431], %784 {strides = array<i32>} : memref<2x128xf32, #tpu.memory_space<vmem>>, vector<1x32xf32>,
    %c0_432 = arith.constant 0 : index
    %c0_433 = arith.constant 0 : index
    %786 = vector.load %arg25[%c0_432, %c0_433] : memref<2x128xf32, #tpu.memory_space<vmem>>, vector<2x128xf32>
    %787 = arith.truncf %786 : vector<2x128xf32> to vector<2x128xbf16>
    %c0_434 = arith.constant 0 : index
    %c0_435 = arith.constant 0 : index
    %788 = vector.load %arg21[%c0_434, %c0_435] : memref<128x3xbf16, #tpu.memory_space<vmem>>, vector<128x3xbf16>
    %cst_436 = arith.constant dense<0.000000e+00> : vector<2x3xf32>
    %789 = tpu.matmul %787, %788, %cst_436 {dimension_numbers = #tpu.dot_dimension_numbers<[1], [0], [0], [1], [0, 0, 1, 1], [], []>} : vector<2x128xbf16>, vector<128x3xbf16>, vector<2x3xf32> -> vector<2x3xf32>
    %c0_437 = arith.constant 0 : index
    %c0_438 = arith.constant 0 : index
    %790 = vector.load %arg22[%c0_437, %c0_438] : memref<1x3xf32, #tpu.memory_space<vmem>>, vector<1x3xf32>
    %791 = vector.broadcast %790 : vector<1x3xf32> to vector<2x3xf32>
    %792 = arith.addf %789, %791 : vector<2x3xf32>
    %c0_439 = arith.constant 0 : index
    %c0_440 = arith.constant 0 : index
    %793 = vector.load %arg23[%c0_439, %c0_440] : memref<2x3xf32, #tpu.memory_space<vmem>>, vector<2x3xf32>
    tpu.vector_store %arg23[%c0_439, %c0_440], %792 {strides = array<i32>} : memref<2x3xf32, #tpu.memory_space<vmem>>, vector<2x3xf32>,
    return
  }
  func.func @transform_0(%arg0: i32, %arg1: memref<2x8xi32, #tpu.memory_space<smem>>, %arg2: memref<2x8xi32, #tpu.memory_space<smem>>) -> (i32, i32, i32) {
    %c0_i32 = arith.constant 0 : i32
    %c0_i32_0 = arith.constant 0 : i32
    %c0_i32_1 = arith.constant 0 : i32
    %c0_i32_2 = arith.constant 0 : i32
    return %c0_i32, %c0_i32_0, %c0_i32_1 : i32, i32, i32
  }
  func.func @transform_1(%arg0: i32, %arg1: memref<2x8xi32, #tpu.memory_space<smem>>, %arg2: memref<2x8xi32, #tpu.memory_space<smem>>) -> (i32, i32) {
    %c0_i32 = arith.constant 0 : i32
    %c0_i32_0 = arith.constant 0 : i32
    %c0_i32_1 = arith.constant 0 : i32
    return %c0_i32, %c0_i32_0 : i32, i32
  }
  func.func @transform_2(%arg0: i32, %arg1: memref<2x8xi32, #tpu.memory_space<smem>>, %arg2: memref<2x8xi32, #tpu.memory_space<smem>>) -> (i32, i32) {
    %c0_i32 = arith.constant 0 : i32
    %c0_i32_0 = arith.constant 0 : i32
    %c0_i32_1 = arith.constant 0 : i32
    return %c0_i32, %c0_i32_0 : i32, i32
  }
  func.func @transform_3(%arg0: i32, %arg1: memref<2x8xi32, #tpu.memory_space<smem>>, %arg2: memref<2x8xi32, #tpu.memory_space<smem>>) -> (i32, i32) {
    %c0_i32 = arith.constant 0 : i32
    %c0_i32_0 = arith.constant 0 : i32
    %c0_i32_1 = arith.constant 0 : i32
    return %c0_i32, %c0_i32_0 : i32, i32
  }
  func.func @transform_4(%arg0: i32, %arg1: memref<2x8xi32, #tpu.memory_space<smem>>, %arg2: memref<2x8xi32, #tpu.memory_space<smem>>) -> (i32, i32) {
    %c0_i32 = arith.constant 0 : i32
    %c0_i32_0 = arith.constant 0 : i32
    %c0_i32_1 = arith.constant 0 : i32
    return %c0_i32, %c0_i32_0 : i32, i32
  }
  func.func @transform_5(%arg0: i32, %arg1: memref<2x8xi32, #tpu.memory_space<smem>>, %arg2: memref<2x8xi32, #tpu.memory_space<smem>>) -> (i32, i32) {
    %c0_i32 = arith.constant 0 : i32
    %c0_i32_0 = arith.constant 0 : i32
    %c0_i32_1 = arith.constant 0 : i32
    return %c0_i32, %c0_i32_0 : i32, i32
  }
  func.func @transform_6(%arg0: i32, %arg1: memref<2x8xi32, #tpu.memory_space<smem>>, %arg2: memref<2x8xi32, #tpu.memory_space<smem>>) -> (i32, i32, i32) {
    %c0_i32 = arith.constant 0 : i32
    %c0_i32_0 = arith.constant 0 : i32
    %c0_i32_1 = arith.constant 0 : i32
    %c0_i32_2 = arith.constant 0 : i32
    return %c0_i32, %c0_i32_0, %c0_i32_1 : i32, i32, i32
  }
  func.func @transform_7(%arg0: i32, %arg1: memref<2x8xi32, #tpu.memory_space<smem>>, %arg2: memref<2x8xi32, #tpu.memory_space<smem>>) -> (i32, i32, i32) {
    %c0_i32 = arith.constant 0 : i32
    %c0_i32_0 = arith.constant 0 : i32
    %c0_i32_1 = arith.constant 0 : i32
    %c0_i32_2 = arith.constant 0 : i32
    return %c0_i32, %c0_i32_0, %c0_i32_1 : i32, i32, i32
  }
  func.func @transform_8(%arg0: i32, %arg1: memref<2x8xi32, #tpu.memory_space<smem>>, %arg2: memref<2x8xi32, #tpu.memory_space<smem>>) -> (i32, i32, i32) {
    %c0_i32 = arith.constant 0 : i32
    %c0_i32_0 = arith.constant 0 : i32
    %c0_i32_1 = arith.constant 0 : i32
    %c0_i32_2 = arith.constant 0 : i32
    return %c0_i32, %c0_i32_0, %c0_i32_1 : i32, i32, i32
  }
  func.func @transform_9(%arg0: i32, %arg1: memref<2x8xi32, #tpu.memory_space<smem>>, %arg2: memref<2x8xi32, #tpu.memory_space<smem>>) -> (i32, i32, i32) {
    %c0_i32 = arith.constant 0 : i32
    %c0_i32_0 = arith.constant 0 : i32
    %c0_i32_1 = arith.constant 0 : i32
    %c0_i32_2 = arith.constant 0 : i32
    return %c0_i32, %c0_i32_0, %c0_i32_1 : i32, i32, i32
  }
  func.func @transform_10(%arg0: i32, %arg1: memref<2x8xi32, #tpu.memory_space<smem>>, %arg2: memref<2x8xi32, #tpu.memory_space<smem>>) -> (i32, i32, i32) {
    %c0_i32 = arith.constant 0 : i32
    %c0_i32_0 = arith.constant 0 : i32
    %c0_i32_1 = arith.constant 0 : i32
    %c0_i32_2 = arith.constant 0 : i32
    return %c0_i32, %c0_i32_0, %c0_i32_1 : i32, i32, i32
  }
  func.func @transform_11(%arg0: i32, %arg1: memref<2x8xi32, #tpu.memory_space<smem>>, %arg2: memref<2x8xi32, #tpu.memory_space<smem>>) -> (i32, i32, i32) {
    %c0_i32 = arith.constant 0 : i32
    %c0_i32_0 = arith.constant 0 : i32
    %c0_i32_1 = arith.constant 0 : i32
    %c0_i32_2 = arith.constant 0 : i32
    return %c0_i32, %c0_i32_0, %c0_i32_1 : i32, i32, i32
  }
  func.func @transform_12(%arg0: i32, %arg1: memref<2x8xi32, #tpu.memory_space<smem>>, %arg2: memref<2x8xi32, #tpu.memory_space<smem>>) -> (i32, i32, i32) {
    %c0_i32 = arith.constant 0 : i32
    %c0_i32_0 = arith.constant 0 : i32
    %c0_i32_1 = arith.constant 0 : i32
    %c0_i32_2 = arith.constant 0 : i32
    return %c0_i32, %c0_i32_0, %c0_i32_1 : i32, i32, i32
  }
  func.func @transform_13(%arg0: i32, %arg1: memref<2x8xi32, #tpu.memory_space<smem>>, %arg2: memref<2x8xi32, #tpu.memory_space<smem>>) -> (i32, i32, i32) {
    %c0_i32 = arith.constant 0 : i32
    %c0_i32_0 = arith.constant 0 : i32
    %c0_i32_1 = arith.constant 0 : i32
    %c0_i32_2 = arith.constant 0 : i32
    return %c0_i32, %c0_i32_0, %c0_i32_1 : i32, i32, i32
  }
  func.func @transform_14(%arg0: i32, %arg1: memref<2x8xi32, #tpu.memory_space<smem>>, %arg2: memref<2x8xi32, #tpu.memory_space<smem>>) -> (i32, i32, i32) {
    %c0_i32 = arith.constant 0 : i32
    %c0_i32_0 = arith.constant 0 : i32
    %c0_i32_1 = arith.constant 0 : i32
    %c0_i32_2 = arith.constant 0 : i32
    return %c0_i32, %c0_i32_0, %c0_i32_1 : i32, i32, i32
  }
  func.func @transform_15(%arg0: i32, %arg1: memref<2x8xi32, #tpu.memory_space<smem>>, %arg2: memref<2x8xi32, #tpu.memory_space<smem>>) -> (i32, i32, i32) {
    %c0_i32 = arith.constant 0 : i32
    %c0_i32_0 = arith.constant 0 : i32
    %c0_i32_1 = arith.constant 0 : i32
    %c0_i32_2 = arith.constant 0 : i32
    return %c0_i32, %c0_i32_0, %c0_i32_1 : i32, i32, i32
  }
  func.func @transform_16(%arg0: i32, %arg1: memref<2x8xi32, #tpu.memory_space<smem>>, %arg2: memref<2x8xi32, #tpu.memory_space<smem>>) -> (i32, i32, i32) {
    %c0_i32 = arith.constant 0 : i32
    %c0_i32_0 = arith.constant 0 : i32
    %c0_i32_1 = arith.constant 0 : i32
    %c0_i32_2 = arith.constant 0 : i32
    return %c0_i32, %c0_i32_0, %c0_i32_1 : i32, i32, i32
  }
  func.func @transform_17(%arg0: i32, %arg1: memref<2x8xi32, #tpu.memory_space<smem>>, %arg2: memref<2x8xi32, #tpu.memory_space<smem>>) -> (i32, i32, i32) {
    %c0_i32 = arith.constant 0 : i32
    %c0_i32_0 = arith.constant 0 : i32
    %c0_i32_1 = arith.constant 0 : i32
    %c0_i32_2 = arith.constant 0 : i32
    return %c0_i32, %c0_i32_0, %c0_i32_1 : i32, i32, i32
  }
  func.func @transform_18(%arg0: i32, %arg1: memref<2x8xi32, #tpu.memory_space<smem>>, %arg2: memref<2x8xi32, #tpu.memory_space<smem>>) -> (i32, i32) {
    %c0_i32 = arith.constant 0 : i32
    %c0_i32_0 = arith.constant 0 : i32
    %c0_i32_1 = arith.constant 0 : i32
    return %c0_i32, %c0_i32_0 : i32, i32
  }
  func.func @transform_19(%arg0: i32, %arg1: memref<2x8xi32, #tpu.memory_space<smem>>, %arg2: memref<2x8xi32, #tpu.memory_space<smem>>) -> (i32, i32) {
    %c0_i32 = arith.constant 0 : i32
    %c0_i32_0 = arith.constant 0 : i32
    %c0_i32_1 = arith.constant 0 : i32
    return %c0_i32, %c0_i32_0 : i32, i32
  }
  func.func @transform_20(%arg0: i32, %arg1: memref<2x8xi32, #tpu.memory_space<smem>>, %arg2: memref<2x8xi32, #tpu.memory_space<smem>>) -> (i32, i32) {
    %c0_i32 = arith.constant 0 : i32
    %c0_i32_0 = arith.constant 0 : i32
    %c0_i32_1 = arith.constant 0 : i32
    return %c0_i32, %c0_i32_0 : i32, i32
  }
}

</mosaic_0001>

<bundles_post_ra>
// kernel: bert_cls_forward.1
= control target key start
LH: loop header
LB: loop body
LE: loop exit
PB: predicated region body
PF: predicated region fallthrough
CT: control target
= control target key end

     0   :  { %s7089_s0 = inlined_call_operand.vmem [shape: s32[2,8], index: 0, kind: input, shape index: {}]   ;;  %s7090_s2 = inlined_call_operand.vmem [shape: f32[2,1,8], index: 2, kind: input, shape index: {}]   ;;  %s7091_s3 = inlined_call_operand.vmem [shape: f32[100,32], index: 3, kind: input, shape index: {}]   ;;  %s7092_s4 = inlined_call_operand.vmem [shape: f32[16,32], index: 4, kind: input, shape index: {}]   ;;  %s7093_s5 = inlined_call_operand.vmem [shape: f32[2,32], index: 5, kind: input, shape index: {}]   ;;  %s7094_s6 = inlined_call_operand.vmem [shape: f32[1,32], index: 6, kind: input, shape index: {}]   ;;  %s7095_s7 = inlined_call_operand.vmem [shape: f32[1,32], index: 7, kind: input, shape index: {}]   ;;  %s7096_s8 = inlined_call_operand.vmem [shape: bf16[4,32,96], index: 8, kind: input, shape index: {}]   ;;  %s7097_s9 = inlined_call_operand.vmem [shape: f32[4,1,96], index: 9, kind: input, shape index: {}]   ;;  %s7098_s10 = inlined_call_operand.vmem [shape: bf16[4,32,32], index: 10, kind: input, shape index: {}]   ;;  %s7099_s11 = inlined_call_operand.vmem [shape: f32[4,1,32], index: 11, kind: input, shape index: {}]   ;;  %s7100_s12 = inlined_call_operand.vmem [shape: f32[4,1,32], index: 12, kind: input, shape index: {}]   ;;  %s7101_s13 = inlined_call_operand.vmem [shape: f32[4,1,32], index: 13, kind: input, shape index: {}]   ;;  %s7102_s14 = inlined_call_operand.vmem [shape: bf16[4,32,64], index: 14, kind: input, shape index: {}]   ;;  %s7103_s15 = inlined_call_operand.vmem [shape: f32[4,1,64], index: 15, kind: input, shape index: {}]   ;;  %s7104_s16 = inlined_call_operand.vmem [shape: bf16[4,64,32], index: 16, kind: input, shape index: {}]   ;;  %s7105_s17 = inlined_call_operand.vmem [shape: f32[4,1,32], index: 17, kind: input, shape index: {}]   ;;  %s7106_s18 = inlined_call_operand.vmem [shape: f32[4,1,32], index: 18, kind: input, shape index: {}]   ;;  %s7107_s19 = inlined_call_operand.vmem [shape: f32[4,1,32], index: 19, kind: input, shape index: {}]   ;;  %s7108_s20 = inlined_call_operand.vmem [shape: bf16[128,3], index: 20, kind: input, shape index: {}]   ;;  %s7109_s21 = inlined_call_operand.vmem [shape: f32[1,3], index: 21, kind: input, shape index: {}]   ;;  %s7110_s22 = inlined_call_operand.hbm [shape: f32[2,3], index: 22, kind: output, shape index: {}]   ;;  %s7111_s1 = inlined_call_operand.vmem [shape: s32[2,8], index: 1, kind: input, shape index: {}]  }
   0x1   :  { %7125 = sst [smem:[#allocation11_spill]] %s7089_s0  ;;  %s31_s0 = sshll.u32 %s7111_s1, 4  ;;  %s32_s0 = int_to_ptr.vmem [resolvable:$true] %s31_s0 }
   0x2   :  { %7126 = sst [smem:[#allocation12_spill]] %s7090_s2  ;;  %s7142_s29 = sld [smem:[#allocation11_spill]] }
   0x3   :  { %7127 = sst [smem:[#allocation13_spill]] %s7091_s3 }
   0x4   :  { %7128 = sst [smem:[#allocation14_spill]] %s7092_s4 }
   0x5   :  { %7129 = sst [smem:[#allocation15_spill]] %s7093_s5 }
   0x6   :  { %7130 = sst [smem:[#allocation16_spill]] %s7094_s6 }
   0x7   :  { %7131 = sst [smem:[#allocation17_spill]] %s7095_s7 }
   0x8   :  { %7132 = sst [smem:[#allocation18_spill]] %s7100_s12 }
   0x9   :  { %7133 = sst [smem:[#allocation19_spill]] %s7101_s13 }
   0xa   :  { %7134 = sst [smem:[#allocation20_spill]] %s7103_s15 }
   0xb   :  { %7135 = sst [smem:[#allocation21_spill]] %s7104_s16 }
   0xc   :  { %7136 = sst [smem:[#allocation22_spill]] %s7105_s17  ;;  %s27_s17 = sshll.u32 %s7142_s29, 4  ;;  %s28_s17 = int_to_ptr.vmem [resolvable:$true] %s27_s17 }
   0xd   :  { %7137 = sst [smem:[#allocation23_spill]] %s7106_s18  ;;  %s5942_s23 = scalar_lea.vmem %s28_s17, 32 }
   0xe   :  { %7138 = sst [smem:[#allocation24_spill]] %s7107_s19  ;;  %p5943_p0 = scmp.ne.s32.totalorder %s28_s17, %s5942_s23 }
   0xf   :  { %7139 = sst [smem:[#allocation25_spill]] %s7108_s20  ;;  %p5947_p1 = scmp.lt.s32.totalorder %s28_s17, %s28_s17 }
  0x10   :  { %7140 = sst [smem:[#allocation26_spill]] %s7109_s21  ;;  %p5948_p2 = scmp.lt.s32.totalorder %s5942_s23, %s5942_s23 }
  0x11   :  { %7141 = sst [smem:[#allocation27_spill]] %s7110_s22 }
  0x12   :  { %p5949_p3 = por %p5948_p2, %p5947_p1 }
  0x14   :  { %p5950_p4 = pnand %p5949_p3, %p5943_p0 }
  0x16   :  { %5953 = shalt.err (!%p5950_p4)  }
  0x17   :  { %s5992_s2 = smov [#allocation5]   ;;  %s5954_s6 = scalar_lea.vmem %s32_s0, 32 }
  0x18   :  { %30 = dma.vmem_to_smem %s28_s17, 32, %s5992_s2, [#allocation4] }
  0x19   :  { %p5955_p5 = scmp.ne.s32.totalorder %s32_s0, %s5954_s6  ;;  %p5959_p6 = scmp.lt.s32.totalorder %s32_s0, %s32_s0 }
  0x1a   :  { %p5960_p7 = scmp.lt.s32.totalorder %s5954_s6, %s5954_s6 }
  0x1c   :  { %p5961_p8 = por %p5960_p7, %p5959_p6 }
  0x1e   :  { %p5962_p9 = pnand %p5961_p8, %p5955_p5 }
  0x20   :  { %5965 = shalt.err (!%p5962_p9)  }
  0x21   :  { %s5993_s24 = smov [#allocation6]  }
  0x22   :  { %34 = dma.vmem_to_smem %s32_s0, 32, %s5993_s24, [#allocation4] }
  0x23   :  { %5988 = dma.done.wait [#allocation4], 64 }
  0x24   :  { %5989 = vsyncadd [#allocation4], 4294967232 }
  0x25   :  { %36 = sfence }
  0x26   :  { %s79_s1 = sld [smem:[#allocation5]]  ;;  %s5029_s25 = sld [smem:[#allocation5 + $0x1]]  ;;  %vm88_vm0 = vcmask 253952   ;;  %vm244_vm1 = vcmask 261120  }
  0x27   :  { %s84_s7 = sld [smem:[#allocation6]]  ;;  %s5030_s26 = sld [smem:[#allocation6 + $0x1]] }
  0x28   :  { %s5031_s3 = sld [smem:[#allocation5 + $0x2]]  ;;  %s6126_s17 = sld [smem:[#allocation5 + $0x3]] }
  0x29   :  { %s6124_s27 = sld [smem:[#allocation6 + $0x2]]  ;;  %s6128_s4 = sld [smem:[#allocation6 + $0x3]] }
  0x2a   :  { %s6130_s28 = sld [smem:[#allocation5 + $0x4]]  ;;  %s7143_s5 = sld [smem:[#allocation14_spill]] }
  0x2b   :  { %s6135_s0 = sld [smem:[#allocation6 + $0x4]]  ;;  %s6137_s23 = sld [smem:[#allocation5 + $0x5]] }
  0x2c   :  { %s7144_s24 = sld [smem:[#allocation13_spill]]  ;;  %s7145_s19 = sld [smem:[#allocation15_spill]] }
  0x2d   :  { %s6154_s2 = sld [smem:[#allocation6 + $0x5]]  ;;  %s5043_s16 = sld [smem:[#allocation5 + $0x80]] }
  0x2e   :  { %s6207_s13 = sld [smem:[#allocation5 + $0x81]]  ;;  %s6233_s21 = sld [smem:[#allocation6 + $0x83]] }
  0x30   :  { %v82_v0 = vld [vmem:[%s7143_s5] sm:$0x1]  ;;  %v93_v1 = vld [vmem:[%s7143_s5 + $0x1] sm:$0x1]  ;;  %v103_v2 = vld [vmem:[%s7143_s5 + $0x2] sm:$0x1] }
  0x31   :  { %v113_v7 = vld [vmem:[%s7143_s5 + $0x3] sm:$0x1]  ;;  %v123_v11 = vld [vmem:[%s7143_s5 + $0x4] sm:$0x1]  ;;  %v133_v16 = vld [vmem:[%s7143_s5 + $0x5] sm:$0x1] }
  0x32   :  { %s80_s22 = scalar_lea.vmem %s7144_s24, %s79_s1  ;;  %s85_s18 = scalar_lea.vmem %s7145_s19, %s84_s7  ;;  %v143_v30 = vld [vmem:[%s7143_s5 + $0x6] sm:$0x1]  ;;  %v153_v31 = vld [vmem:[%s7143_s5 + $0x7] sm:$0x1]  ;;  %v163_v32 = vld [vmem:[%s7143_s5] sm:$0x1] }
  0x33   :  { %v81_v3 = vld [vmem:[%s80_s22] sm:$0x1]  ;;  %s91_s1 = scalar_lea.vmem %s7144_s24, %s5029_s25  ;;  %s96_s20 = scalar_lea.vmem %s7145_s19, %s5030_s26  ;;  %v173_v34 = vld [vmem:[%s7143_s5 + $0x1] sm:$0x1]  ;;  %v183_v37 = vld [vmem:[%s7143_s5 + $0x2] sm:$0x1] }
  0x34   :  { %v86_v4 = vld [vmem:[%s85_s18] sm:$0x1]  ;;  %v83_v5 = vadd.f32 %v82_v0, %v81_v3  ;;  %s101_s22 = scalar_lea.vmem %s7144_s24, %s5031_s3  ;;  %s106_s6 = scalar_lea.vmem %s7145_s19, %s6124_s27  ;;  %v193_v40 = vld [vmem:[%s7143_s5 + $0x3] sm:$0x1]  ;;  %v203_v59 = vld [vmem:[%s7143_s5 + $0x4] sm:$0x1] }
  0x35   :  { %v92_v6 = vld [vmem:[%s91_s1] sm:$0x1]  ;;  %s111_s26 = scalar_lea.vmem %s7144_s24, %s6126_s17  ;;  %s121_s27 = scalar_lea.vmem %s7144_s24, %s6130_s28  ;;  %v213_v61 = vld [vmem:[%s7143_s5 + $0x5] sm:$0x1]  ;;  %v223_v62 = vld [vmem:[%s7143_s5 + $0x6] sm:$0x1] }
  0x36   :  { %v94_v8 = vadd.f32 %v93_v1, %v92_v6  ;;  %v97_v9 = vld [vmem:[%s96_s20] sm:$0x1]  ;;  %v87_v12 = vadd.f32 %v86_v4, %v83_v5  ;;  %s116_s20 = scalar_lea.vmem %s7145_s19, %s6128_s4  ;;  %s126_s12 = scalar_lea.vmem %s7145_s19, %s6135_s0  ;;  %v233_v0 = vld [vmem:[%s7143_s5 + $0x7] sm:$0x1] }
  0x37   :  { %v102_v10 = vld [vmem:[%s101_s22] sm:$0x1]  ;;  %s131_s4 = scalar_lea.vmem %s7144_s24, %s6137_s23  ;;  %s5039_s28 = sld [smem:[#allocation5 + $0x6]] }
  0x38   :  { %v104_v13 = vadd.f32 %v103_v2, %v102_v10  ;;  %v107_v14 = vld [vmem:[%s106_s6] sm:$0x1]  ;;  %v98_v17 = vadd.f32 %v97_v9, %v94_v8  ;;  %89 = vst.msk [vmem:[#allocation2] sm:$0x1] %vm88_vm0, %v87_v12  ;;  %s5040_s0 = sld [smem:[#allocation6 + $0x6]]  ;;  %s5041_s23 = sld [smem:[#allocation5 + $0x7]] }
  0x39   :  { %v112_v15 = vld [vmem:[%s111_s26] sm:$0x1]  ;;  %s136_s26 = scalar_lea.vmem %s7145_s19, %s6154_s2  ;;  %s5042_s1 = sld [smem:[#allocation6 + $0x7]] }
  0x3a   :  { %v114_v18 = vadd.f32 %v113_v7, %v112_v15  ;;  %v117_v19 = vld [vmem:[%s116_s20] sm:$0x1]  ;;  %v108_v21 = vadd.f32 %v107_v14, %v104_v13  ;;  %99 = vst.msk [vmem:[#allocation2 + $0x1] sm:$0x1] %vm88_vm0, %v98_v17  ;;  %s5044_s20 = sld [smem:[#allocation6 + $0x80]]  ;;  %s6209_s2 = sld [smem:[#allocation6 + $0x81]] }
  0x3b   :  { %v122_v20 = vld [vmem:[%s121_s27] sm:$0x1]  ;;  %s6215_s22 = sld [smem:[#allocation5 + $0x82]]  ;;  %s171_s7 = scalar_lea.vmem %s7144_s24, %s6207_s13 }
  0x3c   :  { %v124_v22 = vadd.f32 %v123_v11, %v122_v20  ;;  %v127_v23 = vld [vmem:[%s126_s12] sm:$0x1]  ;;  %v118_v25 = vadd.f32 %v117_v19, %v114_v18  ;;  %109 = vst.msk [vmem:[#allocation2 + $0x2] sm:$0x1] %vm88_vm0, %v108_v21  ;;  %s6217_s18 = sld [smem:[#allocation6 + $0x82]]  ;;  %s5051_s3 = sld [smem:[#allocation5 + $0x84]] }
  0x3d   :  { %v132_v24 = vld [vmem:[%s131_s4] sm:$0x1]  ;;  %s141_s12 = scalar_lea.vmem %s7144_s24, %s5039_s28  ;;  %s6225_s4 = sld [smem:[#allocation5 + $0x83]] }
  0x3e   :  { %v134_v26 = vadd.f32 %v133_v16, %v132_v24  ;;  %v128_v27 = vadd.f32 %v127_v23, %v124_v22  ;;  %v137_v28 = vld [vmem:[%s136_s26] sm:$0x1]  ;;  %119 = vst.msk [vmem:[#allocation2 + $0x3] sm:$0x1] %vm88_vm0, %v118_v25  ;;  %s146_s26 = scalar_lea.vmem %s7145_s19, %s5040_s0  ;;  %s151_s17 = scalar_lea.vmem %s7144_s24, %s5041_s23 }
  0x3f   :  { %v142_v33 = vld [vmem:[%s141_s12] sm:$0x1]  ;;  %s156_s25 = scalar_lea.vmem %s7145_s19, %s5042_s1  ;;  %s196_s28 = scalar_lea.vmem %s7145_s19, %s6233_s21 }
  0x40   :  { %v138_v29 = vadd.f32 %v137_v28, %v134_v26  ;;  %129 = vst.msk [vmem:[#allocation2 + $0x4] sm:$0x1] %vm88_vm0, %v128_v27  ;;  %v144_v35 = vadd.f32 %v143_v30, %v142_v33  ;;  %v147_v36 = vld [vmem:[%s146_s26] sm:$0x1]  ;;  %s161_s26 = scalar_lea.vmem %s7144_s24, %s5043_s16  ;;  %s166_s23 = scalar_lea.vmem %s7145_s19, %s5044_s20 }
  0x41   :  { %v152_v38 = vld [vmem:[%s151_s17] sm:$0x1]  ;;  %s176_s16 = scalar_lea.vmem %s7145_s19, %s6209_s2  ;;  %s181_s0 = scalar_lea.vmem %s7144_s24, %s6215_s22 }
  0x42   :  { %139 = vst.msk [vmem:[#allocation2 + $0x5] sm:$0x1] %vm88_vm0, %v138_v29  ;;  %v157_v39 = vld [vmem:[%s156_s25] sm:$0x1]  ;;  %v148_v41 = vadd.f32 %v147_v36, %v144_v35  ;;  %v154_v42 = vadd.f32 %v153_v31, %v152_v38  ;;  %s5052_s27 = sld [smem:[#allocation6 + $0x84]]  ;;  %s5054_s1 = sld [smem:[#allocation6 + $0x85]] }
  0x43   :  { %v162_v43 = vld [vmem:[%s161_s26] sm:$0x1]  ;;  %s186_s26 = scalar_lea.vmem %s7145_s19, %s6217_s18  ;;  %s191_s15 = scalar_lea.vmem %s7144_s24, %s6225_s4 }
  0x44   :  { %v167_v44 = vld [vmem:[%s166_s23] sm:$0x1]  ;;  %v164_v45 = vadd.f32 %v163_v32, %v162_v43  ;;  %149 = vst.msk [vmem:[#allocation2 + $0x6] sm:$0x1] %vm88_vm0, %v148_v41  ;;  %v158_v48 = vadd.f32 %v157_v39, %v154_v42  ;;  %s5053_s18 = sld [smem:[#allocation5 + $0x85]]  ;;  %s5056_s12 = sld [smem:[#allocation6 + $0x86]] }
  0x45   :  { %v172_v46 = vld [vmem:[%s171_s7] sm:$0x1]  ;;  %s5055_s7 = sld [smem:[#allocation5 + $0x86]]  ;;  %s6284_s21 = sld [smem:[#allocation5 + $0x87]] }
  0x46   :  { %v177_v47 = vld [vmem:[%s176_s16] sm:$0x1]  ;;  %v174_v49 = vadd.f32 %v173_v34, %v172_v46  ;;  %v168_v52 = vadd.f32 %v167_v44, %v164_v45  ;;  %159 = vst.msk [vmem:[#allocation2 + $0x7] sm:$0x1] %vm88_vm0, %v158_v48  ;;  %s6286_s25 = sld [smem:[#allocation6 + $0x87]]  ;;  %s201_s29 = scalar_lea.vmem %s7144_s24, %s5051_s3 }
  0x47   :  { %v182_v50 = vld [vmem:[%s181_s0] sm:$0x1] }
  0x48   :  { %v187_v51 = vld [vmem:[%s186_s26] sm:$0x1]  ;;  %v184_v53 = vadd.f32 %v183_v37, %v182_v50  ;;  %v178_v55 = vadd.f32 %v177_v47, %v174_v49  ;;  %169 = vst.msk [vmem:[#allocation2 + $0x8] sm:$0x1] %vm88_vm0, %v168_v52  ;;  %s216_s20 = scalar_lea.vmem %s7145_s19, %s5054_s1 }
  0x49   :  { %v192_v54 = vld [vmem:[%s191_s15] sm:$0x1]  ;;  %s206_s15 = scalar_lea.vmem %s7145_s19, %s5052_s27 }
  0x4a   :  { %v194_v56 = vadd.f32 %v193_v40, %v192_v54  ;;  %v197_v57 = vld [vmem:[%s196_s28] sm:$0x1]  ;;  %v188_v58 = vadd.f32 %v187_v51, %v184_v53  ;;  %179 = vst.msk [vmem:[#allocation2 + $0x9] sm:$0x1] %vm88_vm0, %v178_v55  ;;  %s211_s3 = scalar_lea.vmem %s7144_s24, %s5053_s18  ;;  %s226_s30 = scalar_lea.vmem %s7145_s19, %s5056_s12 }
  0x4b   :  { %v202_v63 = vld [vmem:[%s201_s29] sm:$0x1]  ;;  %s221_s5 = scalar_lea.vmem %s7144_s24, %s5055_s7  ;;  %s231_s26 = scalar_lea.vmem %s7144_s24, %s6284_s21 }
  0x4c   :  { %v198_v60 = vadd.f32 %v197_v57, %v194_v56  ;;  %189 = vst.msk [vmem:[#allocation2 + $0xa] sm:$0x1] %vm88_vm0, %v188_v58  ;;  %v204_v1 = vadd.f32 %v203_v59, %v202_v63  ;;  %v207_v2 = vld [vmem:[%s206_s15] sm:$0x1]  ;;  %s236_s2 = scalar_lea.vmem %s7145_s19, %s6286_s25 }
  0x4d   :  { %v6311_v3 = vld [vmem:[#allocation2] sm:$0xff] }
  0x4e   :  { %199 = vst.msk [vmem:[#allocation2 + $0xb] sm:$0x1] %vm88_vm0, %v198_v60  ;;  %v212_v4 = vld [vmem:[%s211_s3] sm:$0x1]  ;;  %v245_v6 = vsel %vm244_vm1, %v6311_v3, 0.0  ;;  %v254_v7 = vmul.f32 %v6311_v3, %v6311_v3  ;;  %v208_v8 = vadd.f32 %v207_v2, %v204_v1 }
  0x4f   :  { %v217_v5 = vld [vmem:[%s216_s20] sm:$0x1]  ;;  %v214_v9 = vadd.f32 %v213_v61, %v212_v4  ;;  %246 = vadd.xlane.f32.xlu0 %v245_v6 }
  0x50   :  { %v222_v10 = vld [vmem:[%s221_s5] sm:$0x1]  ;;  %v256_v15 = vsel %vm244_vm1, %v254_v7, 0.0  ;;  %209 = vst.msk [vmem:[#allocation2 + $0xc] sm:$0x1] %vm88_vm0, %v208_v8 }
  0x51   :  { %v227_v11 = vld [vmem:[%s226_s30] sm:$0x1]  ;;  %v224_v12 = vadd.f32 %v223_v62, %v222_v10  ;;  %v218_v16 = vadd.f32 %v217_v5, %v214_v9  ;;  %257 = vadd.xlane.f32.xlu1 %v256_v15 }
  0x52   :  { %v232_v13 = vld [vmem:[%s231_s26] sm:$0x1] }
  0x53   :  { %v237_v14 = vld [vmem:[%s236_s2] sm:$0x1]  ;;  %v234_v17 = vadd.f32 %v233_v0, %v232_v13  ;;  %v228_v18 = vadd.f32 %v227_v11, %v224_v12  ;;  %219 = vst.msk [vmem:[#allocation2 + $0xd] sm:$0x1] %vm88_vm0, %v218_v16 }
  0x55   :  { %v238_v19 = vadd.f32 %v237_v14, %v234_v17  ;;  %229 = vst.msk [vmem:[#allocation2 + $0xe] sm:$0x1] %vm88_vm0, %v228_v18 }
  0x57   :  { %239 = vst.msk [vmem:[#allocation2 + $0xf] sm:$0x1] %vm88_vm0, %v238_v19 }
  0x5e   :  { %v241_v20 = vld [vmem:[#allocation2 + $0x8] sm:$0xff] }
  0x5f   :  { %v248_v21 = vsel %vm244_vm1, %v241_v20, 0.0  ;;  %v255_v22 = vmul.f32 %v241_v20, %v241_v20 }
  0x60   :  { %249 = vadd.xlane.f32.xlu0 %v248_v21 }
  0x61   :  { %v259_v23 = vsel %vm244_vm1, %v255_v22, 0.0 }
  0x62   :  { %260 = vadd.xlane.f32.xlu1 %v259_v23 }
  0x63   :  { %37 = vsyncpa [#allocation8], 0  ;;  %v5778_v24 = vld [vmem:[%s7096_s8] sm:$0xff]   ;;  %v5994_v25 = vmov 0.0   ;;  %vm5995_vm2 = vmmov 0   ;;  %v5779_v26 = vld [vmem:[%s7096_s8 + $0x8] sm:$0xff]   ;;  %v530_v63 = vlaneseq }
  0x64   :  { %5427 = vmatprep.subr.bf16.mxu0 %v5994_v25  ;;  %5431 = vmatprep.mubr.msk.bf16.mxu0 %vm5995_vm2, %v5994_v25  ;;  %s7146_s23 = sld [smem:[#allocation16_spill]]  ;;  %s7147_s4 = sld [smem:[#allocation17_spill]]  ;;  %v5061_v54 = vld [vmem:[%s7097_s9] ss:$0 sm:$0xff]  ;;  %vm374_vm3 = vcmask 130048   ;;  %vm542_vm4 = vcmask 64512  }
  0x65   :  { %5428 = vmatpush3.bf16.msra.mxu0 %v5778_v24  ;;  %5435 = vmatprep.subr.mxu1 %v5994_v25  ;;  %s5996_s16 = smov 96   ;;  %s7148_s6 = sld [smem:[#allocation12_spill]]  ;;  %v531_v2 = vshrl.u32 %v530_v63, 7  ;;  %vm1339_vm5 = vcmask 523264   ;;  %vm1438_vm6 = vcmask 1041152   ;;  %vm2582_vm7 = vcmask 778752  }
  0x66   :  { %5429 = vmatprep.subr.bf16.mxu0 %v5994_v25  ;;  %5437 = vmatprep.mubr.msk.f32.mxu1 %vm5995_vm2, %v5994_v25  ;;  %s5997_s29 = smov 64   ;;  %s5998_s30 = smov 80   ;;  %vm3726_vm8 = vcmask 516352   ;;  %vm4981_vm9 = vcmask 17408  }
  0x67   :  { %v532_v5 = vsub.s32 0, %v531_v2  ;;  %s5999_s18 = smov 112   ;;  %s6000_s13 = smov 48  }
  0x68   :  { %s7149_s28 = sld [smem:[#allocation18_spill]]  ;;  %s7150_s17 = sld [smem:[#allocation19_spill]] }
  0x69   :  { %5430 = vmatpush3.bf16.msra.mxu0 %v5779_v26  ;;  %s7152_s12 = sld [smem:[#allocation20_spill]]  ;;  %s7153_s15 = sld [smem:[#allocation22_spill]] }
  0x6a   :  { %5450 = vmatprep.subr.mxu0 %v5994_v25  ;;  %v5059_v44 = vld [vmem:[%s7146_s23] ss:$0 sm:$0xff]  ;;  %s7154_s5 = sld [smem:[#allocation23_spill]]  ;;  %s7155_s26 = sld [smem:[#allocation24_spill]] }
  0x6b   :  { %v5060_v49 = vld [vmem:[%s7147_s4] ss:$0 sm:$0xff]  ;;  %s7157_s0 = sld [smem:[#allocation26_spill]]  ;;  %s6002_s1 = smov [#allocation7]  }
  0x6c   :  { %v292_v0 = vld [vmem:[%s7148_s6] sm:$0x1]  ;;  %s4989_s7 = sshll.u32 %s6002_s1, 4  ;;  %s4990_s7 = int_to_ptr.vmem [resolvable:$true] %s4989_s7 }
  0x6d   :  { %v294_v1 = vsub.f32 1.0, %v292_v0  ;;  %p5971_p11 = scmp.lt.s32.totalorder %s4990_s7, %s4990_s7 }
  0x6f   :  { %v296_v4 = vmul.f32 -1e+09, %v294_v1 }
  0x71   :  { %v6397_v7 = vrot.slane %v296_v4, %v532_v5 }
  0xdc   :  { %v247_v27 = vpop.xlane.xlu0 %246 }
  0xdd   :  { %v252_v28 = vmul.f32 0.03125, %v247_v27 }
  0xde   :  { %v258_v29 = vpop.xlane.xlu1 %257 }
  0xdf   :  { %v264_v30 = vmul.f32 %v252_v28, %v252_v28  ;;  %v262_v31 = vmul.f32 0.03125, %v258_v29  ;;  %v268_v42 = vsub.f32 %v6311_v3, %v252_v28  ;;  %v293_v3 = vld [vmem:[%s7148_s6 + $0x1] sm:$0x1]  ;;  %s7151_s6 = sld [smem:[#allocation21_spill]] }
  0xe0   :  { %v295_v6 = vsub.f32 1.0, %v293_v3 }
  0xe1   :  { %v266_v32 = vsub.f32 %v262_v31, %v264_v30 }
  0xe2   :  { %v297_v8 = vmul.f32 -1e+09, %v295_v6 }
  0xe3   :  { %v270_v33 = vadd.f32 1e-12, %v266_v32 }
  0xe4   :  { %v6400_v13 = vrot.slane %v297_v8, %v532_v5 }
  0xe5   :  { %5826 = vrsqrt.f32 %v270_v33 }
  0xed   :  { %v250_v34 = vpop.xlane.xlu0 %249 }
  0xee   :  { %v253_v35 = vmul.f32 0.03125, %v250_v34 }
  0xef   :  { %v261_v36 = vpop.xlane.xlu1 %260  ;;  %v5827_v41 = vpop.eup %5826 }
  0xf0   :  { %v265_v37 = vmul.f32 %v253_v35, %v253_v35  ;;  %v263_v38 = vmul.f32 0.03125, %v261_v36  ;;  %v274_v43 = vmul.f32 %v5827_v41, %v268_v42  ;;  %v269_v45 = vsub.f32 %v241_v20, %v253_v35 }
  0xf2   :  { %v267_v39 = vsub.f32 %v263_v38, %v265_v37  ;;  %v282_v48 = vmul.f32 %v5059_v44, %v274_v43  ;;  %v5780_v38 = vld [vmem:[%s7098_s10] sm:$0xff]  }
  0xf4   :  { %v271_v40 = vadd.f32 1e-12, %v267_v39  ;;  %v6359_v51 = vadd.f32 %v5060_v49, %v282_v48 }
  0xf6   :  { %5828 = vrsqrt.f32 %v271_v40 }
 0x100   :  { %v5829_v46 = vpop.eup %5828 }
 0x101   :  { %v275_v47 = vmul.f32 %v5829_v46, %v269_v45 }
 0x103   :  { %v283_v50 = vmul.f32 %v5059_v44, %v275_v47 }
 0x105   :  { %v6361_v52 = vadd.f32 %v5060_v49, %v283_v50 }
 0x107   :  { %v298_v53 = vpack.c.bf16 %v6361_v52, %v6359_v51 }
 0x109   :  { %5432 = vmatmul.mubr.msk.bf16.vlgmr.msra.gmra.mrb[0].mxu0 %vm244_vm1, %v298_v53 }
 0x10a   :  { %5452 = vmatprep.mubr.msk.f32.mxu0 %vm5995_vm2, %v5994_v25 }
 0x1dc   :  { %v359_v55 = vpop.f32.mrb[0].mxu0 }
 0x1dd   :  { %v6371_v56 = vadd.f32 %v5061_v54, %v359_v55  ;;  %v5433_v57 = vpop.f32.mrb[1].mxu0 }
 0x1de   :  { %v362_v58 = vpop.f32.mrb[2].mxu0 }
 0x1df   :  { %v6373_v59 = vadd.f32 %v5061_v54, %v362_v58  ;;  %372 = vrot.lane.b32.xlu0 %v6371_v56, %s5996_s16  ;;  %v5434_v60 = vpop.f32.mrb[3].mxu0 }
 0x1e1   :  { %450 = vrot.lane.b32.xlu1 %v6373_v59, %s5996_s16 }
 0x251   :  { %v373_v61 = vpop.permute.xlu0 %372 }
 0x252   :  { %5436 = vmatpush3.xpose.msk.msra.mxu1 %vm374_vm3, %v373_v61 }
 0x253   :  { %5440 = vmatprep.subr.mxu1 %v5994_v25  ;;  %v451_v62 = vpop.permute.xlu1 %450 }
 0x255   :  { %5438 = vmatmul.mubr.msk.f32.vlgmr.msra.gmra.mrb[0].mxu1 %vm374_vm3, %v6371_v56 }
 0x256   :  { %5441 = vmatpush3.xpose.msk.msra.mxu1 %vm374_vm3, %v451_v62  ;;  %5442 = vmatprep.mubr.msk.f32.mxu1 %vm5995_vm2, %v5994_v25 }
 0x257   :  { %5445 = vmatprep.subr.mxu1 %v5994_v25 }
 0x259   :  { %5443 = vmatmul.mubr.msk.f32.vlgmr.msra.gmra.mrb[2].mxu1 %vm374_vm3, %v6373_v59 }
 0x25a   :  { %5447 = vmatprep.mubr.msk.f32.mxu1 %vm5995_vm2, %v5994_v25 }
 0x328   :  { %v445_v9 = vpop.f32.mrb[0].mxu1 }
 0x329   :  { %v526_v10 = vmul.f32 0.25, %v445_v9  ;;  %v5439_v11 = vpop.f32.mrb[1].mxu1 }
 0x32b   :  { %v540_v12 = vadd.f32 %v6397_v7, %v526_v10 }
 0x32c   :  { %v522_v14 = vpop.f32.mrb[2].mxu1 }
 0x32d   :  { %v527_v15 = vmul.f32 0.25, %v522_v14  ;;  %v5444_v16 = vpop.f32.mrb[3].mxu1  ;;  %v543_v17 = vsel %vm542_vm4, %v540_v12, -inf }
 0x32e   :  { %544 = vmax.xlane.f32.xlu1 %v543_v17 }
 0x32f   :  { %v541_v18 = vadd.f32 %v6400_v13, %v527_v15 }
 0x331   :  { %v546_v19 = vsel %vm542_vm4, %v541_v18, -inf }
 0x332   :  { %547 = vmax.xlane.f32.xlu0 %v546_v19 }
 0x3bb   :  { %v545_v20 = vpop.xlane.xlu1 %544 }
 0x3bc   :  { %v549_v21 = vsub.f32 %v540_v12, %v545_v20 }
 0x3be   :  { %v551_v22 = vmul.f32 1.442695, %v549_v21 }
 0x3bf   :  { %v548_v23 = vpop.xlane.xlu0 %547 }
 0x3c0   :  { %5830 = vpow2.f32 %v551_v22  ;;  %v550_v24 = vsub.f32 %v541_v18, %v548_v23 }
 0x3c2   :  { %v553_v26 = vmul.f32 1.442695, %v550_v24 }
 0x3c4   :  { %5832 = vpow2.f32 %v553_v26 }
 0x3ca   :  { %v5831_v27 = vpop.eup %5830 }
 0x3cb   :  { %v555_v28 = vsel %vm542_vm4, %v5831_v27, 0.0 }
 0x3cc   :  { %556 = vadd.xlane.f32.xlu0 %v555_v28  ;;  %v5073_v28 = vld [vmem:[%s7099_s11] ss:$0 sm:$0xff] }
 0x3ce   :  { %v5833_v29 = vpop.eup %5832 }
 0x3cf   :  { %v558_v30 = vsel %vm542_vm4, %v5833_v29, 0.0 }
 0x3d0   :  { %559 = vadd.xlane.f32.xlu1 %v558_v30 }
 0x3e1   :  { %641 = vrot.lane.b32.xlu1 %v6373_v59, %s5997_s29 }
 0x3e2   :  { %565 = vrot.lane.b32.xlu0 %v6371_v56, %s5997_s29 }
 0x3e5   :  { %778 = vrot.lane.b32.xlu1 %v6371_v56, %s5998_s30 }
 0x3e6   :  { %856 = vrot.lane.b32.xlu0 %v6373_v59, %s5998_s30 }
 0x3e9   :  { %776 = vrot.lane.b32.xlu1 %v6371_v56, %s5999_s18 }
 0x3ed   :  { %854 = vrot.lane.b32.xlu1 %v6373_v59, %s5999_s18 }
 0x459   :  { %v557_v31 = vpop.xlane.xlu0 %556 }
 0x45a   :  { %5834 = vrcp.f32 %v557_v31 }
 0x45d   :  { %v566_v32 = vpop.permute.xlu0 %565  ;;  %v560_v33 = vpop.xlane.xlu1 %559 }
 0x45e   :  { %5836 = vrcp.f32 %v560_v33  ;;  %5446 = vmatpush3.msra.mxu1 %v566_v32 }
 0x45f   :  { %5471 = vmatprep.subr.mxu1 %v5994_v25 }
 0x461   :  { %v642_v34 = vpop.permute.xlu1 %641  ;;  %v857_v47 = vpop.permute.xlu0 %856 }
 0x462   :  { %5451 = vmatpush3.msra.mxu0 %v642_v34 }
 0x463   :  { %5455 = vmatprep.subr.bf16.mxu0 %v5994_v25 }
 0x464   :  { %v5835_v35 = vpop.eup %5834 }
 0x465   :  { %v563_v36 = vmul.f32 %v5835_v35, %v5831_v27  ;;  %v779_v45 = vpop.permute.xlu1 %778 }
 0x467   :  { %5448 = vmatmul.mubr.msk.f32.vlgmr.msra.gmra.mrb[4].mxu1 %vm542_vm4, %v563_v36 }
 0x468   :  { %v5837_v37 = vpop.eup %5836  ;;  %5473 = vmatprep.mubr.msk.f32.mxu1 %vm5995_vm2, %v5994_v25 }
 0x469   :  { %v564_v39 = vmul.f32 %v5837_v37, %v5833_v29  ;;  %v777_v46 = vpop.permute.xlu1 %776 }
 0x46b   :  { %5453 = vmatmul.mubr.msk.f32.vlgmr.msra.gmra.mrb[4].mxu0 %vm542_vm4, %v564_v39 }
 0x46c   :  { %5456 = vmatpush3.bf16.msra.mxu0 %v5780_v38  ;;  %5457 = vmatprep.mubr.msk.bf16.mxu0 %vm5995_vm2, %v5994_v25 }
 0x46d   :  { %5461 = vmatprep.subr.mxu0 %v5994_v25  ;;  %v855_v48 = vpop.permute.xlu1 %854 }
 0x53a   :  { %v637_v40 = vpop.f32.mrb[4].mxu1 }
 0x53b   :  { %v5449_v41 = vpop.f32.mrb[5].mxu1 }
 0x53e   :  { %v713_v42 = vpop.f32.mrb[4].mxu0 }
 0x53f   :  { %v717_v43 = vpack.c.bf16 %v713_v42, %v637_v40  ;;  %v5454_v44 = vpop.f32.mrb[5].mxu0 }
 0x541   :  { %5458 = vmatmul.mubr.msk.bf16.vlgmr.msra.gmra.mrb[8].mxu0 %vm374_vm3, %v717_v43 }
 0x542   :  { %5462 = vmatpush3.xpose.msk.msra.mxu0 %vm374_vm3, %v779_v45  ;;  %5463 = vmatprep.mubr.msk.f32.mxu0 %vm5995_vm2, %v5994_v25 }
 0x543   :  { %5466 = vmatprep.subr.mxu0 %v5994_v25 }
 0x549   :  { %5464 = vmatmul.mubr.msk.f32.vlgmr.msra.gmra.mrb[6].mxu0 %vm374_vm3, %v777_v46 }
 0x54a   :  { %5467 = vmatpush3.xpose.msk.msra.mxu0 %vm374_vm3, %v857_v47  ;;  %5468 = vmatprep.mubr.msk.f32.mxu0 %vm5995_vm2, %v5994_v25 }
 0x54b   :  { %5476 = vmatprep.subr.mxu0 %v5994_v25 }
 0x54d   :  { %5469 = vmatmul.mubr.msk.f32.vlgmr.msra.gmra.mrb[12].mxu0 %vm374_vm3, %v855_v48 }
 0x54e   :  { %5478 = vmatprep.mubr.msk.f32.mxu0 %vm5995_vm2, %v5994_v25 }
 0x614   :  { %v761_v49 = vpop.f32.mrb[8].mxu0 }
 0x615   :  { %v5459_v50 = vpop.f32.mrb[9].mxu0  ;;  %v774_v29 = vadd.f32 %v5073_v28, %v761_v49 }
 0x616   :  { %v764_v53 = vpop.f32.mrb[10].mxu0 }
 0x617   :  { %v5460_v54 = vpop.f32.mrb[11].mxu0  ;;  %v775_v31 = vadd.f32 %v5073_v28, %v764_v53 }
 0x61c   :  { %v850_v55 = vpop.f32.mrb[6].mxu0 }
 0x61d   :  { %v932_v57 = vmul.f32 0.25, %v850_v55  ;;  %v5465_v58 = vpop.f32.mrb[7].mxu0 }
 0x61f   :  { %v934_v60 = vadd.f32 %v932_v57, %v6397_v7 }
 0x620   :  { %v928_v61 = vpop.f32.mrb[12].mxu0 }
 0x621   :  { %v933_v62 = vmul.f32 0.25, %v928_v61  ;;  %v5470_v63 = vpop.f32.mrb[13].mxu0  ;;  %v936_v0 = vsel %vm542_vm4, %v934_v60, -inf }
 0x622   :  { %937 = vmax.xlane.f32.xlu0 %v936_v0 }
 0x623   :  { %v935_v1 = vadd.f32 %v933_v62, %v6400_v13 }
 0x625   :  { %v939_v2 = vsel %vm542_vm4, %v935_v1, -inf }
 0x626   :  { %940 = vmax.xlane.f32.xlu1 %v939_v2 }
 0x637   :  { %1034 = vrot.lane.b32.xlu1 %v6373_v59, %s6000_s13 }
 0x6af   :  { %v938_v3 = vpop.xlane.xlu0 %937 }
 0x6b0   :  { %v942_v4 = vsub.f32 %v934_v60, %v938_v3 }
 0x6b2   :  { %v944_v5 = vmul.f32 1.442695, %v942_v4 }
 0x6b3   :  { %v941_v6 = vpop.xlane.xlu1 %940 }
 0x6b4   :  { %5838 = vpow2.f32 %v944_v5  ;;  %v943_v8 = vsub.f32 %v935_v1, %v941_v6  ;;  %v5082_v1 = vld [vmem:[%s7149_s28] ss:$0 sm:$0xff] }
 0x6b6   :  { %v946_v9 = vmul.f32 1.442695, %v943_v8  ;;  %v5083_v8 = vld [vmem:[%s7150_s17] ss:$0 sm:$0xff] }
 0x6b7   :  { %v1035_v10 = vpop.permute.xlu1 %1034 }
 0x6b8   :  { %5840 = vpow2.f32 %v946_v9  ;;  %5477 = vmatpush3.msra.mxu0 %v1035_v10 }
 0x6b9   :  { %5487 = vmatprep.subr.bf16.mxu0 %v5994_v25 }
 0x6be   :  { %v5839_v11 = vpop.eup %5838 }
 0x6bf   :  { %v948_v12 = vsel %vm542_vm4, %v5839_v11, 0.0 }
 0x6c0   :  { %949 = vadd.xlane.f32.xlu0 %v948_v12 }
 0x6c2   :  { %v5841_v14 = vpop.eup %5840 }
 0x6c3   :  { %v951_v15 = vsel %vm542_vm4, %v5841_v14, 0.0 }
 0x6c4   :  { %952 = vadd.xlane.f32.xlu0 %v951_v15  ;;  %v5785_v15 = vld [vmem:[%s7151_s6 + $0x8] sm:$0xff]  }
 0x6da   :  { %958 = vrot.lane.b32.xlu0 %v6371_v56, %s6000_s13  ;;  %v5781_v56 = vld [vmem:[%s7098_s10 + $0x8] sm:$0xff]  }
 0x74d   :  { %v950_v59 = vpop.xlane.xlu0 %949 }
 0x74e   :  { %5842 = vrcp.f32 %v950_v59  ;;  %v5786_v59 = vld [vmem:[%s7151_s6 + $0x10] sm:$0xff]  }
 0x751   :  { %v953_v16 = vpop.xlane.xlu0 %952 }
 0x752   :  { %5844 = vrcp.f32 %v953_v16  ;;  %v5787_v16 = vld [vmem:[%s7151_s6 + $0x18] sm:$0xff]  }
 0x755   :  { %v959_v17 = vpop.permute.xlu0 %958 }
 0x756   :  { %5472 = vmatpush3.msra.mxu1 %v959_v17  ;;  %v5084_v17 = vld [vmem:[%s7152_s12] ss:$0 sm:$0xff] }
 0x757   :  { %5481 = vmatprep.subr.bf16.mxu1 %v5994_v25 }
 0x758   :  { %v5843_v18 = vpop.eup %5842 }
 0x759   :  { %v956_v19 = vmul.f32 %v5843_v18, %v5839_v11 }
 0x75b   :  { %5474 = vmatmul.mubr.msk.f32.vlgmr.msra.gmra.mrb[6].mxu1 %vm542_vm4, %v956_v19 }
 0x75c   :  { %v5845_v20 = vpop.eup %5844  ;;  %5483 = vmatprep.mubr.msk.bf16.mxu1 %vm5995_vm2, %v5994_v25  ;;  %5482 = vmatpush3.bf16.msra.mxu1 %v5781_v56 }
 0x75d   :  { %v957_v21 = vmul.f32 %v5845_v20, %v5841_v14  ;;  %5495 = vmatprep.subr.bf16.mxu1 %v5994_v25  ;;  %v5784_v14 = vld [vmem:[%s7151_s6] sm:$0xff]  }
 0x75f   :  { %5479 = vmatmul.mubr.msk.f32.vlgmr.msra.gmra.mrb[14].mxu0 %vm542_vm4, %v957_v21 }
 0x760   :  { %5491 = vmatprep.mubr.msk.bf16.mxu0 %vm5995_vm2, %v5994_v25 }
 0x82e   :  { %v1030_v22 = vpop.f32.mrb[6].mxu1 }
 0x82f   :  { %v5475_v23 = vpop.f32.mrb[7].mxu1 }
 0x832   :  { %v1106_v24 = vpop.f32.mrb[14].mxu0 }
 0x833   :  { %v1110_v26 = vpack.c.bf16 %v1106_v24, %v1030_v22  ;;  %v5480_v27 = vpop.f32.mrb[15].mxu0 }
 0x835   :  { %5484 = vmatmul.mubr.msk.bf16.vlgmr.msra.gmra.mrb[8].mxu1 %vm374_vm3, %v1110_v26 }
 0x836   :  { %5503 = vmatprep.mubr.msk.bf16.mxu1 %vm5995_vm2, %v5994_v25  ;;  %5496 = vmatpush3.bf16.msra.mxu1 %v5784_v14 }
 0x837   :  { %5497 = vmatprep.subr.bf16.mxu1 %v5994_v25 }
 0x83a   :  { %5498 = vmatpush3.bf16.msra.mxu1 %v5785_v15 }
 0x83b   :  { %5499 = vmatprep.subr.bf16.mxu1 %v5994_v25 }
 0x83e   :  { %5500 = vmatpush3.bf16.msra.mxu1 %v5786_v59  ;;  %v5094_v59 = vld [vmem:[%s7154_s5] ss:$0 sm:$0xff] }
 0x83f   :  { %5501 = vmatprep.subr.bf16.mxu1 %v5994_v25 }
 0x842   :  { %5502 = vmatpush3.bf16.msra.mxu1 %v5787_v16 }
 0x843   :  { %5520 = vmatprep.subr.mxu1 %v5994_v25 }
 0x908   :  { %v1154_v30 = vpop.f32.mrb[8].mxu1 }
 0x909   :  { %v1161_v32 = vadd.f32 %v1154_v30, %v774_v29  ;;  %v5485_v33 = vpop.f32.mrb[9].mxu1 }
 0x90a   :  { %v1157_v34 = vpop.f32.mrb[10].mxu1 }
 0x90b   :  { %v1163_v35 = vadd.f32 %v1161_v32, %v6359_v51  ;;  %v1162_v36 = vadd.f32 %v1157_v34, %v775_v31  ;;  %v5486_v37 = vpop.f32.mrb[11].mxu1  ;;  %v5782_v51 = vld [vmem:[%s7102_s14] sm:$0xff]  }
 0x90c   :  { %5488 = vmatpush3.bf16.msra.mxu0 %v5782_v51 }
 0x90d   :  { %v1164_v38 = vadd.f32 %v1162_v36, %v6361_v52  ;;  %v1167_v39 = vsel %vm244_vm1, %v1163_v35, 0.0  ;;  %v1175_v42 = vmul.f32 %v1163_v35, %v1163_v35  ;;  %v5783_v52 = vld [vmem:[%s7102_s14 + $0x8] sm:$0xff]   ;;  %5489 = vmatprep.subr.bf16.mxu0 %v5994_v25 }
 0x90e   :  { %1168 = vadd.xlane.f32.xlu1 %v1167_v39 }
 0x90f   :  { %v1170_v40 = vsel %vm244_vm1, %v1164_v38, 0.0  ;;  %v1176_v41 = vmul.f32 %v1164_v38, %v1164_v38  ;;  %v1177_v44 = vsel %vm244_vm1, %v1175_v42, 0.0 }
 0x910   :  { %1171 = vadd.xlane.f32.xlu0 %v1170_v40  ;;  %5490 = vmatpush3.bf16.msra.mxu0 %v5783_v52 }
 0x911   :  { %v1180_v43 = vsel %vm244_vm1, %v1176_v41, 0.0  ;;  %5507 = vmatprep.subr.bf16.mxu0 %v5994_v25 }
 0x912   :  { %1181 = vadd.xlane.f32.xlu1 %v1180_v43  ;;  %v5088_v43 = vld [vmem:[%s7153_s15] ss:$0 sm:$0xff] }
 0x914   :  { %1178 = vadd.xlane.f32.xlu0 %v1177_v44 }
 0x99b   :  { %v1169_v45 = vpop.xlane.xlu1 %1168 }
 0x99c   :  { %v1173_v47 = vmul.f32 0.03125, %v1169_v45 }
 0x99d   :  { %v1172_v46 = vpop.xlane.xlu0 %1171 }
 0x99e   :  { %v1174_v48 = vmul.f32 0.03125, %v1172_v46  ;;  %v1185_v55 = vmul.f32 %v1173_v47, %v1173_v47  ;;  %v1189_v2 = vsub.f32 %v1163_v35, %v1173_v47 }
 0x99f   :  { %v1182_v49 = vpop.xlane.xlu1 %1181 }
 0x9a0   :  { %v1186_v50 = vmul.f32 %v1174_v48, %v1174_v48  ;;  %v1184_v53 = vmul.f32 0.03125, %v1182_v49  ;;  %v1190_v63 = vsub.f32 %v1164_v38, %v1174_v48 }
 0x9a1   :  { %v1179_v54 = vpop.xlane.xlu0 %1178 }
 0x9a2   :  { %v1188_v57 = vsub.f32 %v1184_v53, %v1186_v50  ;;  %v1183_v58 = vmul.f32 0.03125, %v1179_v54 }
 0x9a4   :  { %v1192_v60 = vadd.f32 1e-12, %v1188_v57  ;;  %v1187_v61 = vsub.f32 %v1183_v58, %v1185_v55 }
 0x9a6   :  { %5846 = vrsqrt.f32 %v1192_v60  ;;  %v1191_v62 = vadd.f32 1e-12, %v1187_v61  ;;  %v5788_v60 = vld [vmem:[%s7096_s8 + $0x10] sm:$0xff]   ;;  %v5789_v61 = vld [vmem:[%s7096_s8 + $0x18] sm:$0xff]  }
 0x9a8   :  { %5848 = vrsqrt.f32 %v1191_v62 }
 0x9b0   :  { %v5847_v0 = vpop.eup %5846 }
 0x9b1   :  { %v1196_v3 = vmul.f32 %v5847_v0, %v1190_v63 }
 0x9b2   :  { %v5849_v4 = vpop.eup %5848 }
 0x9b3   :  { %v1195_v5 = vmul.f32 %v5849_v4, %v1189_v2  ;;  %v1204_v6 = vmul.f32 %v5082_v1, %v1196_v3 }
 0x9b5   :  { %v1203_v9 = vmul.f32 %v5082_v1, %v1195_v5  ;;  %v1212_v11 = vadd.f32 %v5083_v8, %v1204_v6 }
 0x9b7   :  { %v1211_v10 = vadd.f32 %v5083_v8, %v1203_v9 }
 0x9b9   :  { %v1213_v12 = vpack.c.bf16 %v1212_v11, %v1211_v10 }
 0x9bb   :  { %5492 = vmatmul.mubr.msk.bf16.vlgmr.msra.gmra.mrb[16].mxu0 %vm244_vm1, %v1213_v12 }
 0x9bc   :  { %5511 = vmatprep.mubr.msk.bf16.mxu0 %vm5995_vm2, %v5994_v25  ;;  %5508 = vmatpush3.bf16.msra.mxu0 %v5788_v60 }
 0x9bd   :  { %5509 = vmatprep.subr.bf16.mxu0 %v5994_v25 }
 0x9c0   :  { %5510 = vmatpush3.bf16.msra.mxu0 %v5789_v61 }
 0x9c1   :  { %5515 = vmatprep.subr.mxu0 %v5994_v25 }
 0xa8e   :  { %v1274_v18 = vpop.f32.mrb[16].mxu0 }
 0xa8f   :  { %v1275_v19 = vadd.f32 %v5084_v17, %v1274_v18  ;;  %v5493_v20 = vpop.f32.mrb[17].mxu0 }
 0xa90   :  { %v1277_v21 = vpop.f32.mrb[18].mxu0 }
 0xa91   :  { %v1283_v56 = vmul.f32 0.044715, %v1275_v19  ;;  %v1278_v22 = vadd.f32 %v5084_v17, %v1277_v21  ;;  %v5494_v23 = vpop.f32.mrb[19].mxu0  ;;  %v1281_v37 = vmul.f32 0.5, %v1275_v19  ;;  %v5095_v21 = vld [vmem:[%s7155_s26] ss:$0 sm:$0xff] }
 0xa93   :  { %v1285_v24 = vmul.f32 %v1283_v56, %v1275_v19  ;;  %v1284_v26 = vmul.f32 0.044715, %v1278_v22  ;;  %v1282_v38 = vmul.f32 0.5, %v1278_v22 }
 0xa95   :  { %v1287_v27 = vmul.f32 %v1285_v24, %v1275_v19  ;;  %v1286_v28 = vmul.f32 %v1284_v26, %v1278_v22  ;;  %v5101_v26 = vld [vmem:[%s7097_s9 + $0x1] ss:$0 sm:$0xff] }
 0xa97   :  { %v1289_v29 = vadd.f32 %v1287_v27, %v1275_v19  ;;  %v1288_v30 = vmul.f32 %v1286_v28, %v1278_v22 }
 0xa99   :  { %v1291_v31 = vmul.f32 0.7978846, %v1289_v29  ;;  %v1290_v32 = vadd.f32 %v1288_v30, %v1278_v22 }
 0xa9b   :  { %5850 = vtanh.f32 %v1291_v31  ;;  %v1292_v33 = vmul.f32 0.7978846, %v1290_v32 }
 0xa9d   :  { %5852 = vtanh.f32 %v1292_v33 }
 0xaa5   :  { %v5851_v34 = vpop.eup %5850 }
 0xaa6   :  { %v1295_v35 = vadd.f32 1.0, %v5851_v34 }
 0xaa7   :  { %v5853_v36 = vpop.eup %5852 }
 0xaa8   :  { %v1296_v39 = vadd.f32 1.0, %v5853_v36  ;;  %v1297_v40 = vmul.f32 %v1295_v35, %v1281_v37 }
 0xaaa   :  { %v1298_v41 = vmul.f32 %v1296_v39, %v1282_v38 }
 0xaac   :  { %v1299_v42 = vpack.c.bf16 %v1298_v41, %v1297_v40 }
 0xaae   :  { %5504 = vmatmul.mubr.msk.bf16.vlgmr.msra.gmra.mrb[12].mxu1 %vm1339_vm5, %v1299_v42 }
 0xaaf   :  { %5522 = vmatprep.mubr.msk.f32.mxu1 %vm5995_vm2, %v5994_v25 }
 0xb81   :  { %v1377_v44 = vpop.f32.mrb[12].mxu1 }
 0xb82   :  { %v1378_v51 = vadd.f32 %v5088_v43, %v1377_v44  ;;  %v5505_v52 = vpop.f32.mrb[13].mxu1 }
 0xb83   :  { %v1380_v45 = vpop.f32.mrb[14].mxu1 }
 0xb84   :  { %v1384_v46 = vadd.f32 %v1378_v51, %v1211_v10  ;;  %v1381_v47 = vadd.f32 %v5088_v43, %v1380_v45  ;;  %v5506_v48 = vpop.f32.mrb[15].mxu1 }
 0xb86   :  { %v1385_v49 = vadd.f32 %v1381_v47, %v1212_v11  ;;  %v1388_v50 = vsel %vm244_vm1, %v1384_v46, 0.0  ;;  %v1396_v53 = vmul.f32 %v1384_v46, %v1384_v46 }
 0xb87   :  { %1389 = vadd.xlane.f32.xlu0 %v1388_v50 }
 0xb88   :  { %v1391_v54 = vsel %vm244_vm1, %v1385_v49, 0.0  ;;  %v1397_v55 = vmul.f32 %v1385_v49, %v1385_v49  ;;  %v1398_v57 = vsel %vm244_vm1, %v1396_v53, 0.0 }
 0xb89   :  { %1392 = vadd.xlane.f32.xlu1 %v1391_v54 }
 0xb8a   :  { %v1401_v58 = vsel %vm244_vm1, %v1397_v55, 0.0 }
 0xb8b   :  { %1399 = vadd.xlane.f32.xlu0 %v1398_v57 }
 0xb8d   :  { %1402 = vadd.xlane.f32.xlu1 %v1401_v58 }
 0xc14   :  { %v1390_v62 = vpop.xlane.xlu0 %1389 }
 0xc15   :  { %v1394_v63 = vmul.f32 0.03125, %v1390_v62 }
 0xc16   :  { %v1393_v0 = vpop.xlane.xlu1 %1392 }
 0xc17   :  { %v1395_v1 = vmul.f32 0.03125, %v1393_v0  ;;  %v1406_v3 = vmul.f32 %v1394_v63, %v1394_v63  ;;  %v1410_v14 = vsub.f32 %v1384_v46, %v1394_v63 }
 0xc18   :  { %v1400_v2 = vpop.xlane.xlu0 %1399 }
 0xc19   :  { %v1404_v4 = vmul.f32 0.03125, %v1400_v2  ;;  %v1407_v6 = vmul.f32 %v1395_v1, %v1395_v1  ;;  %v1411_v16 = vsub.f32 %v1385_v49, %v1395_v1 }
 0xc1a   :  { %v1403_v5 = vpop.xlane.xlu1 %1402 }
 0xc1b   :  { %v1408_v8 = vsub.f32 %v1404_v4, %v1406_v3  ;;  %v1405_v9 = vmul.f32 0.03125, %v1403_v5 }
 0xc1d   :  { %v1412_v10 = vadd.f32 1e-12, %v1408_v8  ;;  %v1409_v11 = vsub.f32 %v1405_v9, %v1407_v6  ;;  %v5790_v6 = vld [vmem:[%s7098_s10 + $0x10] sm:$0xff]  }
 0xc1f   :  { %5854 = vrsqrt.f32 %v1412_v10  ;;  %v1413_v12 = vadd.f32 1e-12, %v1409_v11 }
 0xc21   :  { %5856 = vrsqrt.f32 %v1413_v12 }
 0xc29   :  { %v5855_v15 = vpop.eup %5854 }
 0xc2a   :  { %v1416_v17 = vmul.f32 %v5855_v15, %v1410_v14 }
 0xc2b   :  { %v5857_v18 = vpop.eup %5856 }
 0xc2c   :  { %v1424_v19 = vmul.f32 %v5094_v59, %v1416_v17  ;;  %v1417_v20 = vmul.f32 %v5857_v18, %v1411_v16 }
 0xc2e   :  { %v1425_v56 = vmul.f32 %v5094_v59, %v1417_v20  ;;  %v6538_v22 = vadd.f32 %v5095_v21, %v1424_v19 }
 0xc30   :  { %v6540_v23 = vadd.f32 %v5095_v21, %v1425_v56 }
 0xc32   :  { %v1445_v24 = vpack.c.bf16 %v6540_v23, %v6538_v22 }
 0xc34   :  { %5512 = vmatmul.mubr.msk.bf16.vlgmr.msra.gmra.mrb[20].mxu0 %vm244_vm1, %v1445_v24 }
 0xc35   :  { %5517 = vmatprep.mubr.msk.f32.mxu0 %vm5995_vm2, %v5994_v25 }
 0xd07   :  { %v1508_v27 = vpop.f32.mrb[20].mxu0 }
 0xd08   :  { %v6550_v28 = vadd.f32 %v5101_v26, %v1508_v27  ;;  %v5513_v29 = vpop.f32.mrb[21].mxu0 }
 0xd09   :  { %v1511_v30 = vpop.f32.mrb[22].mxu0 }
 0xd0a   :  { %v1512_v31 = vadd.f32 %v5101_v26, %v1511_v30  ;;  %1523 = vrot.lane.b32.xlu1 %v6550_v28, %s5996_s16  ;;  %v5514_v32 = vpop.f32.mrb[23].mxu0 }
 0xd0c   :  { %1600 = vrot.lane.b32.xlu0 %v1512_v31, %s5996_s16 }
 0xd7c   :  { %v1524_v33 = vpop.permute.xlu1 %1523 }
 0xd7d   :  { %5516 = vmatpush3.xpose.msk.msra.mxu0 %vm374_vm3, %v1524_v33 }
 0xd7e   :  { %v1601_v34 = vpop.permute.xlu0 %1600  ;;  %5525 = vmatprep.subr.mxu0 %v5994_v25 }
 0xd7f   :  { %5521 = vmatpush3.xpose.msk.msra.mxu1 %vm374_vm3, %v1601_v34 }
 0xd80   :  { %5518 = vmatmul.mubr.msk.f32.vlgmr.msra.gmra.mrb[24].mxu0 %vm374_vm3, %v6550_v28  ;;  %5530 = vmatprep.subr.mxu1 %v5994_v25 }
 0xd81   :  { %5527 = vmatprep.mubr.msk.f32.mxu0 %vm5995_vm2, %v5994_v25 }
 0xd82   :  { %5523 = vmatmul.mubr.msk.f32.vlgmr.msra.gmra.mrb[16].mxu1 %vm374_vm3, %v1512_v31 }
 0xd83   :  { %5532 = vmatprep.mubr.msk.f32.mxu1 %vm5995_vm2, %v5994_v25 }
 0xe53   :  { %v1595_v35 = vpop.f32.mrb[24].mxu0 }
 0xe54   :  { %v5519_v36 = vpop.f32.mrb[25].mxu0  ;;  %v1676_v42 = vmul.f32 0.25, %v1595_v35 }
 0xe55   :  { %v1672_v37 = vpop.f32.mrb[16].mxu1 }
 0xe56   :  { %v1677_v38 = vmul.f32 0.25, %v1672_v37  ;;  %v5524_v39 = vpop.f32.mrb[17].mxu1  ;;  %v1678_v43 = vadd.f32 %v1676_v42, %v6397_v7 }
 0xe58   :  { %v1679_v40 = vadd.f32 %v1677_v38, %v6400_v13  ;;  %v1680_v44 = vsel %vm542_vm4, %v1678_v43, -inf }
 0xe5a   :  { %v1683_v41 = vsel %vm542_vm4, %v1679_v40, -inf }
 0xe5b   :  { %1684 = vmax.xlane.f32.xlu1 %v1683_v41 }
 0xe6c   :  { %1915 = vrot.lane.b32.xlu1 %v6550_v28, %s5998_s30 }
 0xe70   :  { %1913 = vrot.lane.b32.xlu1 %v6550_v28, %s5999_s18 }
 0xe74   :  { %1993 = vrot.lane.b32.xlu1 %v1512_v31, %s5998_s30 }
 0xe98   :  { %1681 = vmax.xlane.f32.xlu1 %v1680_v44 }
 0xee8   :  { %v1685_v51 = vpop.xlane.xlu1 %1684 }
 0xee9   :  { %v1687_v52 = vsub.f32 %v1679_v40, %v1685_v51 }
 0xeeb   :  { %v1690_v45 = vmul.f32 1.442695, %v1687_v52  ;;  %v5791_v52 = vld [vmem:[%s7098_s10 + $0x18] sm:$0xff]  }
 0xeec   :  { %v1916_v48 = vpop.permute.xlu1 %1915 }
 0xeed   :  { %5858 = vpow2.f32 %v1690_v45 }
 0xef0   :  { %v1914_v49 = vpop.permute.xlu1 %1913 }
 0xef4   :  { %v1994_v50 = vpop.permute.xlu1 %1993 }
 0xef7   :  { %v5859_v46 = vpop.eup %5858 }
 0xef8   :  { %v1695_v47 = vsel %vm542_vm4, %v5859_v46, 0.0 }
 0xef9   :  { %1696 = vadd.xlane.f32.xlu0 %v1695_v47 }
 0xf0f   :  { %1778 = vrot.lane.b32.xlu0 %v1512_v31, %s5997_s29 }
 0xf13   :  { %1991 = vrot.lane.b32.xlu0 %v1512_v31, %s5999_s18 }
 0xf25   :  { %v1682_v53 = vpop.xlane.xlu1 %1681 }
 0xf26   :  { %v1686_v54 = vsub.f32 %v1678_v43, %v1682_v53 }
 0xf28   :  { %v1688_v55 = vmul.f32 1.442695, %v1686_v54 }
 0xf2a   :  { %5860 = vpow2.f32 %v1688_v55 }
 0xf34   :  { %v5861_v57 = vpop.eup %5860 }
 0xf35   :  { %v1692_v58 = vsel %vm542_vm4, %v5861_v57, 0.0 }
 0xf36   :  { %1693 = vadd.xlane.f32.xlu0 %v1692_v58 }
 0xf4c   :  { %1702 = vrot.lane.b32.xlu0 %v6550_v28, %s5997_s29 }
 0xf50   :  { %2171 = vrot.lane.b32.xlu0 %v1512_v31, %s6000_s13 }
 0xf86   :  { %v1697_v60 = vpop.xlane.xlu0 %1696 }
 0xf87   :  { %5862 = vrcp.f32 %v1697_v60 }
 0xf8a   :  { %v1779_v61 = vpop.permute.xlu0 %1778 }
 0xf8b   :  { %5531 = vmatpush3.msra.mxu1 %v1779_v61 }
 0xf8c   :  { %5541 = vmatprep.subr.mxu1 %v5994_v25 }
 0xf8e   :  { %v1992_v0 = vpop.permute.xlu0 %1991 }
 0xf91   :  { %v5863_v62 = vpop.eup %5862 }
 0xf92   :  { %v1701_v63 = vmul.f32 %v5863_v62, %v5859_v46 }
 0xf94   :  { %5533 = vmatmul.mubr.msk.f32.vlgmr.msra.gmra.mrb[18].mxu1 %vm542_vm4, %v1701_v63 }
 0xf95   :  { %5542 = vmatpush3.xpose.msk.msra.mxu1 %vm374_vm3, %v1916_v48  ;;  %5543 = vmatprep.mubr.msk.f32.mxu1 %vm5995_vm2, %v5994_v25 }
 0xf96   :  { %5546 = vmatprep.subr.mxu1 %v5994_v25 }
 0xf98   :  { %5544 = vmatmul.mubr.msk.f32.vlgmr.msra.gmra.mrb[20].mxu1 %vm374_vm3, %v1914_v49 }
 0xf99   :  { %5547 = vmatpush3.xpose.msk.msra.mxu1 %vm374_vm3, %v1994_v50  ;;  %5548 = vmatprep.mubr.msk.f32.mxu1 %vm5995_vm2, %v5994_v25  ;;  %v5118_v50 = vld [vmem:[%s7099_s11 + $0x1] ss:$0 sm:$0xff] }
 0xf9a   :  { %5556 = vmatprep.subr.mxu1 %v5994_v25 }
 0xf9c   :  { %5549 = vmatmul.mubr.msk.f32.vlgmr.msra.gmra.mrb[22].mxu1 %vm374_vm3, %v1992_v0 }
 0xf9d   :  { %5558 = vmatprep.mubr.msk.f32.mxu1 %vm5995_vm2, %v5994_v25 }
 0xfc3   :  { %v1694_v1 = vpop.xlane.xlu0 %1693 }
 0xfc4   :  { %5864 = vrcp.f32 %v1694_v1 }
 0xfc7   :  { %v1703_v2 = vpop.permute.xlu0 %1702 }
 0xfc8   :  { %5526 = vmatpush3.msra.mxu0 %v1703_v2 }
 0xfc9   :  { %5535 = vmatprep.subr.bf16.mxu0 %v5994_v25 }
 0xfcb   :  { %v2172_v3 = vpop.permute.xlu0 %2171 }
 0xfcc   :  { %5557 = vmatpush3.msra.mxu1 %v2172_v3 }
 0xfcd   :  { %5567 = vmatprep.subr.bf16.mxu1 %v5994_v25 }
 0xfce   :  { %v5865_v4 = vpop.eup %5864 }
 0xfcf   :  { %v1700_v5 = vmul.f32 %v5865_v4, %v5861_v57 }
 0xfd1   :  { %5528 = vmatmul.mubr.msk.f32.vlgmr.msra.gmra.mrb[26].mxu0 %vm542_vm4, %v1700_v5 }
 0xfd2   :  { %5537 = vmatprep.mubr.msk.bf16.mxu0 %vm5995_vm2, %v5994_v25  ;;  %5536 = vmatpush3.bf16.msra.mxu0 %v5790_v6 }
 0xfd3   :  { %5551 = vmatprep.subr.mxu0 %v5994_v25 }
0x1067   :  { %v1850_v8 = vpop.f32.mrb[18].mxu1 }
0x1068   :  { %v5534_v9 = vpop.f32.mrb[19].mxu1 }
0x1069   :  { %v5793_v9 = vld [vmem:[%s7102_s14 + $0x18] sm:$0xff]  }
0x106b   :  { %v1987_v10 = vpop.f32.mrb[20].mxu1 }
0x106c   :  { %v2069_v11 = vmul.f32 0.25, %v1987_v10  ;;  %v5545_v12 = vpop.f32.mrb[21].mxu1 }
0x106e   :  { %v2071_v14 = vadd.f32 %v2069_v11, %v6397_v7 }
0x106f   :  { %v2065_v15 = vpop.f32.mrb[22].mxu1 }
0x1070   :  { %v2070_v59 = vmul.f32 0.25, %v2065_v15  ;;  %v5550_v16 = vpop.f32.mrb[23].mxu1  ;;  %v2073_v17 = vsel %vm542_vm4, %v2071_v14, -inf }
0x1071   :  { %2074 = vmax.xlane.f32.xlu1 %v2073_v17 }
0x1072   :  { %v2072_v18 = vadd.f32 %v2070_v59, %v6400_v13 }
0x1074   :  { %v2076_v19 = vsel %vm542_vm4, %v2072_v18, -inf }
0x1075   :  { %2077 = vmax.xlane.f32.xlu1 %v2076_v19 }
0x10a4   :  { %v1774_v20 = vpop.f32.mrb[26].mxu0 }
0x10a5   :  { %v1854_v21 = vpack.c.bf16 %v1850_v8, %v1774_v20  ;;  %v5529_v56 = vpop.f32.mrb[27].mxu0  ;;  %v5792_v8 = vld [vmem:[%s7102_s14 + $0x10] sm:$0xff]  }
0x10a7   :  { %5538 = vmatmul.mubr.msk.bf16.vlgmr.msra.gmra.mrb[28].mxu0 %vm374_vm3, %v1854_v21 }
0x10a8   :  { %5553 = vmatprep.mubr.msk.f32.mxu0 %vm5995_vm2, %v5994_v25 }
0x10fe   :  { %v2075_v24 = vpop.xlane.xlu1 %2074 }
0x10ff   :  { %v2079_v26 = vsub.f32 %v2071_v14, %v2075_v24 }
0x1101   :  { %v2081_v27 = vmul.f32 1.442695, %v2079_v26 }
0x1102   :  { %v2078_v29 = vpop.xlane.xlu1 %2077 }
0x1103   :  { %5866 = vpow2.f32 %v2081_v27  ;;  %v2080_v30 = vsub.f32 %v2072_v18, %v2078_v29 }
0x1105   :  { %v2083_v31 = vmul.f32 1.442695, %v2080_v30  ;;  %v5129_v30 = vld [vmem:[%s7149_s28 + $0x1] ss:$0 sm:$0xff] }
0x1107   :  { %5868 = vpow2.f32 %v2083_v31 }
0x110d   :  { %v5867_v32 = vpop.eup %5866 }
0x110e   :  { %v2085_v33 = vsel %vm542_vm4, %v5867_v32, 0.0 }
0x110f   :  { %2086 = vadd.xlane.f32.xlu1 %v2085_v33 }
0x1111   :  { %v5869_v34 = vpop.eup %5868 }
0x1112   :  { %v2088_v35 = vsel %vm542_vm4, %v5869_v34, 0.0 }
0x1113   :  { %2089 = vadd.xlane.f32.xlu1 %v2088_v35  ;;  %v5130_v35 = vld [vmem:[%s7150_s17 + $0x1] ss:$0 sm:$0xff] }
0x1124   :  { %2095 = vrot.lane.b32.xlu1 %v6550_v28, %s6000_s13 }
0x117a   :  { %v1898_v36 = vpop.f32.mrb[28].mxu0 }
0x117b   :  { %v5539_v37 = vpop.f32.mrb[29].mxu0  ;;  %v1911_v53 = vadd.f32 %v5118_v50, %v1898_v36 }
0x117c   :  { %v1901_v38 = vpop.f32.mrb[30].mxu0 }
0x117d   :  { %v5540_v39 = vpop.f32.mrb[31].mxu0  ;;  %v1912_v55 = vadd.f32 %v5118_v50, %v1901_v38 }
0x119c   :  { %v2087_v40 = vpop.xlane.xlu1 %2086 }
0x119d   :  { %5870 = vrcp.f32 %v2087_v40  ;;  %v5794_v40 = vld [vmem:[%s7151_s6 + $0x20] sm:$0xff]  }
0x11a0   :  { %v2090_v41 = vpop.xlane.xlu1 %2089 }
0x11a1   :  { %5872 = vrcp.f32 %v2090_v41  ;;  %v5795_v41 = vld [vmem:[%s7151_s6 + $0x28] sm:$0xff]  }
0x11a4   :  { %v2096_v42 = vpop.permute.xlu1 %2095 }
0x11a5   :  { %5552 = vmatpush3.msra.mxu0 %v2096_v42  ;;  %v5796_v42 = vld [vmem:[%s7151_s6 + $0x30] sm:$0xff]  }
0x11a6   :  { %5561 = vmatprep.subr.bf16.mxu0 %v5994_v25 }
0x11a7   :  { %v5871_v43 = vpop.eup %5870 }
0x11a8   :  { %v2093_v44 = vmul.f32 %v5871_v43, %v5867_v32  ;;  %v5797_v43 = vld [vmem:[%s7151_s6 + $0x38] sm:$0xff]  }
0x11aa   :  { %5554 = vmatmul.mubr.msk.f32.vlgmr.msra.gmra.mrb[32].mxu0 %vm542_vm4, %v2093_v44  ;;  %v5136_v44 = vld [vmem:[%s7152_s12 + $0x1] ss:$0 sm:$0xff] }
0x11ab   :  { %v5873_v51 = vpop.eup %5872  ;;  %5563 = vmatprep.mubr.msk.bf16.mxu0 %vm5995_vm2, %v5994_v25  ;;  %5562 = vmatpush3.bf16.msra.mxu0 %v5791_v52 }
0x11ac   :  { %v2094_v28 = vmul.f32 %v5873_v51, %v5869_v34  ;;  %5575 = vmatprep.subr.bf16.mxu0 %v5994_v25 }
0x11ae   :  { %5559 = vmatmul.mubr.msk.f32.vlgmr.msra.gmra.mrb[24].mxu1 %vm542_vm4, %v2094_v28 }
0x11af   :  { %5571 = vmatprep.mubr.msk.bf16.mxu1 %vm5995_vm2, %v5994_v25  ;;  %5568 = vmatpush3.bf16.msra.mxu1 %v5792_v8  ;;  %v5149_v8 = vld [vmem:[%s7153_s15 + $0x1] ss:$0 sm:$0xff] }
0x11b0   :  { %5569 = vmatprep.subr.bf16.mxu1 %v5994_v25 }
0x11b3   :  { %5570 = vmatpush3.bf16.msra.mxu1 %v5793_v9 }
0x11b4   :  { %5587 = vmatprep.subr.bf16.mxu1 %v5994_v25 }
0x127d   :  { %v2167_v45 = vpop.f32.mrb[32].mxu0 }
0x127e   :  { %v5555_v46 = vpop.f32.mrb[33].mxu0 }
0x1281   :  { %v2243_v47 = vpop.f32.mrb[24].mxu1 }
0x1282   :  { %v2247_v48 = vpack.c.bf16 %v2243_v47, %v2167_v45  ;;  %v5560_v49 = vpop.f32.mrb[25].mxu1 }
0x1284   :  { %5564 = vmatmul.mubr.msk.bf16.vlgmr.msra.gmra.mrb[36].mxu0 %vm374_vm3, %v2247_v48 }
0x1285   :  { %5583 = vmatprep.mubr.msk.bf16.mxu0 %vm5995_vm2, %v5994_v25  ;;  %5576 = vmatpush3.bf16.msra.mxu0 %v5794_v40 }
0x1286   :  { %5577 = vmatprep.subr.bf16.mxu0 %v5994_v25 }
0x1289   :  { %5578 = vmatpush3.bf16.msra.mxu0 %v5795_v41 }
0x128a   :  { %5579 = vmatprep.subr.bf16.mxu0 %v5994_v25 }
0x128d   :  { %5580 = vmatpush3.bf16.msra.mxu0 %v5796_v42 }
0x128e   :  { %5581 = vmatprep.subr.bf16.mxu0 %v5994_v25 }
0x1291   :  { %5582 = vmatpush3.bf16.msra.mxu0 %v5797_v43 }
0x1292   :  { %5600 = vmatprep.subr.mxu0 %v5994_v25 }
0x1357   :  { %v2291_v54 = vpop.f32.mrb[36].mxu0 }
0x1358   :  { %v2298_v57 = vadd.f32 %v2291_v54, %v1911_v53  ;;  %v5565_v58 = vpop.f32.mrb[37].mxu0 }
0x1359   :  { %v2294_v60 = vpop.f32.mrb[38].mxu0 }
0x135a   :  { %v2300_v61 = vadd.f32 %v2298_v57, %v6538_v22  ;;  %v2299_v62 = vadd.f32 %v2294_v60, %v1912_v55  ;;  %v5566_v63 = vpop.f32.mrb[39].mxu0 }
0x135c   :  { %v2301_v0 = vadd.f32 %v2299_v62, %v6540_v23  ;;  %v2306_v1 = vsel %vm244_vm1, %v2300_v61, 0.0  ;;  %v2314_v2 = vmul.f32 %v2300_v61, %v2300_v61 }
0x135d   :  { %2307 = vadd.xlane.f32.xlu0 %v2306_v1 }
0x135e   :  { %v2309_v3 = vsel %vm244_vm1, %v2301_v0, 0.0  ;;  %v2316_v4 = vsel %vm244_vm1, %v2314_v2, 0.0  ;;  %v2315_v5 = vmul.f32 %v2301_v0, %v2301_v0 }
0x135f   :  { %2310 = vadd.xlane.f32.xlu1 %v2309_v3 }
0x1360   :  { %v2319_v6 = vsel %vm244_vm1, %v2315_v5, 0.0 }
0x1361   :  { %2317 = vadd.xlane.f32.xlu0 %v2316_v4 }
0x1365   :  { %2320 = vadd.xlane.f32.xlu0 %v2319_v6 }
0x13ea   :  { %v2308_v10 = vpop.xlane.xlu0 %2307 }
0x13eb   :  { %v2312_v11 = vmul.f32 0.03125, %v2308_v10 }
0x13ec   :  { %v2311_v12 = vpop.xlane.xlu1 %2310 }
0x13ed   :  { %v2324_v15 = vmul.f32 %v2312_v11, %v2312_v11  ;;  %v2313_v59 = vmul.f32 0.03125, %v2311_v12  ;;  %v2328_v26 = vsub.f32 %v2300_v61, %v2312_v11 }
0x13ee   :  { %v2318_v14 = vpop.xlane.xlu0 %2317 }
0x13ef   :  { %v2322_v16 = vmul.f32 0.03125, %v2318_v14  ;;  %v2325_v19 = vmul.f32 %v2313_v59, %v2313_v59  ;;  %v2329_v31 = vsub.f32 %v2301_v0, %v2313_v59 }
0x13f1   :  { %v2326_v17 = vsub.f32 %v2322_v16, %v2324_v15 }
0x13f2   :  { %v2321_v18 = vpop.xlane.xlu0 %2320 }
0x13f3   :  { %v2330_v20 = vadd.f32 1e-12, %v2326_v17  ;;  %v2323_v21 = vmul.f32 0.03125, %v2321_v18 }
0x13f5   :  { %5874 = vrsqrt.f32 %v2330_v20  ;;  %v2327_v56 = vsub.f32 %v2323_v21, %v2325_v19 }
0x13f7   :  { %v2331_v24 = vadd.f32 1e-12, %v2327_v56 }
0x13f9   :  { %5876 = vrsqrt.f32 %v2331_v24  ;;  %v5798_v24 = vld [vmem:[%s7096_s8 + $0x20] sm:$0xff]  }
0x13ff   :  { %v5875_v27 = vpop.eup %5874 }
0x1400   :  { %v2334_v29 = vmul.f32 %v5875_v27, %v2328_v26  ;;  %v5799_v26 = vld [vmem:[%s7096_s8 + $0x28] sm:$0xff]  }
0x1402   :  { %v2342_v34 = vmul.f32 %v5129_v30, %v2334_v29 }
0x1403   :  { %v5877_v32 = vpop.eup %5876 }
0x1404   :  { %v2335_v33 = vmul.f32 %v5877_v32, %v2329_v31  ;;  %v2350_v37 = vadd.f32 %v5130_v35, %v2342_v34 }
0x1406   :  { %v2343_v36 = vmul.f32 %v5129_v30, %v2335_v33 }
0x1408   :  { %v2351_v38 = vadd.f32 %v5130_v35, %v2343_v36 }
0x140a   :  { %v2352_v39 = vpack.c.bf16 %v2351_v38, %v2350_v37 }
0x140c   :  { %5572 = vmatmul.mubr.msk.bf16.vlgmr.msra.gmra.mrb[28].mxu1 %vm244_vm1, %v2352_v39 }
0x140d   :  { %5591 = vmatprep.mubr.msk.bf16.mxu1 %vm5995_vm2, %v5994_v25  ;;  %5588 = vmatpush3.bf16.msra.mxu1 %v5798_v24 }
0x140e   :  { %5589 = vmatprep.subr.bf16.mxu1 %v5994_v25 }
0x1411   :  { %5590 = vmatpush3.bf16.msra.mxu1 %v5799_v26 }
0x1412   :  { %5595 = vmatprep.subr.mxu1 %v5994_v25 }
0x14df   :  { %v2415_v51 = vpop.f32.mrb[28].mxu1 }
0x14e0   :  { %v2416_v28 = vadd.f32 %v5136_v44, %v2415_v51  ;;  %v5573_v52 = vpop.f32.mrb[29].mxu1 }
0x14e1   :  { %v2418_v45 = vpop.f32.mrb[30].mxu1 }
0x14e2   :  { %v2424_v46 = vmul.f32 0.044715, %v2416_v28  ;;  %v2419_v47 = vadd.f32 %v5136_v44, %v2418_v45  ;;  %v5574_v48 = vpop.f32.mrb[31].mxu1  ;;  %v2422_v1 = vmul.f32 0.5, %v2416_v28  ;;  %v5157_v44 = vld [vmem:[%s7154_s5 + $0x1] ss:$0 sm:$0xff] }
0x14e4   :  { %v2426_v49 = vmul.f32 %v2424_v46, %v2416_v28  ;;  %v2425_v50 = vmul.f32 0.044715, %v2419_v47  ;;  %v2423_v2 = vmul.f32 0.5, %v2419_v47 }
0x14e6   :  { %v2428_v53 = vmul.f32 %v2426_v49, %v2416_v28  ;;  %v2427_v54 = vmul.f32 %v2425_v50, %v2419_v47 }
0x14e8   :  { %v2430_v55 = vadd.f32 %v2428_v53, %v2416_v28  ;;  %v2429_v57 = vmul.f32 %v2427_v54, %v2419_v47  ;;  %v5164_v54 = vld [vmem:[%s7097_s9 + $0x2] ss:$0 sm:$0xff] }
0x14ea   :  { %v2432_v58 = vmul.f32 0.7978846, %v2430_v55  ;;  %v2431_v60 = vadd.f32 %v2429_v57, %v2419_v47  ;;  %v5158_v47 = vld [vmem:[%s7155_s26 + $0x1] ss:$0 sm:$0xff] }
0x14ec   :  { %5878 = vtanh.f32 %v2432_v58  ;;  %v2433_v61 = vmul.f32 0.7978846, %v2431_v60 }
0x14ee   :  { %5880 = vtanh.f32 %v2433_v61 }
0x14f6   :  { %v5879_v62 = vpop.eup %5878 }
0x14f7   :  { %v2436_v63 = vadd.f32 1.0, %v5879_v62 }
0x14f8   :  { %v5881_v0 = vpop.eup %5880 }
0x14f9   :  { %v2437_v3 = vadd.f32 1.0, %v5881_v0  ;;  %v2438_v4 = vmul.f32 %v2436_v63, %v2422_v1 }
0x14fb   :  { %v2439_v5 = vmul.f32 %v2437_v3, %v2423_v2 }
0x14fd   :  { %v2440_v6 = vpack.c.bf16 %v2439_v5, %v2438_v4 }
0x14ff   :  { %5584 = vmatmul.mubr.msk.bf16.vlgmr.msra.gmra.mrb[40].mxu0 %vm1339_vm5, %v2440_v6 }
0x1500   :  { %5602 = vmatprep.mubr.msk.f32.mxu0 %vm5995_vm2, %v5994_v25 }
0x15d2   :  { %v2519_v9 = vpop.f32.mrb[40].mxu0 }
0x15d3   :  { %v2520_v10 = vadd.f32 %v5149_v8, %v2519_v9  ;;  %v5585_v11 = vpop.f32.mrb[41].mxu0 }
0x15d4   :  { %v2522_v12 = vpop.f32.mrb[42].mxu0 }
0x15d5   :  { %v2526_v14 = vadd.f32 %v2520_v10, %v2350_v37  ;;  %v2523_v15 = vadd.f32 %v5149_v8, %v2522_v12  ;;  %v5586_v59 = vpop.f32.mrb[43].mxu0 }
0x15d7   :  { %v2527_v16 = vadd.f32 %v2523_v15, %v2351_v38  ;;  %v2532_v17 = vsel %vm244_vm1, %v2526_v14, 0.0  ;;  %v2540_v21 = vmul.f32 %v2526_v14, %v2526_v14 }
0x15d8   :  { %2533 = vadd.xlane.f32.xlu0 %v2532_v17 }
0x15d9   :  { %v2541_v18 = vmul.f32 %v2527_v16, %v2527_v16  ;;  %v2535_v20 = vsel %vm244_vm1, %v2527_v16, 0.0  ;;  %v2542_v56 = vsel %vm244_vm1, %v2540_v21, 0.0 }
0x15db   :  { %v2545_v19 = vsel %vm244_vm1, %v2541_v18, 0.0 }
0x15dc   :  { %2546 = vadd.xlane.f32.xlu1 %v2545_v19  ;;  %2536 = vadd.xlane.f32.xlu0 %v2535_v20 }
0x15e0   :  { %2543 = vadd.xlane.f32.xlu0 %v2542_v56 }
0x1665   :  { %v2534_v27 = vpop.xlane.xlu0 %2533 }
0x1666   :  { %v2538_v31 = vmul.f32 0.03125, %v2534_v27 }
0x1668   :  { %v2550_v36 = vmul.f32 %v2538_v31, %v2538_v31  ;;  %v2554_v51 = vsub.f32 %v2526_v14, %v2538_v31 }
0x1669   :  { %v2547_v29 = vpop.xlane.xlu1 %2546  ;;  %v2537_v30 = vpop.xlane.xlu0 %2536 }
0x166a   :  { %v2539_v32 = vmul.f32 0.03125, %v2537_v30  ;;  %v2549_v33 = vmul.f32 0.03125, %v2547_v29 }
0x166c   :  { %v2551_v34 = vmul.f32 %v2539_v32, %v2539_v32  ;;  %v2555_v42 = vsub.f32 %v2527_v16, %v2539_v32 }
0x166d   :  { %v2544_v35 = vpop.xlane.xlu0 %2543 }
0x166e   :  { %v2553_v37 = vsub.f32 %v2549_v33, %v2551_v34  ;;  %v2548_v38 = vmul.f32 0.03125, %v2544_v35 }
0x1670   :  { %v2557_v39 = vadd.f32 1e-12, %v2553_v37  ;;  %v2552_v40 = vsub.f32 %v2548_v38, %v2550_v36  ;;  %v5800_v38 = vld [vmem:[%s7098_s10 + $0x20] sm:$0xff]  }
0x1672   :  { %5882 = vrsqrt.f32 %v2557_v39  ;;  %v2556_v41 = vadd.f32 1e-12, %v2552_v40 }
0x1674   :  { %5884 = vrsqrt.f32 %v2556_v41 }
0x167c   :  { %v5883_v43 = vpop.eup %5882 }
0x167d   :  { %v2561_v28 = vmul.f32 %v5883_v43, %v2555_v42 }
0x167e   :  { %v5885_v52 = vpop.eup %5884 }
0x167f   :  { %v2569_v45 = vmul.f32 %v5157_v44, %v2561_v28  ;;  %v2560_v46 = vmul.f32 %v5885_v52, %v2554_v51 }
0x1681   :  { %v2568_v48 = vmul.f32 %v5157_v44, %v2560_v46  ;;  %v6699_v49 = vadd.f32 %v5158_v47, %v2569_v45 }
0x1683   :  { %v6701_v50 = vadd.f32 %v5158_v47, %v2568_v48 }
0x1685   :  { %v2589_v53 = vpack.c.bf16 %v6699_v49, %v6701_v50 }
0x1687   :  { %5592 = vmatmul.mubr.msk.bf16.vlgmr.msra.gmra.mrb[32].mxu1 %vm244_vm1, %v2589_v53 }
0x1688   :  { %5597 = vmatprep.mubr.msk.f32.mxu1 %vm5995_vm2, %v5994_v25 }
0x175a   :  { %v2652_v55 = vpop.f32.mrb[32].mxu1 }
0x175b   :  { %v6711_v57 = vadd.f32 %v5164_v54, %v2652_v55  ;;  %v5593_v58 = vpop.f32.mrb[33].mxu1 }
0x175c   :  { %v2655_v60 = vpop.f32.mrb[34].mxu1 }
0x175d   :  { %v2656_v61 = vadd.f32 %v5164_v54, %v2655_v60  ;;  %2667 = vrot.lane.b32.xlu1 %v6711_v57, %s5996_s16  ;;  %v5594_v62 = vpop.f32.mrb[35].mxu1 }
0x175f   :  { %2744 = vrot.lane.b32.xlu0 %v2656_v61, %s5996_s16 }
0x17cf   :  { %v2668_v63 = vpop.permute.xlu1 %2667 }
0x17d0   :  { %5596 = vmatpush3.xpose.msk.msra.mxu1 %vm374_vm3, %v2668_v63 }
0x17d1   :  { %v2745_v0 = vpop.permute.xlu0 %2744  ;;  %5605 = vmatprep.subr.mxu1 %v5994_v25 }
0x17d2   :  { %5601 = vmatpush3.xpose.msk.msra.mxu0 %vm374_vm3, %v2745_v0 }
0x17d3   :  { %5598 = vmatmul.mubr.msk.f32.vlgmr.msra.gmra.mrb[26].mxu1 %vm374_vm3, %v6711_v57  ;;  %5610 = vmatprep.subr.mxu0 %v5994_v25 }
0x17d4   :  { %5607 = vmatprep.mubr.msk.f32.mxu1 %vm5995_vm2, %v5994_v25 }
0x17d5   :  { %5603 = vmatmul.mubr.msk.f32.vlgmr.msra.gmra.mrb[34].mxu0 %vm374_vm3, %v2656_v61 }
0x17d6   :  { %5612 = vmatprep.mubr.msk.f32.mxu0 %vm5995_vm2, %v5994_v25 }
0x18a6   :  { %v2739_v1 = vpop.f32.mrb[26].mxu1 }
0x18a7   :  { %v5599_v2 = vpop.f32.mrb[27].mxu1  ;;  %v2820_v9 = vmul.f32 0.25, %v2739_v1 }
0x18a8   :  { %v2816_v3 = vpop.f32.mrb[34].mxu0 }
0x18a9   :  { %v2821_v4 = vmul.f32 0.25, %v2816_v3  ;;  %v5604_v5 = vpop.f32.mrb[35].mxu0  ;;  %v2822_v10 = vadd.f32 %v2820_v9, %v6397_v7 }
0x18ab   :  { %v2823_v6 = vadd.f32 %v2821_v4, %v6400_v13  ;;  %v2824_v11 = vsel %vm542_vm4, %v2822_v10, -inf }
0x18ad   :  { %v2827_v8 = vsel %vm542_vm4, %v2823_v6, -inf }
0x18ae   :  { %2828 = vmax.xlane.f32.xlu1 %v2827_v8 }
0x18bf   :  { %3059 = vrot.lane.b32.xlu1 %v6711_v57, %s5998_s30 }
0x18c3   :  { %3057 = vrot.lane.b32.xlu1 %v6711_v57, %s5999_s18 }
0x18c7   :  { %3137 = vrot.lane.b32.xlu1 %v2656_v61, %s5998_s30 }
0x18eb   :  { %2825 = vmax.xlane.f32.xlu1 %v2824_v11 }
0x193b   :  { %v2829_v12 = vpop.xlane.xlu1 %2828 }
0x193c   :  { %v2831_v14 = vsub.f32 %v2823_v6, %v2829_v12 }
0x193e   :  { %v2834_v15 = vmul.f32 1.442695, %v2831_v14 }
0x193f   :  { %v3060_v17 = vpop.permute.xlu1 %3059 }
0x1940   :  { %5886 = vpow2.f32 %v2834_v15 }
0x1943   :  { %v3058_v18 = vpop.permute.xlu1 %3057 }
0x1947   :  { %v3138_v19 = vpop.permute.xlu1 %3137 }
0x194a   :  { %v5887_v59 = vpop.eup %5886 }
0x194b   :  { %v2839_v16 = vsel %vm542_vm4, %v5887_v59, 0.0 }
0x194c   :  { %2840 = vadd.xlane.f32.xlu0 %v2839_v16 }
0x1962   :  { %2922 = vrot.lane.b32.xlu0 %v2656_v61, %s5997_s29 }
0x1966   :  { %3135 = vrot.lane.b32.xlu0 %v2656_v61, %s5999_s18 }
0x1978   :  { %v2826_v20 = vpop.xlane.xlu1 %2825 }
0x1979   :  { %v2830_v21 = vsub.f32 %v2822_v10, %v2826_v20 }
0x197b   :  { %v2832_v56 = vmul.f32 1.442695, %v2830_v21  ;;  %v5181_v21 = vld [vmem:[%s7099_s11 + $0x2] ss:$0 sm:$0xff] }
0x197d   :  { %5888 = vpow2.f32 %v2832_v56 }
0x1987   :  { %v5889_v24 = vpop.eup %5888 }
0x1988   :  { %v2836_v26 = vsel %vm542_vm4, %v5889_v24, 0.0 }
0x1989   :  { %2837 = vadd.xlane.f32.xlu0 %v2836_v26 }
0x199f   :  { %2846 = vrot.lane.b32.xlu0 %v6711_v57, %s5997_s29 }
0x19a3   :  { %3315 = vrot.lane.b32.xlu0 %v2656_v61, %s6000_s13 }
0x19d9   :  { %v2841_v27 = vpop.xlane.xlu0 %2840 }
0x19da   :  { %5890 = vrcp.f32 %v2841_v27 }
0x19dd   :  { %v2923_v29 = vpop.permute.xlu0 %2922 }
0x19de   :  { %5611 = vmatpush3.msra.mxu0 %v2923_v29 }
0x19df   :  { %5621 = vmatprep.subr.mxu0 %v5994_v25 }
0x19e1   :  { %v3136_v32 = vpop.permute.xlu0 %3135 }
0x19e4   :  { %v5891_v30 = vpop.eup %5890 }
0x19e5   :  { %v2845_v31 = vmul.f32 %v5891_v30, %v5887_v59  ;;  %v5801_v59 = vld [vmem:[%s7098_s10 + $0x28] sm:$0xff]  }
0x19e7   :  { %5613 = vmatmul.mubr.msk.f32.vlgmr.msra.gmra.mrb[44].mxu0 %vm542_vm4, %v2845_v31 }
0x19e8   :  { %5622 = vmatpush3.xpose.msk.msra.mxu0 %vm374_vm3, %v3060_v17  ;;  %5623 = vmatprep.mubr.msk.f32.mxu0 %vm5995_vm2, %v5994_v25 }
0x19e9   :  { %5626 = vmatprep.subr.mxu0 %v5994_v25 }
0x19eb   :  { %5624 = vmatmul.mubr.msk.f32.vlgmr.msra.gmra.mrb[46].mxu0 %vm374_vm3, %v3058_v18 }
0x19ec   :  { %5627 = vmatpush3.xpose.msk.msra.mxu0 %vm374_vm3, %v3138_v19  ;;  %5628 = vmatprep.mubr.msk.f32.mxu0 %vm5995_vm2, %v5994_v25 }
0x19ed   :  { %5636 = vmatprep.subr.mxu0 %v5994_v25 }
0x19ef   :  { %5629 = vmatmul.mubr.msk.f32.vlgmr.msra.gmra.mrb[48].mxu0 %vm374_vm3, %v3136_v32 }
0x19f0   :  { %5638 = vmatprep.mubr.msk.f32.mxu0 %vm5995_vm2, %v5994_v25 }
0x1a16   :  { %v2838_v33 = vpop.xlane.xlu0 %2837 }
0x1a17   :  { %5892 = vrcp.f32 %v2838_v33 }
0x1a1a   :  { %v2847_v34 = vpop.permute.xlu0 %2846 }
0x1a1b   :  { %5606 = vmatpush3.msra.mxu1 %v2847_v34 }
0x1a1c   :  { %5615 = vmatprep.subr.bf16.mxu1 %v5994_v25 }
0x1a1e   :  { %v3316_v35 = vpop.permute.xlu0 %3315 }
0x1a1f   :  { %5637 = vmatpush3.msra.mxu0 %v3316_v35 }
0x1a20   :  { %5647 = vmatprep.subr.bf16.mxu0 %v5994_v25 }
0x1a21   :  { %v5893_v36 = vpop.eup %5892 }
0x1a22   :  { %v2844_v37 = vmul.f32 %v5893_v36, %v5889_v24 }
0x1a24   :  { %5608 = vmatmul.mubr.msk.f32.vlgmr.msra.gmra.mrb[36].mxu1 %vm542_vm4, %v2844_v37 }
0x1a25   :  { %5617 = vmatprep.mubr.msk.bf16.mxu1 %vm5995_vm2, %v5994_v25  ;;  %5616 = vmatpush3.bf16.msra.mxu1 %v5800_v38 }
0x1a26   :  { %5631 = vmatprep.subr.mxu1 %v5994_v25 }
0x1aba   :  { %v2994_v39 = vpop.f32.mrb[44].mxu0 }
0x1abb   :  { %v5614_v40 = vpop.f32.mrb[45].mxu0 }
0x1abe   :  { %v3131_v41 = vpop.f32.mrb[46].mxu0 }
0x1abf   :  { %v3213_v42 = vmul.f32 0.25, %v3131_v41  ;;  %v5625_v43 = vpop.f32.mrb[47].mxu0  ;;  %v5802_v41 = vld [vmem:[%s7102_s14 + $0x20] sm:$0xff]  }
0x1ac1   :  { %v3215_v44 = vadd.f32 %v3213_v42, %v6397_v7  ;;  %v5803_v42 = vld [vmem:[%s7102_s14 + $0x28] sm:$0xff]  }
0x1ac2   :  { %v3209_v51 = vpop.f32.mrb[48].mxu0 }
0x1ac3   :  { %v3214_v28 = vmul.f32 0.25, %v3209_v51  ;;  %v5630_v52 = vpop.f32.mrb[49].mxu0  ;;  %v3217_v45 = vsel %vm542_vm4, %v3215_v44, -inf }
0x1ac4   :  { %3218 = vmax.xlane.f32.xlu1 %v3217_v45 }
0x1ac5   :  { %v3216_v46 = vadd.f32 %v3214_v28, %v6400_v13 }
0x1ac7   :  { %v3220_v47 = vsel %vm542_vm4, %v3216_v46, -inf }
0x1ac8   :  { %3221 = vmax.xlane.f32.xlu1 %v3220_v47 }
0x1af7   :  { %v2918_v48 = vpop.f32.mrb[36].mxu1 }
0x1af8   :  { %v2998_v53 = vpack.c.bf16 %v2994_v39, %v2918_v48  ;;  %v5609_v54 = vpop.f32.mrb[37].mxu1 }
0x1afa   :  { %5618 = vmatmul.mubr.msk.bf16.vlgmr.msra.gmra.mrb[40].mxu1 %vm374_vm3, %v2998_v53 }
0x1afb   :  { %5633 = vmatprep.mubr.msk.f32.mxu1 %vm5995_vm2, %v5994_v25 }
0x1b51   :  { %v3219_v55 = vpop.xlane.xlu1 %3218 }
0x1b52   :  { %v3223_v58 = vsub.f32 %v3215_v44, %v3219_v55 }
0x1b54   :  { %v3225_v60 = vmul.f32 1.442695, %v3223_v58 }
0x1b55   :  { %v3222_v61 = vpop.xlane.xlu1 %3221 }
0x1b56   :  { %5894 = vpow2.f32 %v3225_v60  ;;  %v3224_v62 = vsub.f32 %v3216_v46, %v3222_v61 }
0x1b58   :  { %v3227_v63 = vmul.f32 1.442695, %v3224_v62 }
0x1b5a   :  { %5896 = vpow2.f32 %v3227_v63 }
0x1b60   :  { %v5895_v0 = vpop.eup %5894 }
0x1b61   :  { %v3229_v1 = vsel %vm542_vm4, %v5895_v0, 0.0 }
0x1b62   :  { %3230 = vadd.xlane.f32.xlu1 %v3229_v1 }
0x1b64   :  { %v5897_v2 = vpop.eup %5896 }
0x1b65   :  { %v3232_v3 = vsel %vm542_vm4, %v5897_v2, 0.0 }
0x1b66   :  { %3233 = vadd.xlane.f32.xlu1 %v3232_v3 }
0x1b77   :  { %3239 = vrot.lane.b32.xlu1 %v6711_v57, %s6000_s13 }
0x1bcd   :  { %v3042_v4 = vpop.f32.mrb[40].mxu1 }
0x1bce   :  { %v5619_v5 = vpop.f32.mrb[41].mxu1  ;;  %v3055_v56 = vadd.f32 %v5181_v21, %v3042_v4 }
0x1bcf   :  { %v3045_v6 = vpop.f32.mrb[42].mxu1  ;;  %v5193_v5 = vld [vmem:[%s7150_s17 + $0x2] ss:$0 sm:$0xff] }
0x1bd0   :  { %v5620_v8 = vpop.f32.mrb[43].mxu1  ;;  %v3056_v26 = vadd.f32 %v5181_v21, %v3045_v6 }
0x1bef   :  { %v3231_v9 = vpop.xlane.xlu1 %3230 }
0x1bf0   :  { %5898 = vrcp.f32 %v3231_v9 }
0x1bf3   :  { %v3234_v10 = vpop.xlane.xlu1 %3233 }
0x1bf4   :  { %5900 = vrcp.f32 %v3234_v10 }
0x1bf7   :  { %v3240_v11 = vpop.permute.xlu1 %3239 }
0x1bf8   :  { %5632 = vmatpush3.msra.mxu1 %v3240_v11  ;;  %v5804_v11 = vld [vmem:[%s7151_s6 + $0x40] sm:$0xff]  }
0x1bf9   :  { %5641 = vmatprep.subr.bf16.mxu1 %v5994_v25 }
0x1bfa   :  { %v5899_v12 = vpop.eup %5898 }
0x1bfb   :  { %v3237_v14 = vmul.f32 %v5899_v12, %v5895_v0  ;;  %v5192_v0 = vld [vmem:[%s7149_s28 + $0x2] ss:$0 sm:$0xff]  ;;  %v5805_v12 = vld [vmem:[%s7151_s6 + $0x48] sm:$0xff]  }
0x1bfd   :  { %5634 = vmatmul.mubr.msk.f32.vlgmr.msra.gmra.mrb[38].mxu1 %vm542_vm4, %v3237_v14  ;;  %v5806_v14 = vld [vmem:[%s7151_s6 + $0x50] sm:$0xff]  }
0x1bfe   :  { %v5901_v15 = vpop.eup %5900  ;;  %5643 = vmatprep.mubr.msk.bf16.mxu1 %vm5995_vm2, %v5994_v25  ;;  %5642 = vmatpush3.bf16.msra.mxu1 %v5801_v59 }
0x1bff   :  { %v3238_v57 = vmul.f32 %v5901_v15, %v5897_v2  ;;  %5655 = vmatprep.subr.bf16.mxu1 %v5994_v25  ;;  %v5807_v15 = vld [vmem:[%s7151_s6 + $0x58] sm:$0xff]  }
0x1c01   :  { %5639 = vmatmul.mubr.msk.f32.vlgmr.msra.gmra.mrb[50].mxu0 %vm542_vm4, %v3238_v57  ;;  %v5199_v57 = vld [vmem:[%s7152_s12 + $0x2] ss:$0 sm:$0xff] }
0x1c02   :  { %5651 = vmatprep.mubr.msk.bf16.mxu0 %vm5995_vm2, %v5994_v25  ;;  %5648 = vmatpush3.bf16.msra.mxu0 %v5802_v41 }
0x1c03   :  { %5649 = vmatprep.subr.bf16.mxu0 %v5994_v25 }
0x1c06   :  { %5650 = vmatpush3.bf16.msra.mxu0 %v5803_v42 }
0x1c07   :  { %5667 = vmatprep.subr.bf16.mxu0 %v5994_v25 }
0x1cd0   :  { %v3311_v16 = vpop.f32.mrb[38].mxu1 }
0x1cd1   :  { %v5635_v17 = vpop.f32.mrb[39].mxu1 }
0x1cd4   :  { %v3387_v18 = vpop.f32.mrb[50].mxu0 }
0x1cd5   :  { %v3391_v19 = vpack.c.bf16 %v3387_v18, %v3311_v16  ;;  %v5640_v20 = vpop.f32.mrb[51].mxu0 }
0x1cd7   :  { %5644 = vmatmul.mubr.msk.bf16.vlgmr.msra.gmra.mrb[44].mxu1 %vm374_vm3, %v3391_v19 }
0x1cd8   :  { %5663 = vmatprep.mubr.msk.bf16.mxu1 %vm5995_vm2, %v5994_v25  ;;  %5656 = vmatpush3.bf16.msra.mxu1 %v5804_v11 }
0x1cd9   :  { %5657 = vmatprep.subr.bf16.mxu1 %v5994_v25 }
0x1cdc   :  { %5658 = vmatpush3.bf16.msra.mxu1 %v5805_v12 }
0x1cdd   :  { %5659 = vmatprep.subr.bf16.mxu1 %v5994_v25 }
0x1ce0   :  { %5660 = vmatpush3.bf16.msra.mxu1 %v5806_v14 }
0x1ce1   :  { %5661 = vmatprep.subr.bf16.mxu1 %v5994_v25 }
0x1ce4   :  { %5662 = vmatpush3.bf16.msra.mxu1 %v5807_v15 }
0x1ce5   :  { %5680 = vmatprep.subr.mxu1 %v5994_v25 }
0x1daa   :  { %v3435_v24 = vpop.f32.mrb[44].mxu1 }
0x1dab   :  { %v3442_v27 = vadd.f32 %v3435_v24, %v3055_v56  ;;  %v5645_v29 = vpop.f32.mrb[45].mxu1 }
0x1dac   :  { %v3438_v30 = vpop.f32.mrb[46].mxu1 }
0x1dad   :  { %v3444_v31 = vadd.f32 %v3442_v27, %v6701_v50  ;;  %v3443_v32 = vadd.f32 %v3438_v30, %v3056_v26  ;;  %v5646_v33 = vpop.f32.mrb[47].mxu1 }
0x1daf   :  { %v3445_v34 = vadd.f32 %v3443_v32, %v6699_v49  ;;  %v3450_v35 = vsel %vm244_vm1, %v3444_v31, 0.0  ;;  %v3458_v36 = vmul.f32 %v3444_v31, %v3444_v31 }
0x1db0   :  { %3451 = vadd.xlane.f32.xlu0 %v3450_v35 }
0x1db1   :  { %v3453_v37 = vsel %vm244_vm1, %v3445_v34, 0.0  ;;  %v3460_v38 = vsel %vm244_vm1, %v3458_v36, 0.0  ;;  %v3459_v39 = vmul.f32 %v3445_v34, %v3445_v34 }
0x1db2   :  { %3454 = vadd.xlane.f32.xlu1 %v3453_v37 }
0x1db3   :  { %v3463_v40 = vsel %vm244_vm1, %v3459_v39, 0.0 }
0x1db4   :  { %3461 = vadd.xlane.f32.xlu0 %v3460_v38 }
0x1db8   :  { %3464 = vadd.xlane.f32.xlu0 %v3463_v40 }
0x1e3d   :  { %v3452_v43 = vpop.xlane.xlu0 %3451 }
0x1e3e   :  { %v3456_v44 = vmul.f32 0.03125, %v3452_v43  ;;  %v5212_v43 = vld [vmem:[%s7153_s15 + $0x2] ss:$0 sm:$0xff] }
0x1e3f   :  { %v3455_v51 = vpop.xlane.xlu1 %3454 }
0x1e40   :  { %v3468_v52 = vmul.f32 %v3456_v44, %v3456_v44  ;;  %v3457_v45 = vmul.f32 0.03125, %v3455_v51  ;;  %v3472_v61 = vsub.f32 %v3444_v31, %v3456_v44 }
0x1e41   :  { %v3462_v28 = vpop.xlane.xlu0 %3461 }
0x1e42   :  { %v3466_v46 = vmul.f32 0.03125, %v3462_v28  ;;  %v3469_v53 = vmul.f32 %v3457_v45, %v3457_v45  ;;  %v3473_v1 = vsub.f32 %v3445_v34, %v3457_v45 }
0x1e44   :  { %v3470_v47 = vsub.f32 %v3466_v46, %v3468_v52 }
0x1e45   :  { %v3465_v48 = vpop.xlane.xlu0 %3464 }
0x1e46   :  { %v3474_v54 = vadd.f32 1e-12, %v3470_v47  ;;  %v3467_v55 = vmul.f32 0.03125, %v3465_v48 }
0x1e48   :  { %5902 = vrsqrt.f32 %v3474_v54  ;;  %v3471_v58 = vsub.f32 %v3467_v55, %v3469_v53 }
0x1e4a   :  { %v3475_v60 = vadd.f32 1e-12, %v3471_v58 }
0x1e4c   :  { %5904 = vrsqrt.f32 %v3475_v60 }
0x1e52   :  { %v5903_v62 = vpop.eup %5902 }
0x1e53   :  { %v3478_v63 = vmul.f32 %v5903_v62, %v3472_v61  ;;  %v5808_v62 = vld [vmem:[%s7096_s8 + $0x30] sm:$0xff]  }
0x1e55   :  { %v3486_v4 = vmul.f32 %v5192_v0, %v3478_v63  ;;  %v5809_v63 = vld [vmem:[%s7096_s8 + $0x38] sm:$0xff]  }
0x1e56   :  { %v5905_v2 = vpop.eup %5904 }
0x1e57   :  { %v3479_v3 = vmul.f32 %v5905_v2, %v3473_v1  ;;  %v3494_v8 = vadd.f32 %v5193_v5, %v3486_v4 }
0x1e59   :  { %v3487_v6 = vmul.f32 %v5192_v0, %v3479_v3 }
0x1e5b   :  { %v3495_v9 = vadd.f32 %v5193_v5, %v3487_v6 }
0x1e5d   :  { %v3496_v10 = vpack.c.bf16 %v3495_v9, %v3494_v8 }
0x1e5f   :  { %5652 = vmatmul.mubr.msk.bf16.vlgmr.msra.gmra.mrb[52].mxu0 %vm244_vm1, %v3496_v10 }
0x1e60   :  { %5671 = vmatprep.mubr.msk.bf16.mxu0 %vm5995_vm2, %v5994_v25  ;;  %5668 = vmatpush3.bf16.msra.mxu0 %v5808_v62 }
0x1e61   :  { %5669 = vmatprep.subr.bf16.mxu0 %v5994_v25 }
0x1e64   :  { %5670 = vmatpush3.bf16.msra.mxu0 %v5809_v63 }
0x1e65   :  { %5675 = vmatprep.subr.mxu0 %v5994_v25 }
0x1f32   :  { %v3559_v59 = vpop.f32.mrb[52].mxu0 }
0x1f33   :  { %v3560_v16 = vadd.f32 %v5199_v57, %v3559_v59  ;;  %v5653_v17 = vpop.f32.mrb[53].mxu0 }
0x1f34   :  { %v3562_v18 = vpop.f32.mrb[54].mxu0 }
0x1f35   :  { %v3568_v19 = vmul.f32 0.044715, %v3560_v16  ;;  %v3563_v20 = vadd.f32 %v5199_v57, %v3562_v18  ;;  %v5654_v21 = vpop.f32.mrb[55].mxu0  ;;  %v3566_v37 = vmul.f32 0.5, %v3560_v16 }
0x1f37   :  { %v3570_v56 = vmul.f32 %v3568_v19, %v3560_v16  ;;  %v3569_v24 = vmul.f32 0.044715, %v3563_v20  ;;  %v3567_v38 = vmul.f32 0.5, %v3563_v20 }
0x1f39   :  { %v3572_v26 = vmul.f32 %v3570_v56, %v3560_v16  ;;  %v3571_v27 = vmul.f32 %v3569_v24, %v3563_v20  ;;  %v5221_v56 = vld [vmem:[%s7155_s26 + $0x2] ss:$0 sm:$0xff] }
0x1f3b   :  { %v3574_v29 = vadd.f32 %v3572_v26, %v3560_v16  ;;  %v3573_v30 = vmul.f32 %v3571_v27, %v3563_v20  ;;  %v5220_v16 = vld [vmem:[%s7154_s5 + $0x2] ss:$0 sm:$0xff] }
0x1f3d   :  { %v3576_v31 = vmul.f32 0.7978846, %v3574_v29  ;;  %v3575_v32 = vadd.f32 %v3573_v30, %v3563_v20  ;;  %v5227_v30 = vld [vmem:[%s7097_s9 + $0x3] ss:$0 sm:$0xff] }
0x1f3f   :  { %5906 = vtanh.f32 %v3576_v31  ;;  %v3577_v33 = vmul.f32 0.7978846, %v3575_v32 }
0x1f41   :  { %5908 = vtanh.f32 %v3577_v33 }
0x1f49   :  { %v5907_v34 = vpop.eup %5906 }
0x1f4a   :  { %v3580_v35 = vadd.f32 1.0, %v5907_v34 }
0x1f4b   :  { %v5909_v36 = vpop.eup %5908 }
0x1f4c   :  { %v3581_v39 = vadd.f32 1.0, %v5909_v36  ;;  %v3582_v40 = vmul.f32 %v3580_v35, %v3566_v37 }
0x1f4e   :  { %v3583_v41 = vmul.f32 %v3581_v39, %v3567_v38 }
0x1f50   :  { %v3584_v42 = vpack.c.bf16 %v3583_v41, %v3582_v40 }
0x1f52   :  { %5664 = vmatmul.mubr.msk.bf16.vlgmr.msra.gmra.mrb[48].mxu1 %vm1339_vm5, %v3584_v42 }
0x1f53   :  { %5682 = vmatprep.mubr.msk.f32.mxu1 %vm5995_vm2, %v5994_v25 }
0x2025   :  { %v3663_v44 = vpop.f32.mrb[48].mxu1 }
0x2026   :  { %v3664_v51 = vadd.f32 %v5212_v43, %v3663_v44  ;;  %v5665_v28 = vpop.f32.mrb[49].mxu1 }
0x2027   :  { %v3666_v52 = vpop.f32.mrb[50].mxu1 }
0x2028   :  { %v3670_v45 = vadd.f32 %v3664_v51, %v3494_v8  ;;  %v3667_v46 = vadd.f32 %v5212_v43, %v3666_v52  ;;  %v5666_v47 = vpop.f32.mrb[51].mxu1 }
0x202a   :  { %v3671_v48 = vadd.f32 %v3667_v46, %v3495_v9  ;;  %v3676_v53 = vsel %vm244_vm1, %v3670_v45, 0.0  ;;  %v3684_v60 = vmul.f32 %v3670_v45, %v3670_v45 }
0x202b   :  { %3677 = vadd.xlane.f32.xlu0 %v3676_v53 }
0x202c   :  { %v3685_v54 = vmul.f32 %v3671_v48, %v3671_v48  ;;  %v3679_v58 = vsel %vm244_vm1, %v3671_v48, 0.0  ;;  %v3686_v61 = vsel %vm244_vm1, %v3684_v60, 0.0 }
0x202e   :  { %v3689_v55 = vsel %vm244_vm1, %v3685_v54, 0.0 }
0x202f   :  { %3690 = vadd.xlane.f32.xlu1 %v3689_v55  ;;  %3680 = vadd.xlane.f32.xlu0 %v3679_v58 }
0x2033   :  { %3687 = vadd.xlane.f32.xlu0 %v3686_v61 }
0x20b8   :  { %v3678_v0 = vpop.xlane.xlu0 %3677 }
0x20b9   :  { %v3682_v3 = vmul.f32 0.03125, %v3678_v0 }
0x20bb   :  { %v3694_v9 = vmul.f32 %v3682_v3, %v3682_v3  ;;  %v3698_v17 = vsub.f32 %v3670_v45, %v3682_v3 }
0x20bc   :  { %v3691_v1 = vpop.xlane.xlu1 %3690  ;;  %v3681_v2 = vpop.xlane.xlu0 %3680 }
0x20bd   :  { %v3683_v4 = vmul.f32 0.03125, %v3681_v2  ;;  %v3693_v5 = vmul.f32 0.03125, %v3691_v1 }
0x20bf   :  { %v3695_v6 = vmul.f32 %v3683_v4, %v3683_v4  ;;  %v3699_v57 = vsub.f32 %v3671_v48, %v3683_v4 }
0x20c0   :  { %v3688_v8 = vpop.xlane.xlu0 %3687 }
0x20c1   :  { %v3697_v10 = vsub.f32 %v3693_v5, %v3695_v6  ;;  %v3692_v11 = vmul.f32 0.03125, %v3688_v8 }
0x20c3   :  { %v3701_v12 = vadd.f32 1e-12, %v3697_v10  ;;  %v3696_v14 = vsub.f32 %v3692_v11, %v3694_v9 }
0x20c5   :  { %5910 = vrsqrt.f32 %v3701_v12  ;;  %v3700_v15 = vadd.f32 1e-12, %v3696_v14  ;;  %v5810_v14 = vld [vmem:[%s7098_s10 + $0x30] sm:$0xff]  }
0x20c7   :  { %5912 = vrsqrt.f32 %v3700_v15 }
0x20cf   :  { %v5911_v59 = vpop.eup %5910 }
0x20d0   :  { %v3705_v18 = vmul.f32 %v5911_v59, %v3699_v57 }
0x20d1   :  { %v5913_v19 = vpop.eup %5912 }
0x20d2   :  { %v3713_v20 = vmul.f32 %v5220_v16, %v3705_v18  ;;  %v3704_v21 = vmul.f32 %v5913_v19, %v3698_v17 }
0x20d4   :  { %v3712_v24 = vmul.f32 %v5220_v16, %v3704_v21  ;;  %v6860_v26 = vadd.f32 %v5221_v56, %v3713_v20 }
0x20d6   :  { %v6862_v27 = vadd.f32 %v5221_v56, %v3712_v24 }
0x20d8   :  { %v3733_v29 = vpack.c.bf16 %v6860_v26, %v6862_v27 }
0x20da   :  { %5672 = vmatmul.mubr.msk.bf16.vlgmr.msra.gmra.mrb[56].mxu0 %vm244_vm1, %v3733_v29 }
0x20db   :  { %5677 = vmatprep.mubr.msk.f32.mxu0 %vm5995_vm2, %v5994_v25 }
0x21ad   :  { %v3796_v31 = vpop.f32.mrb[56].mxu0 }
0x21ae   :  { %v6872_v32 = vadd.f32 %v5227_v30, %v3796_v31  ;;  %v5673_v33 = vpop.f32.mrb[57].mxu0 }
0x21af   :  { %v3799_v34 = vpop.f32.mrb[58].mxu0 }
0x21b0   :  { %v3800_v35 = vadd.f32 %v5227_v30, %v3799_v34  ;;  %3811 = vrot.lane.b32.xlu1 %v6872_v32, %s5996_s16  ;;  %v5674_v36 = vpop.f32.mrb[59].mxu0 }
0x21b2   :  { %3888 = vrot.lane.b32.xlu0 %v3800_v35, %s5996_s16 }
0x2222   :  { %v3812_v37 = vpop.permute.xlu1 %3811 }
0x2223   :  { %5676 = vmatpush3.xpose.msk.msra.mxu0 %vm374_vm3, %v3812_v37 }
0x2224   :  { %v3889_v38 = vpop.permute.xlu0 %3888  ;;  %5685 = vmatprep.subr.mxu0 %v5994_v25 }
0x2225   :  { %5681 = vmatpush3.xpose.msk.msra.mxu1 %vm374_vm3, %v3889_v38 }
0x2226   :  { %5678 = vmatmul.mubr.msk.f32.vlgmr.msra.gmra.mrb[60].mxu0 %vm374_vm3, %v6872_v32  ;;  %5690 = vmatprep.subr.mxu1 %v5994_v25 }
0x2227   :  { %5687 = vmatprep.mubr.msk.f32.mxu0 %vm5995_vm2, %v5994_v25 }
0x2228   :  { %5683 = vmatmul.mubr.msk.f32.vlgmr.msra.gmra.mrb[52].mxu1 %vm374_vm3, %v3800_v35 }
0x2229   :  { %5692 = vmatprep.mubr.msk.f32.mxu1 %vm5995_vm2, %v5994_v25 }
0x22f9   :  { %v3883_v39 = vpop.f32.mrb[60].mxu0 }
0x22fa   :  { %v5679_v40 = vpop.f32.mrb[61].mxu0  ;;  %v3964_v28 = vmul.f32 0.25, %v3883_v39 }
0x22fb   :  { %v3960_v41 = vpop.f32.mrb[52].mxu1 }
0x22fc   :  { %v3965_v42 = vmul.f32 0.25, %v3960_v41  ;;  %v5684_v43 = vpop.f32.mrb[53].mxu1  ;;  %v3966_v52 = vadd.f32 %v3964_v28, %v6397_v7 }
0x22fe   :  { %v3967_v44 = vadd.f32 %v3965_v42, %v6400_v13  ;;  %v3968_v45 = vsel %vm542_vm4, %v3966_v52, -inf }
0x2300   :  { %v3971_v51 = vsel %vm542_vm4, %v3967_v44, -inf }
0x2301   :  { %3972 = vmax.xlane.f32.xlu1 %v3971_v51 }
0x2312   :  { %4203 = vrot.lane.b32.xlu1 %v6872_v32, %s5998_s30 }
0x2316   :  { %4201 = vrot.lane.b32.xlu1 %v6872_v32, %s5999_s18 }
0x231a   :  { %4281 = vrot.lane.b32.xlu1 %v3800_v35, %s5998_s30  ;;  %s7156_s30 = sld [smem:[#allocation25_spill]] }
0x233e   :  { %3969 = vmax.xlane.f32.xlu1 %v3968_v45 }
0x238e   :  { %v3973_v46 = vpop.xlane.xlu1 %3972 }
0x238f   :  { %v3975_v47 = vsub.f32 %v3967_v44, %v3973_v46 }
0x2391   :  { %v3978_v48 = vmul.f32 1.442695, %v3975_v47 }
0x2392   :  { %v4204_v55 = vpop.permute.xlu1 %4203 }
0x2393   :  { %5914 = vpow2.f32 %v3978_v48 }
0x2396   :  { %v4202_v58 = vpop.permute.xlu1 %4201 }
0x239a   :  { %v4282_v60 = vpop.permute.xlu1 %4281 }
0x239d   :  { %v5915_v53 = vpop.eup %5914 }
0x239e   :  { %v3983_v54 = vsel %vm542_vm4, %v5915_v53, 0.0 }
0x239f   :  { %3984 = vadd.xlane.f32.xlu0 %v3983_v54 }
0x23b5   :  { %4066 = vrot.lane.b32.xlu0 %v3800_v35, %s5997_s29 }
0x23b9   :  { %4279 = vrot.lane.b32.xlu0 %v3800_v35, %s5999_s18 }
0x23cb   :  { %v3970_v61 = vpop.xlane.xlu1 %3969 }
0x23cc   :  { %v3974_v62 = vsub.f32 %v3966_v52, %v3970_v61 }
0x23ce   :  { %v3976_v63 = vmul.f32 1.442695, %v3974_v62  ;;  %v5244_v62 = vld [vmem:[%s7099_s11 + $0x3] ss:$0 sm:$0xff] }
0x23d0   :  { %5916 = vpow2.f32 %v3976_v63 }
0x23da   :  { %v5917_v0 = vpop.eup %5916 }
0x23db   :  { %v3980_v1 = vsel %vm542_vm4, %v5917_v0, 0.0 }
0x23dc   :  { %3981 = vadd.xlane.f32.xlu0 %v3980_v1 }
0x23f2   :  { %3990 = vrot.lane.b32.xlu0 %v6872_v32, %s5997_s29 }
0x23f6   :  { %4459 = vrot.lane.b32.xlu0 %v3800_v35, %s6000_s13 }
0x242c   :  { %v3985_v2 = vpop.xlane.xlu0 %3984 }
0x242d   :  { %5918 = vrcp.f32 %v3985_v2 }
0x2430   :  { %v4067_v3 = vpop.permute.xlu0 %4066 }
0x2431   :  { %5691 = vmatpush3.msra.mxu1 %v4067_v3 }
0x2432   :  { %5701 = vmatprep.subr.mxu1 %v5994_v25 }
0x2434   :  { %v4280_v6 = vpop.permute.xlu0 %4279 }
0x2437   :  { %v5919_v4 = vpop.eup %5918 }
0x2438   :  { %v3989_v5 = vmul.f32 %v5919_v4, %v5915_v53  ;;  %v5811_v53 = vld [vmem:[%s7098_s10 + $0x38] sm:$0xff]  }
0x243a   :  { %5693 = vmatmul.mubr.msk.f32.vlgmr.msra.gmra.mrb[54].mxu1 %vm542_vm4, %v3989_v5 }
0x243b   :  { %5702 = vmatpush3.xpose.msk.msra.mxu1 %vm374_vm3, %v4204_v55  ;;  %5703 = vmatprep.mubr.msk.f32.mxu1 %vm5995_vm2, %v5994_v25 }
0x243c   :  { %5706 = vmatprep.subr.mxu1 %v5994_v25 }
0x243e   :  { %5704 = vmatmul.mubr.msk.f32.vlgmr.msra.gmra.mrb[56].mxu1 %vm374_vm3, %v4202_v58 }
0x243f   :  { %5707 = vmatpush3.xpose.msk.msra.mxu1 %vm374_vm3, %v4282_v60  ;;  %5708 = vmatprep.mubr.msk.f32.mxu1 %vm5995_vm2, %v5994_v25 }
0x2440   :  { %5716 = vmatprep.subr.mxu1 %v5994_v25 }
0x2442   :  { %5709 = vmatmul.mubr.msk.f32.vlgmr.msra.gmra.mrb[58].mxu1 %vm374_vm3, %v4280_v6 }
0x2443   :  { %5718 = vmatprep.mubr.msk.f32.mxu1 %vm5995_vm2, %v5994_v25 }
0x2469   :  { %v3982_v8 = vpop.xlane.xlu0 %3981 }
0x246a   :  { %5920 = vrcp.f32 %v3982_v8 }
0x246d   :  { %v3991_v9 = vpop.permute.xlu0 %3990 }
0x246e   :  { %5686 = vmatpush3.msra.mxu0 %v3991_v9 }
0x246f   :  { %5695 = vmatprep.subr.bf16.mxu0 %v5994_v25 }
0x2471   :  { %v4460_v10 = vpop.permute.xlu0 %4459 }
0x2472   :  { %5717 = vmatpush3.msra.mxu1 %v4460_v10 }
0x2473   :  { %5727 = vmatprep.subr.bf16.mxu1 %v5994_v25 }
0x2474   :  { %v5921_v11 = vpop.eup %5920 }
0x2475   :  { %v3988_v12 = vmul.f32 %v5921_v11, %v5917_v0 }
0x2477   :  { %5688 = vmatmul.mubr.msk.f32.vlgmr.msra.gmra.mrb[62].mxu0 %vm542_vm4, %v3988_v12 }
0x2478   :  { %5697 = vmatprep.mubr.msk.bf16.mxu0 %vm5995_vm2, %v5994_v25  ;;  %5696 = vmatpush3.bf16.msra.mxu0 %v5810_v14 }
0x2479   :  { %5711 = vmatprep.subr.mxu0 %v5994_v25 }
0x250d   :  { %v4138_v15 = vpop.f32.mrb[54].mxu1 }
0x250e   :  { %v5694_v57 = vpop.f32.mrb[55].mxu1 }
0x2511   :  { %v4275_v59 = vpop.f32.mrb[56].mxu1 }
0x2512   :  { %v4357_v16 = vmul.f32 0.25, %v4275_v59  ;;  %v5705_v17 = vpop.f32.mrb[57].mxu1  ;;  %v5812_v59 = vld [vmem:[%s7102_s14 + $0x30] sm:$0xff]  }
0x2514   :  { %v4359_v18 = vadd.f32 %v4357_v16, %v6397_v7  ;;  %v5813_v16 = vld [vmem:[%s7102_s14 + $0x38] sm:$0xff]  }
0x2515   :  { %v4353_v19 = vpop.f32.mrb[58].mxu1 }
0x2516   :  { %v4358_v20 = vmul.f32 0.25, %v4353_v19  ;;  %v5710_v21 = vpop.f32.mrb[59].mxu1  ;;  %v4361_v56 = vsel %vm542_vm4, %v4359_v18, -inf }
0x2517   :  { %4362 = vmax.xlane.f32.xlu1 %v4361_v56 }
0x2518   :  { %v4360_v24 = vadd.f32 %v4358_v20, %v6400_v13 }
0x251a   :  { %v4364_v29 = vsel %vm542_vm4, %v4360_v24, -inf }
0x251b   :  { %4365 = vmax.xlane.f32.xlu1 %v4364_v29 }
0x254a   :  { %v4062_v30 = vpop.f32.mrb[62].mxu0 }
0x254b   :  { %v4142_v31 = vpack.c.bf16 %v4138_v15, %v4062_v30  ;;  %v5689_v33 = vpop.f32.mrb[63].mxu0 }
0x254d   :  { %5698 = vmatmul.mubr.msk.bf16.vlgmr.msra.gmra.mrb[64].mxu0 %vm374_vm3, %v4142_v31 }
0x254e   :  { %5713 = vmatprep.mubr.msk.f32.mxu0 %vm5995_vm2, %v5994_v25 }
0x25a4   :  { %v4363_v7 = vpop.xlane.xlu1 %4362 }
0x25a5   :  { %v4367_v34 = vsub.f32 %v4359_v18, %v4363_v7 }
0x25a7   :  { %v4369_v35 = vmul.f32 1.442695, %v4367_v34 }
0x25a8   :  { %v4366_v36 = vpop.xlane.xlu1 %4365 }
0x25a9   :  { %5922 = vpow2.f32 %v4369_v35  ;;  %v4368_v37 = vsub.f32 %v4360_v24, %v4366_v36 }
0x25ab   :  { %v4371_v38 = vmul.f32 1.442695, %v4368_v37 }
0x25ad   :  { %5924 = vpow2.f32 %v4371_v38 }
0x25b3   :  { %v5923_v13 = vpop.eup %5922 }
0x25b4   :  { %v4373_v39 = vsel %vm542_vm4, %v5923_v13, 0.0 }
0x25b5   :  { %4374 = vadd.xlane.f32.xlu1 %v4373_v39 }
0x25b7   :  { %v5925_v40 = vpop.eup %5924 }
0x25b8   :  { %v4376_v41 = vsel %vm542_vm4, %v5925_v40, 0.0 }
0x25b9   :  { %4377 = vadd.xlane.f32.xlu1 %v4376_v41 }
0x25ca   :  { %4383 = vrot.lane.b32.xlu1 %v6872_v32, %s6000_s13 }
0x2620   :  { %v4186_v42 = vpop.f32.mrb[64].mxu0 }
0x2621   :  { %v5699_v43 = vpop.f32.mrb[65].mxu0  ;;  %v4199_v63 = vadd.f32 %v5244_v62, %v4186_v42 }
0x2622   :  { %v4189_v44 = vpop.f32.mrb[66].mxu0  ;;  %v5256_v43 = vld [vmem:[%s7150_s17 + $0x3] ss:$0 sm:$0xff] }
0x2623   :  { %v5700_v51 = vpop.f32.mrb[67].mxu0  ;;  %v4200_v1 = vadd.f32 %v5244_v62, %v4189_v44 }
0x2642   :  { %v4375_v28 = vpop.xlane.xlu1 %4374 }
0x2643   :  { %5926 = vrcp.f32 %v4375_v28 }
0x2646   :  { %v4378_v52 = vpop.xlane.xlu1 %4377 }
0x2647   :  { %5928 = vrcp.f32 %v4378_v52 }
0x264a   :  { %v4384_v45 = vpop.permute.xlu1 %4383 }
0x264b   :  { %5712 = vmatpush3.msra.mxu0 %v4384_v45  ;;  %v5814_v45 = vld [vmem:[%s7151_s6 + $0x60] sm:$0xff]  }
0x264c   :  { %5721 = vmatprep.subr.bf16.mxu0 %v5994_v25 }
0x264d   :  { %v5927_v46 = vpop.eup %5926 }
0x264e   :  { %v4381_v47 = vmul.f32 %v5927_v46, %v5923_v13  ;;  %v5255_v13 = vld [vmem:[%s7149_s28 + $0x3] ss:$0 sm:$0xff]  ;;  %v5815_v46 = vld [vmem:[%s7151_s6 + $0x68] sm:$0xff]  }
0x2650   :  { %5714 = vmatmul.mubr.msk.f32.vlgmr.msra.gmra.mrb[68].mxu0 %vm542_vm4, %v4381_v47  ;;  %v5816_v47 = vld [vmem:[%s7151_s6 + $0x70] sm:$0xff]  }
0x2651   :  { %v5929_v48 = vpop.eup %5928  ;;  %5723 = vmatprep.mubr.msk.bf16.mxu0 %vm5995_vm2, %v5994_v25  ;;  %5722 = vmatpush3.bf16.msra.mxu0 %v5811_v53 }
0x2652   :  { %v4382_v32 = vmul.f32 %v5929_v48, %v5925_v40  ;;  %5735 = vmatprep.subr.bf16.mxu0 %v5994_v25  ;;  %v5817_v48 = vld [vmem:[%s7151_s6 + $0x78] sm:$0xff]  }
0x2654   :  { %5719 = vmatmul.mubr.msk.f32.vlgmr.msra.gmra.mrb[60].mxu1 %vm542_vm4, %v4382_v32  ;;  %v5262_v32 = vld [vmem:[%s7152_s12 + $0x3] ss:$0 sm:$0xff] }
0x2655   :  { %5731 = vmatprep.mubr.msk.bf16.mxu1 %vm5995_vm2, %v5994_v25  ;;  %5728 = vmatpush3.bf16.msra.mxu1 %v5812_v59 }
0x2656   :  { %5729 = vmatprep.subr.bf16.mxu1 %v5994_v25 }
0x2659   :  { %5730 = vmatpush3.bf16.msra.mxu1 %v5813_v16 }
0x265a   :  { %5747 = vmatprep.subr.bf16.mxu1 %v5994_v25 }
0x2723   :  { %v4455_v54 = vpop.f32.mrb[68].mxu0 }
0x2724   :  { %v5715_v55 = vpop.f32.mrb[69].mxu0 }
0x2727   :  { %v4531_v58 = vpop.f32.mrb[60].mxu1 }
0x2728   :  { %v4535_v60 = vpack.c.bf16 %v4531_v58, %v4455_v54  ;;  %v5720_v61 = vpop.f32.mrb[61].mxu1 }
0x272a   :  { %5724 = vmatmul.mubr.msk.bf16.vlgmr.msra.gmra.mrb[72].mxu0 %vm374_vm3, %v4535_v60 }
0x272b   :  { %5743 = vmatprep.mubr.msk.bf16.mxu0 %vm5995_vm2, %v5994_v25  ;;  %5736 = vmatpush3.bf16.msra.mxu0 %v5814_v45 }
0x272c   :  { %5737 = vmatprep.subr.bf16.mxu0 %v5994_v25 }
0x272f   :  { %5738 = vmatpush3.bf16.msra.mxu0 %v5815_v46 }
0x2730   :  { %5739 = vmatprep.subr.bf16.mxu0 %v5994_v25 }
0x2733   :  { %5740 = vmatpush3.bf16.msra.mxu0 %v5816_v47 }
0x2734   :  { %5741 = vmatprep.subr.bf16.mxu0 %v5994_v25 }
0x2737   :  { %5742 = vmatpush3.bf16.msra.mxu0 %v5817_v48 }
0x27fd   :  { %v4579_v0 = vpop.f32.mrb[72].mxu0 }
0x27fe   :  { %v4586_v2 = vadd.f32 %v4579_v0, %v4199_v63  ;;  %v5725_v3 = vpop.f32.mrb[73].mxu0 }
0x27ff   :  { %v4582_v4 = vpop.f32.mrb[74].mxu0 }
0x2800   :  { %v4588_v5 = vadd.f32 %v4586_v2, %v6862_v27  ;;  %v4587_v6 = vadd.f32 %v4582_v4, %v4200_v1  ;;  %v5726_v8 = vpop.f32.mrb[75].mxu0 }
0x2802   :  { %v4589_v9 = vadd.f32 %v4587_v6, %v6860_v26  ;;  %v4594_v10 = vsel %vm244_vm1, %v4588_v5, 0.0  ;;  %v4602_v11 = vmul.f32 %v4588_v5, %v4588_v5 }
0x2803   :  { %4595 = vadd.xlane.f32.xlu0 %v4594_v10 }
0x2804   :  { %v4597_v12 = vsel %vm244_vm1, %v4589_v9, 0.0  ;;  %v4604_v14 = vsel %vm244_vm1, %v4602_v11, 0.0  ;;  %v4603_v15 = vmul.f32 %v4589_v9, %v4589_v9 }
0x2805   :  { %4598 = vadd.xlane.f32.xlu1 %v4597_v12 }
0x2806   :  { %v4607_v57 = vsel %vm244_vm1, %v4603_v15, 0.0 }
0x2807   :  { %4605 = vadd.xlane.f32.xlu0 %v4604_v14 }
0x280b   :  { %4608 = vadd.xlane.f32.xlu0 %v4607_v57 }
0x2816   :  { %1441 = vrot.lane.b32.xlu1 %v6540_v23, %s5996_s16 }
0x281a   :  { %2579 = vrot.lane.b32.xlu1 %v6701_v50, %s5997_s29 }
0x281e   :  { %2585 = vrot.lane.b32.xlu1 %v6699_v49, %s5997_s29 }
0x2890   :  { %v4596_v23 = vpop.xlane.xlu0 %4595 }
0x2891   :  { %v4600_v17 = vmul.f32 0.03125, %v4596_v23  ;;  %v5275_v23 = vld [vmem:[%s7153_s15 + $0x3] ss:$0 sm:$0xff]  ;;  %s6001_s15 = smov 32  }
0x2892   :  { %v4599_v50 = vpop.xlane.xlu1 %4598 }
0x2893   :  { %v4612_v49 = vmul.f32 %v4600_v17, %v4600_v17  ;;  %v4601_v19 = vmul.f32 0.03125, %v4599_v50  ;;  %v4616_v36 = vsub.f32 %v4588_v5, %v4600_v17 }
0x2894   :  { %v4606_v18 = vpop.xlane.xlu0 %4605 }
0x2895   :  { %v4610_v20 = vmul.f32 0.03125, %v4606_v18  ;;  %v4613_v29 = vmul.f32 %v4601_v19, %v4601_v19  ;;  %v4617_v39 = vsub.f32 %v4589_v9, %v4601_v19 }
0x2896   :  { %v1442_v21 = vpop.permute.xlu1 %1441 }
0x2897   :  { %v4614_v56 = vsub.f32 %v4610_v20, %v4612_v49  ;;  %1444 = vst.msk [vmem:[#allocation3 + $0x1] sm:$0x1] %vm1438_vm6, %v1442_v21 }
0x2898   :  { %v4609_v24 = vpop.xlane.xlu0 %4608 }
0x2899   :  { %v4618_v30 = vadd.f32 1e-12, %v4614_v56  ;;  %v4611_v31 = vmul.f32 0.03125, %v4609_v24 }
0x289a   :  { %v6976_v33 = vpop.permute.xlu1 %2579 }
0x289b   :  { %5930 = vrsqrt.f32 %v4618_v30  ;;  %v4615_v7 = vsub.f32 %v4611_v31, %v4613_v29 }
0x289d   :  { %v4619_v34 = vadd.f32 1e-12, %v4615_v7 }
0x289e   :  { %v2586_v35 = vpop.permute.xlu1 %2585 }
0x289f   :  { %5932 = vrsqrt.f32 %v4619_v34  ;;  %2588 = vst.msk [vmem:[#allocation3 + $0x1] sm:$0x1] %vm2582_vm7, %v2586_v35  ;;  %v5818_v35 = vld [vmem:[%s7156_s30] sm:$0xff]  }
0x28a5   :  { %v5931_v37 = vpop.eup %5930 }
0x28a6   :  { %v4622_v38 = vmul.f32 %v5931_v37, %v4616_v36  ;;  %v5819_v36 = vld [vmem:[%s7156_s30 + $0x8] sm:$0xff]   ;;  %v5821_v37 = vld [vmem:[%s7156_s30 + $0x18] sm:$0xff]  }
0x28a8   :  { %v4630_v42 = vmul.f32 %v5255_v13, %v4622_v38  ;;  %v5824_v38 = vld [vmem:[%s7156_s30 + $0x30] sm:$0xff]  }
0x28a9   :  { %v5933_v40 = vpop.eup %5932 }
0x28aa   :  { %v4623_v41 = vmul.f32 %v5933_v40, %v4617_v39  ;;  %v4638_v51 = vadd.f32 %v5256_v43, %v4630_v42 }
0x28ac   :  { %v4631_v44 = vmul.f32 %v5255_v13, %v4623_v41  ;;  %v5825_v13 = vld [vmem:[%s7156_s30 + $0x38] sm:$0xff]  }
0x28ae   :  { %v4639_v28 = vadd.f32 %v5256_v43, %v4631_v44 }
0x28b0   :  { %v4640_v52 = vpack.c.bf16 %v4639_v28, %v4638_v51 }
0x28b2   :  { %5732 = vmatmul.mubr.msk.bf16.vlgmr.msra.gmra.mrb[64].mxu1 %vm244_vm1, %v4640_v52 }
0x28b3   :  { %5763 = vmatprep.mubr.msk.bf16.mxu1 %vm5995_vm2, %v5994_v25  ;;  %5748 = vmatpush3.bf16.msra.mxu1 %v5818_v35 }
0x28b4   :  { %5749 = vmatprep.subr.bf16.mxu1 %v5994_v25 }
0x28b7   :  { %5750 = vmatpush3.bf16.msra.mxu1 %v5819_v36 }
0x28b8   :  { %5751 = vmatprep.subr.bf16.mxu1 %v5994_v25 }
0x2985   :  { %v4703_v53 = vpop.f32.mrb[64].mxu1 }
0x2986   :  { %v4704_v54 = vadd.f32 %v5262_v32, %v4703_v53  ;;  %v5733_v55 = vpop.f32.mrb[65].mxu1 }
0x2987   :  { %v4706_v58 = vpop.f32.mrb[66].mxu1 }
0x2988   :  { %v4712_v60 = vmul.f32 0.044715, %v4704_v54  ;;  %v4707_v61 = vadd.f32 %v5262_v32, %v4706_v58  ;;  %v5734_v62 = vpop.f32.mrb[67].mxu1  ;;  %v4710_v12 = vmul.f32 0.5, %v4704_v54 }
0x298a   :  { %v4714_v63 = vmul.f32 %v4712_v60, %v4704_v54  ;;  %v4713_v0 = vmul.f32 0.044715, %v4707_v61  ;;  %v4711_v14 = vmul.f32 0.5, %v4707_v61  ;;  %v5283_v60 = vld [vmem:[%s7154_s5 + $0x3] ss:$0 sm:$0xff] }
0x298c   :  { %v4716_v1 = vmul.f32 %v4714_v63, %v4704_v54  ;;  %v4715_v2 = vmul.f32 %v4713_v0, %v4707_v61  ;;  %v5284_v0 = vld [vmem:[%s7155_s26 + $0x3] ss:$0 sm:$0xff]  ;;  %s5966_s26 = scalar_lea.vmem %s4990_s7, 32 }
0x298d   :  { %p5967_p10 = scmp.ne.s32.totalorder %s4990_s7, %s5966_s26  ;;  %p5972_p12 = scmp.lt.s32.totalorder %s5966_s26, %s5966_s26 }
0x298e   :  { %v4718_v3 = vadd.f32 %v4716_v1, %v4704_v54  ;;  %v4717_v4 = vmul.f32 %v4715_v2, %v4707_v61 }
0x298f   :  { %p5973_p13 = por %p5972_p12, %p5971_p11 }
0x2990   :  { %v4720_v5 = vmul.f32 0.7978846, %v4718_v3  ;;  %v4719_v6 = vadd.f32 %v4717_v4, %v4707_v61 }
0x2991   :  { %p5974_p0 = pnand %p5973_p13, %p5967_p10 }
0x2992   :  { %5934 = vtanh.f32 %v4720_v5  ;;  %v4721_v8 = vmul.f32 0.7978846, %v4719_v6 }
0x2994   :  { %5936 = vtanh.f32 %v4721_v8  ;;  %v5285_v8 = vld [vmem:[%s7157_s0] ss:$0 sm:$0xff] }
0x299c   :  { %v5935_v9 = vpop.eup %5934 }
0x299d   :  { %v4724_v10 = vadd.f32 1.0, %v5935_v9 }
0x299e   :  { %v5937_v11 = vpop.eup %5936 }
0x299f   :  { %v4725_v15 = vadd.f32 1.0, %v5937_v11  ;;  %v4726_v57 = vmul.f32 %v4724_v10, %v4710_v12 }
0x29a1   :  { %v4727_v59 = vmul.f32 %v4725_v15, %v4711_v14 }
0x29a3   :  { %v4728_v16 = vpack.c.bf16 %v4727_v59, %v4726_v57 }
0x29a5   :  { %5744 = vmatmul.mubr.msk.bf16.vlgmr.msra.gmra.mrb[76].mxu0 %vm1339_vm5, %v4728_v16 }
0x2a78   :  { %v4807_v17 = vpop.f32.mrb[76].mxu0 }
0x2a79   :  { %v4808_v50 = vadd.f32 %v5275_v23, %v4807_v17  ;;  %v5745_v18 = vpop.f32.mrb[77].mxu0 }
0x2a7a   :  { %v4810_v49 = vpop.f32.mrb[78].mxu0 }
0x2a7b   :  { %v7010_v19 = vadd.f32 %v4808_v50, %v4638_v51  ;;  %v4811_v20 = vadd.f32 %v5275_v23, %v4810_v49  ;;  %v5746_v21 = vpop.f32.mrb[79].mxu0 }
0x2a7d   :  { %v7012_v56 = vadd.f32 %v4811_v20, %v4639_v28  ;;  %v4820_v24 = vsel %vm244_vm1, %v7010_v19, 0.0  ;;  %v4828_v7 = vmul.f32 %v7010_v19, %v7010_v19 }
0x2a7e   :  { %4821 = vadd.xlane.f32.xlu0 %v4820_v24 }
0x2a7f   :  { %v4829_v29 = vmul.f32 %v7012_v56, %v7012_v56  ;;  %v4823_v31 = vsel %vm244_vm1, %v7012_v56, 0.0  ;;  %v4830_v34 = vsel %vm244_vm1, %v4828_v7, 0.0 }
0x2a81   :  { %v4833_v30 = vsel %vm244_vm1, %v4829_v29, 0.0 }
0x2a82   :  { %4834 = vadd.xlane.f32.xlu1 %v4833_v30  ;;  %4824 = vadd.xlane.f32.xlu0 %v4823_v31 }
0x2a86   :  { %4831 = vadd.xlane.f32.xlu0 %v4830_v34 }
0x2a93   :  { %3729 = vrot.lane.b32.xlu1 %v6860_v26, %s6001_s15  ;;  %v5820_v26 = vld [vmem:[%s7156_s30 + $0x10] sm:$0xff]  }
0x2a94   :  { %5752 = vmatpush3.bf16.msra.mxu1 %v5820_v26 }
0x2a95   :  { %5753 = vmatprep.subr.bf16.mxu1 %v5994_v25 }
0x2a98   :  { %5754 = vmatpush3.bf16.msra.mxu1 %v5821_v37 }
0x2a99   :  { %5755 = vmatprep.subr.bf16.mxu1 %v5994_v25 }
0x2a9c   :  { %1435 = vrot.lane.b32.xlu0 %v6538_v22, %s5996_s16  ;;  %v5822_v22 = vld [vmem:[%s7156_s30 + $0x20] sm:$0xff]  }
0x2a9d   :  { %5756 = vmatpush3.bf16.msra.mxu1 %v5822_v22 }
0x2a9e   :  { %5757 = vmatprep.subr.bf16.mxu1 %v5994_v25 }
0x2aa0   :  { %3723 = vrot.lane.b32.xlu0 %v6862_v27, %s6001_s15  ;;  %v5823_v27 = vld [vmem:[%s7156_s30 + $0x28] sm:$0xff]  }
0x2aa1   :  { %5758 = vmatpush3.bf16.msra.mxu1 %v5823_v27 }
0x2aa2   :  { %5759 = vmatprep.subr.bf16.mxu1 %v5994_v25 }
0x2aa5   :  { %5760 = vmatpush3.bf16.msra.mxu1 %v5824_v38 }
0x2aa6   :  { %5761 = vmatprep.subr.bf16.mxu1 %v5994_v25 }
0x2aa9   :  { %5762 = vmatpush3.bf16.msra.mxu1 %v5825_v13 }
0x2b0b   :  { %v4822_v39 = vpop.xlane.xlu0 %4821 }
0x2b0c   :  { %v4826_v42 = vmul.f32 0.03125, %v4822_v39 }
0x2b0e   :  { %v4838_v45 = vmul.f32 %v4826_v42, %v4826_v42  ;;  %v4842_v61 = vsub.f32 %v7010_v19, %v4826_v42 }
0x2b0f   :  { %v4835_v40 = vpop.xlane.xlu1 %4834  ;;  %v4825_v41 = vpop.xlane.xlu0 %4824 }
0x2b10   :  { %v4827_v43 = vmul.f32 0.03125, %v4825_v41  ;;  %v4837_v44 = vmul.f32 0.03125, %v4835_v40 }
0x2b12   :  { %v4839_v51 = vmul.f32 %v4827_v43, %v4827_v43  ;;  %v4843_v55 = vsub.f32 %v7012_v56, %v4827_v43 }
0x2b13   :  { %v3730_v28 = vpop.permute.xlu1 %3729  ;;  %v4832_v52 = vpop.xlane.xlu0 %4831 }
0x2b14   :  { %v4841_v46 = vsub.f32 %v4837_v44, %v4839_v51  ;;  %3732 = vst.msk [vmem:[#allocation3 + $0x1] sm:$0x1] %vm3726_vm8, %v3730_v28  ;;  %v4836_v47 = vmul.f32 0.03125, %v4832_v52 }
0x2b16   :  { %v4845_v48 = vadd.f32 1e-12, %v4841_v46  ;;  %v4840_v32 = vsub.f32 %v4836_v47, %v4838_v45 }
0x2b17   :  { %v1436_v53 = vpop.permute.xlu0 %1435 }
0x2b18   :  { %5938 = vrsqrt.f32 %v4845_v48  ;;  %v4844_v25 = vadd.f32 1e-12, %v4840_v32  ;;  %1439 = vst.msk [vmem:[#allocation3] sm:$0x1] %vm1438_vm6, %v1436_v53 }
0x2b19   :  { %2583 = vst.msk [vmem:[#allocation3] sm:$0x1] %vm2582_vm7, %v6976_v33 }
0x2b1a   :  { %5940 = vrsqrt.f32 %v4844_v25 }
0x2b1b   :  { %v3724_v54 = vpop.permute.xlu0 %3723 }
0x2b1c   :  { %3727 = vst.msk [vmem:[#allocation3] sm:$0x1] %vm3726_vm8, %v3724_v54 }
0x2b22   :  { %v5939_v58 = vpop.eup %5938 }
0x2b23   :  { %v4849_v62 = vmul.f32 %v5939_v58, %v4843_v55 }
0x2b24   :  { %v5941_v63 = vpop.eup %5940 }
0x2b25   :  { %v4857_v33 = vmul.f32 %v5283_v60, %v4849_v62  ;;  %v4848_v1 = vmul.f32 %v5941_v63, %v4842_v61 }
0x2b27   :  { %v4865_v2 = vadd.f32 %v5284_v0, %v4857_v33  ;;  %v4856_v3 = vmul.f32 %v5283_v60, %v4848_v1 }
0x2b29   :  { %4867 = vst.msk [vmem:[#allocation3 + $0x1] sm:$0x1] %vm88_vm0, %v4865_v2  ;;  %v4864_v4 = vadd.f32 %v5284_v0, %v4856_v3 }
0x2b2b   :  { %4866 = vst.msk [vmem:[#allocation3] sm:$0x1] %vm88_vm0, %v4864_v4 }
0x2b32   :  { %v4868_v5 = vld [vmem:[#allocation3] sm:$0x3] }
0x2b33   :  { %v4869_v6 = vpack.c.bf16 %v4868_v5, %v4868_v5 }
0x2b35   :  { %5764 = vmatmul.mubr.bf16.vlgmr.msra.gmra.mrb[68].mxu1 %v4869_v6 }
0x2c08   :  { %v4975_v9 = vpop.f32.mrb[68].mxu1 }
0x2c09   :  { %v4976_v10 = vadd.f32 %v5285_v8, %v4975_v9  ;;  %v5765_v11 = vpop.f32.mrb[69].mxu1 }
0x2c0a   :  { %v4978_v12 = vpop.f32.mrb[70].mxu1 }
0x2c0b   :  { %v5766_v14 = vpop.f32.mrb[71].mxu1  ;;  %4982 = vst.msk [vmem:[#allocation7] sm:$0x3] %vm4981_vm9, %v4976_v10 }
0x2c0c   :  { %5977 = shalt.err (!%p5974_p0)
}
0x2c0d   :  { %s7158_s12 = sld [smem:[#allocation27_spill]] }
0x2c13   :  { %s5978_s15 = scalar_lea.hbm %s7158_s12, 32 }
0x2c14   :  { %p5979_p1 = scmp.ne.s32.totalorder %s7158_s12, %s5978_s15  ;;  %p5982_p2 = scmp.lt.u32.totalorder %s5978_s15, %s7158_s12 }
0x2c16   :  { %p5984_p3 = pnand %p5982_p2, %p5979_p1 }
0x2c18   :  { %5987 = shalt.err (!%p5984_p3)
}
0x2c19   :  { %4992 = dma.vmem_to_hbm [thread:$0]  %s4990_s7, 32, %s7158_s12, [#allocation8]  }
0x2c1a   :  { %5990 = dma.done.wait [#allocation8], 32  }
0x2c1b   :  { %5991 = vsyncadd [#allocation8], 4294967264 }
0x2c1c   :  { %4996 = vsyncpa [#allocation8], 1 }

</bundles_post_ra>
